<compile_context>
chip_gen: v6e
topology: v6e:2x2x1
jax: 0.10.0
libtpu: 0.0.40
codegen_flags: <defaults>
</compile_context>

<pallas_src>
import math

import jax
import jax.numpy as jnp
from jax import lax
from jax.experimental import pallas as pl
from jax.experimental.pallas import tpu as pltpu


def _leaky(x):
    return jnp.where(x > 0, x, 0.2 * x)


def _sigmoid(x):
    # numerically stable sigmoid via tanh (EUP), identical math to 1/(1+e^-x)
    return 0.5 * jnp.tanh(0.5 * x) + 0.5


def _cdiv(a, b):
    return -(-a // b)


def _round_up(a, b):
    return _cdiv(a, b) * b


def _pad_rows(x, rows):
    if rows == x.shape[0]:
        return x
    return jnp.zeros((rows,) + x.shape[1:], x.dtype).at[: x.shape[0]].set(x)


def _full_spec(x):
    nd = x.ndim
    return pl.BlockSpec(x.shape, lambda i, _nd=nd: (0,) * _nd)


# ----------------------------------------------------------------------------
# Kernel 1: frontend  (stack2double + grouped double2simple + hoisted gi0)
# ----------------------------------------------------------------------------
def _make_frontend_kernel(C, E):
    def kernel(volt_ref, cw_ref, w1v_ref, w1w_ref, b1_ref, w2t_ref, b2_ref,
               cw1_ref, cb1_ref, cw2_ref, cb2_ref, wi0_ref, bi0_ref, gi0_ref):
        dot = lambda a, b: jnp.dot(a, b, preferred_element_type=jnp.float32)
        w1v = w1v_ref[...]
        w1w = w1w_ref[...]
        b1 = b1_ref[...]
        w2t = w2t_ref[...]
        b2 = b2_ref[...]

        # stack2double (shared Linear(2,E)+LeakyReLU+Linear(E,E)+LeakyReLU), per segment c
        ds = []
        for c in range(C):
            h_c = _leaky(volt_ref[:, c:c + 1] * w1v + cw_ref[:, c:c + 1] * w1w + b1)
            ds.append(_leaky(dot(h_c, w2t) + b2))

        # double2simple: grouped conv1 + LeakyReLU + grouped conv2 + LeakyReLU,
        # kept group-structured (true FLOPs, no dense expansion), fused per j.
        s = None
        for j in range(E):
            acc = ds[0] * cw1_ref[j * C:j * C + 1, :]
            for c in range(1, C):
                acc = acc + ds[c] * cw1_ref[j * C + c:j * C + c + 1, :]
            v1j = _leaky(acc + cb1_ref[j:j + 1, :])
            term = v1j * cw2_ref[j:j + 1, :]
            s = term if s is None else s + term
        simple = _leaky(s + cb2_ref[...])

        # hoisted layer-0 GRU input gates: one big (rows,E)x(E,3E_pad) matmul
        gi0_ref[...] = dot(simple, wi0_ref[...]) + bi0_ref[...]

    return kernel


# ----------------------------------------------------------------------------
# Kernel 2: sequential GRU (time-chunked) + fused after_rnn
# ----------------------------------------------------------------------------
def _make_gru_kernel(T, TC, Bp, E, L):
    G = 3 * E

    def kernel(gi0_ref, wi_ref, bi_ref, wh_ref, bh_ref, wr1_ref, br1_ref,
               wr2_ref, br2_ref, h0_ref, out_ref, hid_ref, h_state, rnn_chunk):
        dot = lambda a, b: jnp.dot(a, b, preferred_element_type=jnp.float32)
        chunk = pl.program_id(0)

        @pl.when(chunk == 0)
        def _():
            h_state[...] = h0_ref[...]

        # hoist per-layer weights / broadcast biases out of the time loop
        wis = [wi_ref[l] for l in range(L)]
        whs = [wh_ref[l] for l in range(L)]
        bis = [jnp.broadcast_to(bi_ref[l], (Bp, G)) for l in range(L)]
        bhs = [jnp.broadcast_to(bh_ref[l], (Bp, G)) for l in range(L)]

        steps = jnp.minimum(TC, T - chunk * TC)

        def step(tl, carry):
            row = pl.multiple_of(tl * Bp, Bp)
            gi0 = gi0_ref[pl.ds(row, Bp), :]
            x = None
            new_h = []
            for l in range(L):
                hp = carry[l]
                if l == 0:
                    gi = gi0[:, :G]                      # precomputed in frontend
                else:
                    gi = dot(x, wis[l]) + bis[l]
                gh = dot(hp, whs[l]) + bhs[l]
                r = _sigmoid(gi[:, :E] + gh[:, :E])
                z = _sigmoid(gi[:, E:2 * E] + gh[:, E:2 * E])
                n = jnp.tanh(gi[:, 2 * E:G] + r * gh[:, 2 * E:G])
                hn = (1.0 - z) * n + z * hp
                new_h.append(hn)
                x = hn
            rnn_chunk[pl.ds(row, Bp), :] = x
            return tuple(new_h)

        h_init = tuple(h_state[l] for l in range(L))
        h_fin = lax.fori_loop(0, steps, step, h_init)
        for l in range(L):
            h_state[l] = h_fin[l]
            hid_ref[l] = h_fin[l]

        # after_rnn on the whole chunk: Linear(E,E)+LeakyReLU+Linear(E,O_pad)
        a = _leaky(dot(rnn_chunk[...], wr1_ref[...]) + br1_ref[...])
        out_ref[...] = dot(a, wr2_ref[...]) + br2_ref[...]

    return kernel


# ----------------------------------------------------------------------------
# Wrapper
# ----------------------------------------------------------------------------
def gru_mega_forward(input_volt, connection_weights, params, init=None):
    B, C, T = input_volt.shape
    E = params["embed_dim"]
    O = params["out_channel"]
    L = params["n_layers"]
    G = 3 * E
    f32 = jnp.float32

    Bp = _round_up(max(B, 8), 8)            # batch padded to sublane multiple
    GP = _round_up(G, 128)                  # lane-dense gi0 width
    OP = _round_up(O, 128)                  # lane-dense output width
    TC = min(T, 64)                         # timesteps per sequential chunk
    NC = _cdiv(T, TC)
    Ttot = NC * TC
    Mg = Ttot * Bp                          # rows consumed by the GRU kernel
    MT = min(512, Mg)                       # frontend row tile (multiple of 8)
    NF = _cdiv(Mg, MT)
    MR = NF * MT

    # ---- inputs laid out as rows m = t*Bp + b
    volt_t = jnp.transpose(input_volt, (2, 0, 1)).astype(f32)            # (T,B,C)
    volt_p = jnp.zeros((Ttot, Bp, C), f32).at[:T, :B, :].set(volt_t)
    cw_p = jnp.zeros((Ttot, Bp, C), f32).at[:, :B, :].set(
        jnp.broadcast_to(connection_weights.astype(f32)[None], (Ttot, B, C)))
    volt_flat = _pad_rows(volt_p.reshape(Mg, C), MR)
    cw_flat = _pad_rows(cw_p.reshape(Mg, C), MR)

    # ---- stack2double weights (shared across segments)
    w1v = params["lin1_w"][:, 0].reshape(1, E)
    w1w = params["lin1_w"][:, 1].reshape(1, E)
    b1 = params["lin1_b"].reshape(1, E)
    w2t = params["lin2_w"].T
    b2 = params["lin2_b"].reshape(1, E)

    # ---- grouped conv weights, kept group-structured (j-major rows, e in lanes)
    w1c = params["conv1_w"].reshape(E, E, C)                             # [e, j, c]
    cw1 = jnp.transpose(w1c, (1, 2, 0)).reshape(E * C, E)                # [j*C+c, e]
    cb1 = params["conv1_b"].reshape(E, E).T                              # [j, e]
    cw2 = params["conv2_w"].reshape(E, E).T                              # [j, e]
    cb2 = params["conv2_b"].reshape(1, E)

    # ---- GRU weights: fused (E, 3E) per layer, gate order r|z|n, biases folded
    WI = jnp.stack([params[f"w_ih_l{l}"].T for l in range(L)])           # (L,E,3E)
    WH = jnp.stack([params[f"w_hh_l{l}"].T for l in range(L)])
    bi_list, bh_list = [], []
    for l in range(L):
        bih = params[f"b_ih_l{l}"]
        bhh = params[f"b_hh_l{l}"]
        bi_list.append(jnp.concatenate(
            [bih[:E] + bhh[:E], bih[E:2 * E] + bhh[E:2 * E], bih[2 * E:]]).reshape(1, G))
        bh_list.append(jnp.concatenate(
            [jnp.zeros((2 * E,), f32), bhh[2 * E:]]).reshape(1, G))
    BI = jnp.stack(bi_list)                                              # (L,1,3E)
    BH = jnp.stack(bh_list)                                              # (L,1,3E)
    wi0p = jnp.zeros((E, GP), f32).at[:, :G].set(WI[0])
    bi0p = jnp.zeros((1, GP), f32).at[:, :G].set(BI[0])

    # ---- after_rnn weights (output lane-padded)
    wr1 = params["after1_w"].T
    br1 = params["after1_b"].reshape(1, E)
    wr2p = jnp.zeros((E, OP), f32).at[:, :O].set(params["after2_w"].T)
    br2p = jnp.zeros((1, OP), f32).at[:, :O].set(params["after2_b"].reshape(1, O))

    # ---- initial hidden state (padded batch)
    if init is None:
        h0 = jnp.zeros((L, Bp, E), f32)
    else:
        h0 = jnp.zeros((L, Bp, E), f32).at[:, :B, :].set(init.astype(f32))
    # TODO(synk): random_init=True (host-side torch.randn) has no in-kernel
    # equivalent; pass an explicit `init` array instead.

    # ---------------- frontend: row-parallel, pipelined over row tiles --------
    fe_args = (volt_flat, cw_flat, w1v, w1w, b1, w2t, b2,
               cw1, cb1, cw2, cb2, wi0p, bi0p)
    fe_specs = [pl.BlockSpec((MT, C), lambda i: (i, 0)),
                pl.BlockSpec((MT, C), lambda i: (i, 0))]
    fe_specs += [_full_spec(a) for a in fe_args[2:]]

    gi0 = pl.pallas_call(
        _make_frontend_kernel(C, E),
        grid=(NF,),
        in_specs=fe_specs,
        out_specs=pl.BlockSpec((MT, GP), lambda i: (i, 0)),
        out_shape=jax.ShapeDtypeStruct((MR, GP), f32),
        compiler_params=pltpu.CompilerParams(
            dimension_semantics=("parallel",)),
    )(*fe_args)

    # ---------------- GRU + after_rnn: sequential over time chunks ------------
    gru_args = (gi0, WI, BI, WH, BH, wr1, br1, wr2p, br2p, h0)
    gru_specs = [pl.BlockSpec((TC * Bp, GP), lambda c: (c, 0))]
    gru_specs += [_full_spec(a) for a in gru_args[1:]]

    out_pad, hidden_pad = pl.pallas_call(
        _make_gru_kernel(T, TC, Bp, E, L),
        grid=(NC,),
        in_specs=gru_specs,
        out_specs=(pl.BlockSpec((TC * Bp, OP), lambda c: (c, 0)),
                   pl.BlockSpec((L, Bp, E), lambda c: (0, 0, 0))),
        out_shape=(jax.ShapeDtypeStruct((Mg, OP), f32),
                   jax.ShapeDtypeStruct((L, Bp, E), f32)),
        scratch_shapes=[pltpu.VMEM((L, Bp, E), f32),
                        pltpu.VMEM((TC * Bp, E), f32)],
        compiler_params=pltpu.CompilerParams(
            dimension_semantics=("arbitrary",)),
    )(*gru_args)

    out = out_pad.reshape(Ttot, Bp, OP)[:T, :B, :O]                      # (T,B,O)
    out = jnp.transpose(out, (1, 2, 0))                                  # (B,O,T)
    hidden = hidden_pad[:, :B, :]                                        # (L,B,E)
    return out, hidden


# ----------------------------------------------------------------------------
# Deterministic parameter init (same shapes as the torch module)
# ----------------------------------------------------------------------------
def init_params(key, in_channel, out_channel, n_layers):
    E = min(int(2 ** (math.floor(math.log2(in_channel)) + 2)), 64)
    ks = iter(jax.random.split(key, 64))

    def u(shape, fan_in):
        s = 1.0 / math.sqrt(fan_in)
        return jax.random.uniform(next(ks), shape, jnp.float32, -s, s)

    p = dict(embed_dim=E, out_channel=out_channel, n_layers=n_layers)
    p["lin1_w"] = u((E, 2), 2)
    p["lin1_b"] = u((E,), 2)
    p["lin2_w"] = u((E, E), E)
    p["lin2_b"] = u((E,), E)
    p["conv1_w"] = u((E * E, in_channel), in_channel)
    p["conv1_b"] = u((E * E,), in_channel)
    p["conv2_w"] = u((E, E), E)
    p["conv2_b"] = u((E,), E)
    for l in range(n_layers):
        p[f"w_ih_l{l}"] = u((3 * E, E), E)
        p[f"w_hh_l{l}"] = u((3 * E, E), E)
        p[f"b_ih_l{l}"] = u((3 * E,), E)
        p[f"b_hh_l{l}"] = u((3 * E,), E)
    p["after1_w"] = u((E, E), E)
    p["after1_b"] = u((E,), E)
    p["after2_w"] = u((out_channel, E), E)
    p["after2_b"] = u((out_channel,), E)
    return p


# ----------------------------------------------------------------------------
# Pure-JAX reference (follows the torch forward literally) for validation
# ----------------------------------------------------------------------------
def reference_forward(input_volt, connection_weights, params, init=None):
    B, C, T = input_volt.shape
    E = params["embed_dim"]
    L = params["n_layers"]
    x = jnp.transpose(input_volt, (2, 0, 1))                            # (T,B,C)
    w = jnp.broadcast_to(connection_weights[None], (T, B, C))
    syn = jnp.stack([x, w], -1)                                         # (T,B,C,2)
    h1 = _leaky(syn @ params["lin1_w"].T + params["lin1_b"])
    d = _leaky(h1 @ params["lin2_w"].T + params["lin2_b"])              # (T,B,C,E)
    w1 = params["conv1_w"].reshape(E, E, C)
    v1 = _leaky(jnp.einsum("tbce,ejc->tbej", d, w1)
                + params["conv1_b"].reshape(E, E))
    w2 = params["conv2_w"].reshape(E, E)
    s = _leaky(jnp.einsum("tbej,ej->tbe", v1, w2) + params["conv2_b"])
    h = ([jnp.zeros((B, E), jnp.float32) for _ in range(L)] if init is None
         else [init[l] for l in range(L)])
    outs = []
    for t in range(T):
        xt = s[t]
        for l in range(L):
            gi = xt @ params[f"w_ih_l{l}"].T + params[f"b_ih_l{l}"]
            gh = h[l] @ params[f"w_hh_l{l}"].T + params[f"b_hh_l{l}"]
            r = 1.0 / (1.0 + jnp.exp(-(gi[:, :E] + gh[:, :E])))
            z = 1.0 / (1.0 + jnp.exp(-(gi[:, E:2 * E] + gh[:, E:2 * E])))
            n = jnp.tanh(gi[:, 2 * E:] + r * gh[:, 2 * E:])
            h[l] = (1.0 - z) * n + z * h[l]
            xt = h[l]
        outs.append(xt)
    ro = jnp.stack(outs)                                                # (T,B,E)
    o = (_leaky(ro @ params["after1_w"].T + params["after1_b"])
         @ params["after2_w"].T + params["after2_b"])
    return jnp.transpose(o, (1, 2, 0)), jnp.stack(h)


if __name__ == "__main__":
    B, C, T, O, L = 2, 4, 8, 3, 2                 # embed_dim works out to 16
    key = jax.random.PRNGKey(0)
    kp, kx, kw = jax.random.split(key, 3)
    params = init_params(kp, C, O, L)
    input_volt = jax.random.normal(kx, (B, C, T), jnp.float32)
    connection_weights = jax.random.normal(kw, (B, C), jnp.float32)

    out, hidden = gru_mega_forward(input_volt, connection_weights, params)
    out = jax.block_until_ready(out)
    hidden = jax.block_until_ready(hidden)

    with jax.default_matmul_precision("float32"):
        ref_out, ref_hidden = reference_forward(input_volt, connection_weights, params)

    assert out.shape == (B, O, T)
    assert hidden.shape == (L, B, params["embed_dim"])
    assert jnp.allclose(out, ref_out, atol=5e-3, rtol=5e-3)
    assert jnp.allclose(hidden, ref_hidden, atol=5e-3, rtol=5e-3)
    print("KERNEL_OK")
</pallas_src>

<mosaic_0001>
module attributes {stable_mosaic.version = 11 : i64} {
  func.func @kernel(%arg0: i32, %arg1: memref<64x4xf32, #tpu.memory_space<vmem>>, %arg2: memref<64x4xf32, #tpu.memory_space<vmem>>, %arg3: memref<1x16xf32, #tpu.memory_space<vmem>>, %arg4: memref<1x16xf32, #tpu.memory_space<vmem>>, %arg5: memref<1x16xf32, #tpu.memory_space<vmem>>, %arg6: memref<16x16xf32, #tpu.memory_space<vmem>>, %arg7: memref<1x16xf32, #tpu.memory_space<vmem>>, %arg8: memref<64x16xf32, #tpu.memory_space<vmem>>, %arg9: memref<16x16xf32, #tpu.memory_space<vmem>>, %arg10: memref<16x16xf32, #tpu.memory_space<vmem>>, %arg11: memref<1x16xf32, #tpu.memory_space<vmem>>, %arg12: memref<16x128xf32, #tpu.memory_space<vmem>>, %arg13: memref<1x128xf32, #tpu.memory_space<vmem>>, %arg14: memref<64x128xf32, #tpu.memory_space<vmem>>) attributes {dimension_semantics = [#tpu.dimension_semantics<parallel>], iteration_bounds = array<i64: 1>, scalar_prefetch = 0 : i64, scratch_operands = 0 : i64, tpu.core_type = #tpu.core_type<tc>, window_params = [{transform_indices = @transform_0, window_bounds = array<i64: 64, 4>}, {transform_indices = @transform_1, window_bounds = array<i64: 64, 4>}, {pipeline_mode = #tpu.pipeline_mode<synchronous>, transform_indices = @transform_2, window_bounds = array<i64: 1, 16>}, {pipeline_mode = #tpu.pipeline_mode<synchronous>, transform_indices = @transform_3, window_bounds = array<i64: 1, 16>}, {pipeline_mode = #tpu.pipeline_mode<synchronous>, transform_indices = @transform_4, window_bounds = array<i64: 1, 16>}, {pipeline_mode = #tpu.pipeline_mode<synchronous>, transform_indices = @transform_5, window_bounds = array<i64: 16, 16>}, {pipeline_mode = #tpu.pipeline_mode<synchronous>, transform_indices = @transform_6, window_bounds = array<i64: 1, 16>}, {pipeline_mode = #tpu.pipeline_mode<synchronous>, transform_indices = @transform_7, window_bounds = array<i64: 64, 16>}, {pipeline_mode = #tpu.pipeline_mode<synchronous>, transform_indices = @transform_8, window_bounds = array<i64: 16, 16>}, {pipeline_mode = #tpu.pipeline_mode<synchronous>, transform_indices = @transform_9, window_bounds = array<i64: 16, 16>}, {pipeline_mode = #tpu.pipeline_mode<synchronous>, transform_indices = @transform_10, window_bounds = array<i64: 1, 16>}, {pipeline_mode = #tpu.pipeline_mode<synchronous>, transform_indices = @transform_11, window_bounds = array<i64: 16, 128>}, {pipeline_mode = #tpu.pipeline_mode<synchronous>, transform_indices = @transform_12, window_bounds = array<i64: 1, 128>}, {transform_indices = @transform_13, window_bounds = array<i64: 64, 128>}]} {
    %c0 = arith.constant 0 : index
    %c0_0 = arith.constant 0 : index
    %0 = vector.load %arg3[%c0, %c0_0] : memref<1x16xf32, #tpu.memory_space<vmem>>, vector<1x16xf32>
    %c0_1 = arith.constant 0 : index
    %c0_2 = arith.constant 0 : index
    %1 = vector.load %arg4[%c0_1, %c0_2] : memref<1x16xf32, #tpu.memory_space<vmem>>, vector<1x16xf32>
    %c0_3 = arith.constant 0 : index
    %c0_4 = arith.constant 0 : index
    %2 = vector.load %arg5[%c0_3, %c0_4] : memref<1x16xf32, #tpu.memory_space<vmem>>, vector<1x16xf32>
    %c0_5 = arith.constant 0 : index
    %c0_6 = arith.constant 0 : index
    %3 = vector.load %arg6[%c0_5, %c0_6] : memref<16x16xf32, #tpu.memory_space<vmem>>, vector<16x16xf32>
    %c0_7 = arith.constant 0 : index
    %c0_8 = arith.constant 0 : index
    %4 = vector.load %arg7[%c0_7, %c0_8] : memref<1x16xf32, #tpu.memory_space<vmem>>, vector<1x16xf32>
    %c0_9 = arith.constant 0 : index
    %c0_10 = arith.constant 0 : index
    %5 = vector.load %arg1[%c0_9, %c0_10] : memref<64x4xf32, #tpu.memory_space<vmem>>, vector<64x1xf32>
    %6 = vector.broadcast %5 : vector<64x1xf32> to vector<64x16xf32>
    %7 = vector.broadcast %0 : vector<1x16xf32> to vector<64x16xf32>
    %8 = arith.mulf %6, %7 : vector<64x16xf32>
    %c0_11 = arith.constant 0 : index
    %c0_12 = arith.constant 0 : index
    %9 = vector.load %arg2[%c0_11, %c0_12] : memref<64x4xf32, #tpu.memory_space<vmem>>, vector<64x1xf32>
    %10 = vector.broadcast %9 : vector<64x1xf32> to vector<64x16xf32>
    %11 = vector.broadcast %1 : vector<1x16xf32> to vector<64x16xf32>
    %12 = arith.mulf %10, %11 : vector<64x16xf32>
    %13 = arith.addf %8, %12 : vector<64x16xf32>
    %14 = vector.broadcast %2 : vector<1x16xf32> to vector<64x16xf32>
    %15 = arith.addf %13, %14 : vector<64x16xf32>
    %cst = arith.constant 0.000000e+00 : f32
    %16 = vector.broadcast %cst : f32 to vector<64x16xf32>
    %17 = arith.cmpf ogt, %15, %16 : vector<64x16xf32>
    %cst_13 = arith.constant 2.000000e-01 : f32
    %18 = vector.broadcast %cst_13 : f32 to vector<64x16xf32>
    %19 = arith.mulf %18, %15 : vector<64x16xf32>
    %20 = arith.select %17, %15, %19 : vector<64x16xi1>, vector<64x16xf32>
    %cst_14 = arith.constant dense<0.000000e+00> : vector<64x16xf32>
    %21 = tpu.matmul %20, %3, %cst_14 {dimension_numbers = #tpu.dot_dimension_numbers<[1], [0], [0], [1], [0, 0, 1, 1], [], []>} : vector<64x16xf32>, vector<16x16xf32>, vector<64x16xf32> -> vector<64x16xf32>
    %22 = vector.broadcast %4 : vector<1x16xf32> to vector<64x16xf32>
    %23 = arith.addf %21, %22 : vector<64x16xf32>
    %cst_15 = arith.constant 0.000000e+00 : f32
    %24 = vector.broadcast %cst_15 : f32 to vector<64x16xf32>
    %25 = arith.cmpf ogt, %23, %24 : vector<64x16xf32>
    %cst_16 = arith.constant 2.000000e-01 : f32
    %26 = vector.broadcast %cst_16 : f32 to vector<64x16xf32>
    %27 = arith.mulf %26, %23 : vector<64x16xf32>
    %28 = arith.select %25, %23, %27 : vector<64x16xi1>, vector<64x16xf32>
    %c0_17 = arith.constant 0 : index
    %c1 = arith.constant 1 : index
    %29 = vector.load %arg1[%c0_17, %c1] : memref<64x4xf32, #tpu.memory_space<vmem>>, vector<64x1xf32>
    %30 = vector.broadcast %29 : vector<64x1xf32> to vector<64x16xf32>
    %31 = vector.broadcast %0 : vector<1x16xf32> to vector<64x16xf32>
    %32 = arith.mulf %30, %31 : vector<64x16xf32>
    %c0_18 = arith.constant 0 : index
    %c1_19 = arith.constant 1 : index
    %33 = vector.load %arg2[%c0_18, %c1_19] : memref<64x4xf32, #tpu.memory_space<vmem>>, vector<64x1xf32>
    %34 = vector.broadcast %33 : vector<64x1xf32> to vector<64x16xf32>
    %35 = vector.broadcast %1 : vector<1x16xf32> to vector<64x16xf32>
    %36 = arith.mulf %34, %35 : vector<64x16xf32>
    %37 = arith.addf %32, %36 : vector<64x16xf32>
    %38 = vector.broadcast %2 : vector<1x16xf32> to vector<64x16xf32>
    %39 = arith.addf %37, %38 : vector<64x16xf32>
    %cst_20 = arith.constant 0.000000e+00 : f32
    %40 = vector.broadcast %cst_20 : f32 to vector<64x16xf32>
    %41 = arith.cmpf ogt, %39, %40 : vector<64x16xf32>
    %cst_21 = arith.constant 2.000000e-01 : f32
    %42 = vector.broadcast %cst_21 : f32 to vector<64x16xf32>
    %43 = arith.mulf %42, %39 : vector<64x16xf32>
    %44 = arith.select %41, %39, %43 : vector<64x16xi1>, vector<64x16xf32>
    %cst_22 = arith.constant dense<0.000000e+00> : vector<64x16xf32>
    %45 = tpu.matmul %44, %3, %cst_22 {dimension_numbers = #tpu.dot_dimension_numbers<[1], [0], [0], [1], [0, 0, 1, 1], [], []>} : vector<64x16xf32>, vector<16x16xf32>, vector<64x16xf32> -> vector<64x16xf32>
    %46 = vector.broadcast %4 : vector<1x16xf32> to vector<64x16xf32>
    %47 = arith.addf %45, %46 : vector<64x16xf32>
    %cst_23 = arith.constant 0.000000e+00 : f32
    %48 = vector.broadcast %cst_23 : f32 to vector<64x16xf32>
    %49 = arith.cmpf ogt, %47, %48 : vector<64x16xf32>
    %cst_24 = arith.constant 2.000000e-01 : f32
    %50 = vector.broadcast %cst_24 : f32 to vector<64x16xf32>
    %51 = arith.mulf %50, %47 : vector<64x16xf32>
    %52 = arith.select %49, %47, %51 : vector<64x16xi1>, vector<64x16xf32>
    %c0_25 = arith.constant 0 : index
    %c2 = arith.constant 2 : index
    %53 = vector.load %arg1[%c0_25, %c2] : memref<64x4xf32, #tpu.memory_space<vmem>>, vector<64x1xf32>
    %54 = vector.broadcast %53 : vector<64x1xf32> to vector<64x16xf32>
    %55 = vector.broadcast %0 : vector<1x16xf32> to vector<64x16xf32>
    %56 = arith.mulf %54, %55 : vector<64x16xf32>
    %c0_26 = arith.constant 0 : index
    %c2_27 = arith.constant 2 : index
    %57 = vector.load %arg2[%c0_26, %c2_27] : memref<64x4xf32, #tpu.memory_space<vmem>>, vector<64x1xf32>
    %58 = vector.broadcast %57 : vector<64x1xf32> to vector<64x16xf32>
    %59 = vector.broadcast %1 : vector<1x16xf32> to vector<64x16xf32>
    %60 = arith.mulf %58, %59 : vector<64x16xf32>
    %61 = arith.addf %56, %60 : vector<64x16xf32>
    %62 = vector.broadcast %2 : vector<1x16xf32> to vector<64x16xf32>
    %63 = arith.addf %61, %62 : vector<64x16xf32>
    %cst_28 = arith.constant 0.000000e+00 : f32
    %64 = vector.broadcast %cst_28 : f32 to vector<64x16xf32>
    %65 = arith.cmpf ogt, %63, %64 : vector<64x16xf32>
    %cst_29 = arith.constant 2.000000e-01 : f32
    %66 = vector.broadcast %cst_29 : f32 to vector<64x16xf32>
    %67 = arith.mulf %66, %63 : vector<64x16xf32>
    %68 = arith.select %65, %63, %67 : vector<64x16xi1>, vector<64x16xf32>
    %cst_30 = arith.constant dense<0.000000e+00> : vector<64x16xf32>
    %69 = tpu.matmul %68, %3, %cst_30 {dimension_numbers = #tpu.dot_dimension_numbers<[1], [0], [0], [1], [0, 0, 1, 1], [], []>} : vector<64x16xf32>, vector<16x16xf32>, vector<64x16xf32> -> vector<64x16xf32>
    %70 = vector.broadcast %4 : vector<1x16xf32> to vector<64x16xf32>
    %71 = arith.addf %69, %70 : vector<64x16xf32>
    %cst_31 = arith.constant 0.000000e+00 : f32
    %72 = vector.broadcast %cst_31 : f32 to vector<64x16xf32>
    %73 = arith.cmpf ogt, %71, %72 : vector<64x16xf32>
    %cst_32 = arith.constant 2.000000e-01 : f32
    %74 = vector.broadcast %cst_32 : f32 to vector<64x16xf32>
    %75 = arith.mulf %74, %71 : vector<64x16xf32>
    %76 = arith.select %73, %71, %75 : vector<64x16xi1>, vector<64x16xf32>
    %c0_33 = arith.constant 0 : index
    %c3 = arith.constant 3 : index
    %77 = vector.load %arg1[%c0_33, %c3] : memref<64x4xf32, #tpu.memory_space<vmem>>, vector<64x1xf32>
    %78 = vector.broadcast %77 : vector<64x1xf32> to vector<64x16xf32>
    %79 = vector.broadcast %0 : vector<1x16xf32> to vector<64x16xf32>
    %80 = arith.mulf %78, %79 : vector<64x16xf32>
    %c0_34 = arith.constant 0 : index
    %c3_35 = arith.constant 3 : index
    %81 = vector.load %arg2[%c0_34, %c3_35] : memref<64x4xf32, #tpu.memory_space<vmem>>, vector<64x1xf32>
    %82 = vector.broadcast %81 : vector<64x1xf32> to vector<64x16xf32>
    %83 = vector.broadcast %1 : vector<1x16xf32> to vector<64x16xf32>
    %84 = arith.mulf %82, %83 : vector<64x16xf32>
    %85 = arith.addf %80, %84 : vector<64x16xf32>
    %86 = vector.broadcast %2 : vector<1x16xf32> to vector<64x16xf32>
    %87 = arith.addf %85, %86 : vector<64x16xf32>
    %cst_36 = arith.constant 0.000000e+00 : f32
    %88 = vector.broadcast %cst_36 : f32 to vector<64x16xf32>
    %89 = arith.cmpf ogt, %87, %88 : vector<64x16xf32>
    %cst_37 = arith.constant 2.000000e-01 : f32
    %90 = vector.broadcast %cst_37 : f32 to vector<64x16xf32>
    %91 = arith.mulf %90, %87 : vector<64x16xf32>
    %92 = arith.select %89, %87, %91 : vector<64x16xi1>, vector<64x16xf32>
    %cst_38 = arith.constant dense<0.000000e+00> : vector<64x16xf32>
    %93 = tpu.matmul %92, %3, %cst_38 {dimension_numbers = #tpu.dot_dimension_numbers<[1], [0], [0], [1], [0, 0, 1, 1], [], []>} : vector<64x16xf32>, vector<16x16xf32>, vector<64x16xf32> -> vector<64x16xf32>
    %94 = vector.broadcast %4 : vector<1x16xf32> to vector<64x16xf32>
    %95 = arith.addf %93, %94 : vector<64x16xf32>
    %cst_39 = arith.constant 0.000000e+00 : f32
    %96 = vector.broadcast %cst_39 : f32 to vector<64x16xf32>
    %97 = arith.cmpf ogt, %95, %96 : vector<64x16xf32>
    %cst_40 = arith.constant 2.000000e-01 : f32
    %98 = vector.broadcast %cst_40 : f32 to vector<64x16xf32>
    %99 = arith.mulf %98, %95 : vector<64x16xf32>
    %100 = arith.select %97, %95, %99 : vector<64x16xi1>, vector<64x16xf32>
    %c0_41 = arith.constant 0 : index
    %c0_42 = arith.constant 0 : index
    %101 = vector.load %arg8[%c0_41, %c0_42] : memref<64x16xf32, #tpu.memory_space<vmem>>, vector<1x16xf32>
    %102 = vector.broadcast %101 : vector<1x16xf32> to vector<64x16xf32>
    %103 = arith.mulf %28, %102 : vector<64x16xf32>
    %c1_43 = arith.constant 1 : index
    %c0_44 = arith.constant 0 : index
    %104 = vector.load %arg8[%c1_43, %c0_44] : memref<64x16xf32, #tpu.memory_space<vmem>>, vector<1x16xf32>
    %105 = vector.broadcast %104 : vector<1x16xf32> to vector<64x16xf32>
    %106 = arith.mulf %52, %105 : vector<64x16xf32>
    %107 = arith.addf %103, %106 : vector<64x16xf32>
    %c2_45 = arith.constant 2 : index
    %c0_46 = arith.constant 0 : index
    %108 = vector.load %arg8[%c2_45, %c0_46] : memref<64x16xf32, #tpu.memory_space<vmem>>, vector<1x16xf32>
    %109 = vector.broadcast %108 : vector<1x16xf32> to vector<64x16xf32>
    %110 = arith.mulf %76, %109 : vector<64x16xf32>
    %111 = arith.addf %107, %110 : vector<64x16xf32>
    %c3_47 = arith.constant 3 : index
    %c0_48 = arith.constant 0 : index
    %112 = vector.load %arg8[%c3_47, %c0_48] : memref<64x16xf32, #tpu.memory_space<vmem>>, vector<1x16xf32>
    %113 = vector.broadcast %112 : vector<1x16xf32> to vector<64x16xf32>
    %114 = arith.mulf %100, %113 : vector<64x16xf32>
    %115 = arith.addf %111, %114 : vector<64x16xf32>
    %c0_49 = arith.constant 0 : index
    %c0_50 = arith.constant 0 : index
    %116 = vector.load %arg9[%c0_49, %c0_50] : memref<16x16xf32, #tpu.memory_space<vmem>>, vector<1x16xf32>
    %117 = vector.broadcast %116 : vector<1x16xf32> to vector<64x16xf32>
    %118 = arith.addf %115, %117 : vector<64x16xf32>
    %cst_51 = arith.constant 0.000000e+00 : f32
    %119 = vector.broadcast %cst_51 : f32 to vector<64x16xf32>
    %120 = arith.cmpf ogt, %118, %119 : vector<64x16xf32>
    %cst_52 = arith.constant 2.000000e-01 : f32
    %121 = vector.broadcast %cst_52 : f32 to vector<64x16xf32>
    %122 = arith.mulf %121, %118 : vector<64x16xf32>
    %123 = arith.select %120, %118, %122 : vector<64x16xi1>, vector<64x16xf32>
    %c0_53 = arith.constant 0 : index
    %c0_54 = arith.constant 0 : index
    %124 = vector.load %arg10[%c0_53, %c0_54] : memref<16x16xf32, #tpu.memory_space<vmem>>, vector<1x16xf32>
    %125 = vector.broadcast %124 : vector<1x16xf32> to vector<64x16xf32>
    %126 = arith.mulf %123, %125 : vector<64x16xf32>
    %c4 = arith.constant 4 : index
    %c0_55 = arith.constant 0 : index
    %127 = vector.load %arg8[%c4, %c0_55] : memref<64x16xf32, #tpu.memory_space<vmem>>, vector<1x16xf32>
    %128 = vector.broadcast %127 : vector<1x16xf32> to vector<64x16xf32>
    %129 = arith.mulf %28, %128 : vector<64x16xf32>
    %c5 = arith.constant 5 : index
    %c0_56 = arith.constant 0 : index
    %130 = vector.load %arg8[%c5, %c0_56] : memref<64x16xf32, #tpu.memory_space<vmem>>, vector<1x16xf32>
    %131 = vector.broadcast %130 : vector<1x16xf32> to vector<64x16xf32>
    %132 = arith.mulf %52, %131 : vector<64x16xf32>
    %133 = arith.addf %129, %132 : vector<64x16xf32>
    %c6 = arith.constant 6 : index
    %c0_57 = arith.constant 0 : index
    %134 = vector.load %arg8[%c6, %c0_57] : memref<64x16xf32, #tpu.memory_space<vmem>>, vector<1x16xf32>
    %135 = vector.broadcast %134 : vector<1x16xf32> to vector<64x16xf32>
    %136 = arith.mulf %76, %135 : vector<64x16xf32>
    %137 = arith.addf %133, %136 : vector<64x16xf32>
    %c7 = arith.constant 7 : index
    %c0_58 = arith.constant 0 : index
    %138 = vector.load %arg8[%c7, %c0_58] : memref<64x16xf32, #tpu.memory_space<vmem>>, vector<1x16xf32>
    %139 = vector.broadcast %138 : vector<1x16xf32> to vector<64x16xf32>
    %140 = arith.mulf %100, %139 : vector<64x16xf32>
    %141 = arith.addf %137, %140 : vector<64x16xf32>
    %c1_59 = arith.constant 1 : index
    %c0_60 = arith.constant 0 : index
    %142 = vector.load %arg9[%c1_59, %c0_60] : memref<16x16xf32, #tpu.memory_space<vmem>>, vector<1x16xf32>
    %143 = vector.broadcast %142 : vector<1x16xf32> to vector<64x16xf32>
    %144 = arith.addf %141, %143 : vector<64x16xf32>
    %cst_61 = arith.constant 0.000000e+00 : f32
    %145 = vector.broadcast %cst_61 : f32 to vector<64x16xf32>
    %146 = arith.cmpf ogt, %144, %145 : vector<64x16xf32>
    %cst_62 = arith.constant 2.000000e-01 : f32
    %147 = vector.broadcast %cst_62 : f32 to vector<64x16xf32>
    %148 = arith.mulf %147, %144 : vector<64x16xf32>
    %149 = arith.select %146, %144, %148 : vector<64x16xi1>, vector<64x16xf32>
    %c1_63 = arith.constant 1 : index
    %c0_64 = arith.constant 0 : index
    %150 = vector.load %arg10[%c1_63, %c0_64] : memref<16x16xf32, #tpu.memory_space<vmem>>, vector<1x16xf32>
    %151 = vector.broadcast %150 : vector<1x16xf32> to vector<64x16xf32>
    %152 = arith.mulf %149, %151 : vector<64x16xf32>
    %153 = arith.addf %126, %152 : vector<64x16xf32>
    %c8 = arith.constant 8 : index
    %c0_65 = arith.constant 0 : index
    %154 = vector.load %arg8[%c8, %c0_65] : memref<64x16xf32, #tpu.memory_space<vmem>>, vector<1x16xf32>
    %155 = vector.broadcast %154 : vector<1x16xf32> to vector<64x16xf32>
    %156 = arith.mulf %28, %155 : vector<64x16xf32>
    %c9 = arith.constant 9 : index
    %c0_66 = arith.constant 0 : index
    %157 = vector.load %arg8[%c9, %c0_66] : memref<64x16xf32, #tpu.memory_space<vmem>>, vector<1x16xf32>
    %158 = vector.broadcast %157 : vector<1x16xf32> to vector<64x16xf32>
    %159 = arith.mulf %52, %158 : vector<64x16xf32>
    %160 = arith.addf %156, %159 : vector<64x16xf32>
    %c10 = arith.constant 10 : index
    %c0_67 = arith.constant 0 : index
    %161 = vector.load %arg8[%c10, %c0_67] : memref<64x16xf32, #tpu.memory_space<vmem>>, vector<1x16xf32>
    %162 = vector.broadcast %161 : vector<1x16xf32> to vector<64x16xf32>
    %163 = arith.mulf %76, %162 : vector<64x16xf32>
    %164 = arith.addf %160, %163 : vector<64x16xf32>
    %c11 = arith.constant 11 : index
    %c0_68 = arith.constant 0 : index
    %165 = vector.load %arg8[%c11, %c0_68] : memref<64x16xf32, #tpu.memory_space<vmem>>, vector<1x16xf32>
    %166 = vector.broadcast %165 : vector<1x16xf32> to vector<64x16xf32>
    %167 = arith.mulf %100, %166 : vector<64x16xf32>
    %168 = arith.addf %164, %167 : vector<64x16xf32>
    %c2_69 = arith.constant 2 : index
    %c0_70 = arith.constant 0 : index
    %169 = vector.load %arg9[%c2_69, %c0_70] : memref<16x16xf32, #tpu.memory_space<vmem>>, vector<1x16xf32>
    %170 = vector.broadcast %169 : vector<1x16xf32> to vector<64x16xf32>
    %171 = arith.addf %168, %170 : vector<64x16xf32>
    %cst_71 = arith.constant 0.000000e+00 : f32
    %172 = vector.broadcast %cst_71 : f32 to vector<64x16xf32>
    %173 = arith.cmpf ogt, %171, %172 : vector<64x16xf32>
    %cst_72 = arith.constant 2.000000e-01 : f32
    %174 = vector.broadcast %cst_72 : f32 to vector<64x16xf32>
    %175 = arith.mulf %174, %171 : vector<64x16xf32>
    %176 = arith.select %173, %171, %175 : vector<64x16xi1>, vector<64x16xf32>
    %c2_73 = arith.constant 2 : index
    %c0_74 = arith.constant 0 : index
    %177 = vector.load %arg10[%c2_73, %c0_74] : memref<16x16xf32, #tpu.memory_space<vmem>>, vector<1x16xf32>
    %178 = vector.broadcast %177 : vector<1x16xf32> to vector<64x16xf32>
    %179 = arith.mulf %176, %178 : vector<64x16xf32>
    %180 = arith.addf %153, %179 : vector<64x16xf32>
    %c12 = arith.constant 12 : index
    %c0_75 = arith.constant 0 : index
    %181 = vector.load %arg8[%c12, %c0_75] : memref<64x16xf32, #tpu.memory_space<vmem>>, vector<1x16xf32>
    %182 = vector.broadcast %181 : vector<1x16xf32> to vector<64x16xf32>
    %183 = arith.mulf %28, %182 : vector<64x16xf32>
    %c13 = arith.constant 13 : index
    %c0_76 = arith.constant 0 : index
    %184 = vector.load %arg8[%c13, %c0_76] : memref<64x16xf32, #tpu.memory_space<vmem>>, vector<1x16xf32>
    %185 = vector.broadcast %184 : vector<1x16xf32> to vector<64x16xf32>
    %186 = arith.mulf %52, %185 : vector<64x16xf32>
    %187 = arith.addf %183, %186 : vector<64x16xf32>
    %c14 = arith.constant 14 : index
    %c0_77 = arith.constant 0 : index
    %188 = vector.load %arg8[%c14, %c0_77] : memref<64x16xf32, #tpu.memory_space<vmem>>, vector<1x16xf32>
    %189 = vector.broadcast %188 : vector<1x16xf32> to vector<64x16xf32>
    %190 = arith.mulf %76, %189 : vector<64x16xf32>
    %191 = arith.addf %187, %190 : vector<64x16xf32>
    %c15 = arith.constant 15 : index
    %c0_78 = arith.constant 0 : index
    %192 = vector.load %arg8[%c15, %c0_78] : memref<64x16xf32, #tpu.memory_space<vmem>>, vector<1x16xf32>
    %193 = vector.broadcast %192 : vector<1x16xf32> to vector<64x16xf32>
    %194 = arith.mulf %100, %193 : vector<64x16xf32>
    %195 = arith.addf %191, %194 : vector<64x16xf32>
    %c3_79 = arith.constant 3 : index
    %c0_80 = arith.constant 0 : index
    %196 = vector.load %arg9[%c3_79, %c0_80] : memref<16x16xf32, #tpu.memory_space<vmem>>, vector<1x16xf32>
    %197 = vector.broadcast %196 : vector<1x16xf32> to vector<64x16xf32>
    %198 = arith.addf %195, %197 : vector<64x16xf32>
    %cst_81 = arith.constant 0.000000e+00 : f32
    %199 = vector.broadcast %cst_81 : f32 to vector<64x16xf32>
    %200 = arith.cmpf ogt, %198, %199 : vector<64x16xf32>
    %cst_82 = arith.constant 2.000000e-01 : f32
    %201 = vector.broadcast %cst_82 : f32 to vector<64x16xf32>
    %202 = arith.mulf %201, %198 : vector<64x16xf32>
    %203 = arith.select %200, %198, %202 : vector<64x16xi1>, vector<64x16xf32>
    %c3_83 = arith.constant 3 : index
    %c0_84 = arith.constant 0 : index
    %204 = vector.load %arg10[%c3_83, %c0_84] : memref<16x16xf32, #tpu.memory_space<vmem>>, vector<1x16xf32>
    %205 = vector.broadcast %204 : vector<1x16xf32> to vector<64x16xf32>
    %206 = arith.mulf %203, %205 : vector<64x16xf32>
    %207 = arith.addf %180, %206 : vector<64x16xf32>
    %c16 = arith.constant 16 : index
    %c0_85 = arith.constant 0 : index
    %208 = vector.load %arg8[%c16, %c0_85] : memref<64x16xf32, #tpu.memory_space<vmem>>, vector<1x16xf32>
    %209 = vector.broadcast %208 : vector<1x16xf32> to vector<64x16xf32>
    %210 = arith.mulf %28, %209 : vector<64x16xf32>
    %c17 = arith.constant 17 : index
    %c0_86 = arith.constant 0 : index
    %211 = vector.load %arg8[%c17, %c0_86] : memref<64x16xf32, #tpu.memory_space<vmem>>, vector<1x16xf32>
    %212 = vector.broadcast %211 : vector<1x16xf32> to vector<64x16xf32>
    %213 = arith.mulf %52, %212 : vector<64x16xf32>
    %214 = arith.addf %210, %213 : vector<64x16xf32>
    %c18 = arith.constant 18 : index
    %c0_87 = arith.constant 0 : index
    %215 = vector.load %arg8[%c18, %c0_87] : memref<64x16xf32, #tpu.memory_space<vmem>>, vector<1x16xf32>
    %216 = vector.broadcast %215 : vector<1x16xf32> to vector<64x16xf32>
    %217 = arith.mulf %76, %216 : vector<64x16xf32>
    %218 = arith.addf %214, %217 : vector<64x16xf32>
    %c19 = arith.constant 19 : index
    %c0_88 = arith.constant 0 : index
    %219 = vector.load %arg8[%c19, %c0_88] : memref<64x16xf32, #tpu.memory_space<vmem>>, vector<1x16xf32>
    %220 = vector.broadcast %219 : vector<1x16xf32> to vector<64x16xf32>
    %221 = arith.mulf %100, %220 : vector<64x16xf32>
    %222 = arith.addf %218, %221 : vector<64x16xf32>
    %c4_89 = arith.constant 4 : index
    %c0_90 = arith.constant 0 : index
    %223 = vector.load %arg9[%c4_89, %c0_90] : memref<16x16xf32, #tpu.memory_space<vmem>>, vector<1x16xf32>
    %224 = vector.broadcast %223 : vector<1x16xf32> to vector<64x16xf32>
    %225 = arith.addf %222, %224 : vector<64x16xf32>
    %cst_91 = arith.constant 0.000000e+00 : f32
    %226 = vector.broadcast %cst_91 : f32 to vector<64x16xf32>
    %227 = arith.cmpf ogt, %225, %226 : vector<64x16xf32>
    %cst_92 = arith.constant 2.000000e-01 : f32
    %228 = vector.broadcast %cst_92 : f32 to vector<64x16xf32>
    %229 = arith.mulf %228, %225 : vector<64x16xf32>
    %230 = arith.select %227, %225, %229 : vector<64x16xi1>, vector<64x16xf32>
    %c4_93 = arith.constant 4 : index
    %c0_94 = arith.constant 0 : index
    %231 = vector.load %arg10[%c4_93, %c0_94] : memref<16x16xf32, #tpu.memory_space<vmem>>, vector<1x16xf32>
    %232 = vector.broadcast %231 : vector<1x16xf32> to vector<64x16xf32>
    %233 = arith.mulf %230, %232 : vector<64x16xf32>
    %234 = arith.addf %207, %233 : vector<64x16xf32>
    %c20 = arith.constant 20 : index
    %c0_95 = arith.constant 0 : index
    %235 = vector.load %arg8[%c20, %c0_95] : memref<64x16xf32, #tpu.memory_space<vmem>>, vector<1x16xf32>
    %236 = vector.broadcast %235 : vector<1x16xf32> to vector<64x16xf32>
    %237 = arith.mulf %28, %236 : vector<64x16xf32>
    %c21 = arith.constant 21 : index
    %c0_96 = arith.constant 0 : index
    %238 = vector.load %arg8[%c21, %c0_96] : memref<64x16xf32, #tpu.memory_space<vmem>>, vector<1x16xf32>
    %239 = vector.broadcast %238 : vector<1x16xf32> to vector<64x16xf32>
    %240 = arith.mulf %52, %239 : vector<64x16xf32>
    %241 = arith.addf %237, %240 : vector<64x16xf32>
    %c22 = arith.constant 22 : index
    %c0_97 = arith.constant 0 : index
    %242 = vector.load %arg8[%c22, %c0_97] : memref<64x16xf32, #tpu.memory_space<vmem>>, vector<1x16xf32>
    %243 = vector.broadcast %242 : vector<1x16xf32> to vector<64x16xf32>
    %244 = arith.mulf %76, %243 : vector<64x16xf32>
    %245 = arith.addf %241, %244 : vector<64x16xf32>
    %c23 = arith.constant 23 : index
    %c0_98 = arith.constant 0 : index
    %246 = vector.load %arg8[%c23, %c0_98] : memref<64x16xf32, #tpu.memory_space<vmem>>, vector<1x16xf32>
    %247 = vector.broadcast %246 : vector<1x16xf32> to vector<64x16xf32>
    %248 = arith.mulf %100, %247 : vector<64x16xf32>
    %249 = arith.addf %245, %248 : vector<64x16xf32>
    %c5_99 = arith.constant 5 : index
    %c0_100 = arith.constant 0 : index
    %250 = vector.load %arg9[%c5_99, %c0_100] : memref<16x16xf32, #tpu.memory_space<vmem>>, vector<1x16xf32>
    %251 = vector.broadcast %250 : vector<1x16xf32> to vector<64x16xf32>
    %252 = arith.addf %249, %251 : vector<64x16xf32>
    %cst_101 = arith.constant 0.000000e+00 : f32
    %253 = vector.broadcast %cst_101 : f32 to vector<64x16xf32>
    %254 = arith.cmpf ogt, %252, %253 : vector<64x16xf32>
    %cst_102 = arith.constant 2.000000e-01 : f32
    %255 = vector.broadcast %cst_102 : f32 to vector<64x16xf32>
    %256 = arith.mulf %255, %252 : vector<64x16xf32>
    %257 = arith.select %254, %252, %256 : vector<64x16xi1>, vector<64x16xf32>
    %c5_103 = arith.constant 5 : index
    %c0_104 = arith.constant 0 : index
    %258 = vector.load %arg10[%c5_103, %c0_104] : memref<16x16xf32, #tpu.memory_space<vmem>>, vector<1x16xf32>
    %259 = vector.broadcast %258 : vector<1x16xf32> to vector<64x16xf32>
    %260 = arith.mulf %257, %259 : vector<64x16xf32>
    %261 = arith.addf %234, %260 : vector<64x16xf32>
    %c24 = arith.constant 24 : index
    %c0_105 = arith.constant 0 : index
    %262 = vector.load %arg8[%c24, %c0_105] : memref<64x16xf32, #tpu.memory_space<vmem>>, vector<1x16xf32>
    %263 = vector.broadcast %262 : vector<1x16xf32> to vector<64x16xf32>
    %264 = arith.mulf %28, %263 : vector<64x16xf32>
    %c25 = arith.constant 25 : index
    %c0_106 = arith.constant 0 : index
    %265 = vector.load %arg8[%c25, %c0_106] : memref<64x16xf32, #tpu.memory_space<vmem>>, vector<1x16xf32>
    %266 = vector.broadcast %265 : vector<1x16xf32> to vector<64x16xf32>
    %267 = arith.mulf %52, %266 : vector<64x16xf32>
    %268 = arith.addf %264, %267 : vector<64x16xf32>
    %c26 = arith.constant 26 : index
    %c0_107 = arith.constant 0 : index
    %269 = vector.load %arg8[%c26, %c0_107] : memref<64x16xf32, #tpu.memory_space<vmem>>, vector<1x16xf32>
    %270 = vector.broadcast %269 : vector<1x16xf32> to vector<64x16xf32>
    %271 = arith.mulf %76, %270 : vector<64x16xf32>
    %272 = arith.addf %268, %271 : vector<64x16xf32>
    %c27 = arith.constant 27 : index
    %c0_108 = arith.constant 0 : index
    %273 = vector.load %arg8[%c27, %c0_108] : memref<64x16xf32, #tpu.memory_space<vmem>>, vector<1x16xf32>
    %274 = vector.broadcast %273 : vector<1x16xf32> to vector<64x16xf32>
    %275 = arith.mulf %100, %274 : vector<64x16xf32>
    %276 = arith.addf %272, %275 : vector<64x16xf32>
    %c6_109 = arith.constant 6 : index
    %c0_110 = arith.constant 0 : index
    %277 = vector.load %arg9[%c6_109, %c0_110] : memref<16x16xf32, #tpu.memory_space<vmem>>, vector<1x16xf32>
    %278 = vector.broadcast %277 : vector<1x16xf32> to vector<64x16xf32>
    %279 = arith.addf %276, %278 : vector<64x16xf32>
    %cst_111 = arith.constant 0.000000e+00 : f32
    %280 = vector.broadcast %cst_111 : f32 to vector<64x16xf32>
    %281 = arith.cmpf ogt, %279, %280 : vector<64x16xf32>
    %cst_112 = arith.constant 2.000000e-01 : f32
    %282 = vector.broadcast %cst_112 : f32 to vector<64x16xf32>
    %283 = arith.mulf %282, %279 : vector<64x16xf32>
    %284 = arith.select %281, %279, %283 : vector<64x16xi1>, vector<64x16xf32>
    %c6_113 = arith.constant 6 : index
    %c0_114 = arith.constant 0 : index
    %285 = vector.load %arg10[%c6_113, %c0_114] : memref<16x16xf32, #tpu.memory_space<vmem>>, vector<1x16xf32>
    %286 = vector.broadcast %285 : vector<1x16xf32> to vector<64x16xf32>
    %287 = arith.mulf %284, %286 : vector<64x16xf32>
    %288 = arith.addf %261, %287 : vector<64x16xf32>
    %c28 = arith.constant 28 : index
    %c0_115 = arith.constant 0 : index
    %289 = vector.load %arg8[%c28, %c0_115] : memref<64x16xf32, #tpu.memory_space<vmem>>, vector<1x16xf32>
    %290 = vector.broadcast %289 : vector<1x16xf32> to vector<64x16xf32>
    %291 = arith.mulf %28, %290 : vector<64x16xf32>
    %c29 = arith.constant 29 : index
    %c0_116 = arith.constant 0 : index
    %292 = vector.load %arg8[%c29, %c0_116] : memref<64x16xf32, #tpu.memory_space<vmem>>, vector<1x16xf32>
    %293 = vector.broadcast %292 : vector<1x16xf32> to vector<64x16xf32>
    %294 = arith.mulf %52, %293 : vector<64x16xf32>
    %295 = arith.addf %291, %294 : vector<64x16xf32>
    %c30 = arith.constant 30 : index
    %c0_117 = arith.constant 0 : index
    %296 = vector.load %arg8[%c30, %c0_117] : memref<64x16xf32, #tpu.memory_space<vmem>>, vector<1x16xf32>
    %297 = vector.broadcast %296 : vector<1x16xf32> to vector<64x16xf32>
    %298 = arith.mulf %76, %297 : vector<64x16xf32>
    %299 = arith.addf %295, %298 : vector<64x16xf32>
    %c31 = arith.constant 31 : index
    %c0_118 = arith.constant 0 : index
    %300 = vector.load %arg8[%c31, %c0_118] : memref<64x16xf32, #tpu.memory_space<vmem>>, vector<1x16xf32>
    %301 = vector.broadcast %300 : vector<1x16xf32> to vector<64x16xf32>
    %302 = arith.mulf %100, %301 : vector<64x16xf32>
    %303 = arith.addf %299, %302 : vector<64x16xf32>
    %c7_119 = arith.constant 7 : index
    %c0_120 = arith.constant 0 : index
    %304 = vector.load %arg9[%c7_119, %c0_120] : memref<16x16xf32, #tpu.memory_space<vmem>>, vector<1x16xf32>
    %305 = vector.broadcast %304 : vector<1x16xf32> to vector<64x16xf32>
    %306 = arith.addf %303, %305 : vector<64x16xf32>
    %cst_121 = arith.constant 0.000000e+00 : f32
    %307 = vector.broadcast %cst_121 : f32 to vector<64x16xf32>
    %308 = arith.cmpf ogt, %306, %307 : vector<64x16xf32>
    %cst_122 = arith.constant 2.000000e-01 : f32
    %309 = vector.broadcast %cst_122 : f32 to vector<64x16xf32>
    %310 = arith.mulf %309, %306 : vector<64x16xf32>
    %311 = arith.select %308, %306, %310 : vector<64x16xi1>, vector<64x16xf32>
    %c7_123 = arith.constant 7 : index
    %c0_124 = arith.constant 0 : index
    %312 = vector.load %arg10[%c7_123, %c0_124] : memref<16x16xf32, #tpu.memory_space<vmem>>, vector<1x16xf32>
    %313 = vector.broadcast %312 : vector<1x16xf32> to vector<64x16xf32>
    %314 = arith.mulf %311, %313 : vector<64x16xf32>
    %315 = arith.addf %288, %314 : vector<64x16xf32>
    %c32 = arith.constant 32 : index
    %c0_125 = arith.constant 0 : index
    %316 = vector.load %arg8[%c32, %c0_125] : memref<64x16xf32, #tpu.memory_space<vmem>>, vector<1x16xf32>
    %317 = vector.broadcast %316 : vector<1x16xf32> to vector<64x16xf32>
    %318 = arith.mulf %28, %317 : vector<64x16xf32>
    %c33 = arith.constant 33 : index
    %c0_126 = arith.constant 0 : index
    %319 = vector.load %arg8[%c33, %c0_126] : memref<64x16xf32, #tpu.memory_space<vmem>>, vector<1x16xf32>
    %320 = vector.broadcast %319 : vector<1x16xf32> to vector<64x16xf32>
    %321 = arith.mulf %52, %320 : vector<64x16xf32>
    %322 = arith.addf %318, %321 : vector<64x16xf32>
    %c34 = arith.constant 34 : index
    %c0_127 = arith.constant 0 : index
    %323 = vector.load %arg8[%c34, %c0_127] : memref<64x16xf32, #tpu.memory_space<vmem>>, vector<1x16xf32>
    %324 = vector.broadcast %323 : vector<1x16xf32> to vector<64x16xf32>
    %325 = arith.mulf %76, %324 : vector<64x16xf32>
    %326 = arith.addf %322, %325 : vector<64x16xf32>
    %c35 = arith.constant 35 : index
    %c0_128 = arith.constant 0 : index
    %327 = vector.load %arg8[%c35, %c0_128] : memref<64x16xf32, #tpu.memory_space<vmem>>, vector<1x16xf32>
    %328 = vector.broadcast %327 : vector<1x16xf32> to vector<64x16xf32>
    %329 = arith.mulf %100, %328 : vector<64x16xf32>
    %330 = arith.addf %326, %329 : vector<64x16xf32>
    %c8_129 = arith.constant 8 : index
    %c0_130 = arith.constant 0 : index
    %331 = vector.load %arg9[%c8_129, %c0_130] : memref<16x16xf32, #tpu.memory_space<vmem>>, vector<1x16xf32>
    %332 = vector.broadcast %331 : vector<1x16xf32> to vector<64x16xf32>
    %333 = arith.addf %330, %332 : vector<64x16xf32>
    %cst_131 = arith.constant 0.000000e+00 : f32
    %334 = vector.broadcast %cst_131 : f32 to vector<64x16xf32>
    %335 = arith.cmpf ogt, %333, %334 : vector<64x16xf32>
    %cst_132 = arith.constant 2.000000e-01 : f32
    %336 = vector.broadcast %cst_132 : f32 to vector<64x16xf32>
    %337 = arith.mulf %336, %333 : vector<64x16xf32>
    %338 = arith.select %335, %333, %337 : vector<64x16xi1>, vector<64x16xf32>
    %c8_133 = arith.constant 8 : index
    %c0_134 = arith.constant 0 : index
    %339 = vector.load %arg10[%c8_133, %c0_134] : memref<16x16xf32, #tpu.memory_space<vmem>>, vector<1x16xf32>
    %340 = vector.broadcast %339 : vector<1x16xf32> to vector<64x16xf32>
    %341 = arith.mulf %338, %340 : vector<64x16xf32>
    %342 = arith.addf %315, %341 : vector<64x16xf32>
    %c36 = arith.constant 36 : index
    %c0_135 = arith.constant 0 : index
    %343 = vector.load %arg8[%c36, %c0_135] : memref<64x16xf32, #tpu.memory_space<vmem>>, vector<1x16xf32>
    %344 = vector.broadcast %343 : vector<1x16xf32> to vector<64x16xf32>
    %345 = arith.mulf %28, %344 : vector<64x16xf32>
    %c37 = arith.constant 37 : index
    %c0_136 = arith.constant 0 : index
    %346 = vector.load %arg8[%c37, %c0_136] : memref<64x16xf32, #tpu.memory_space<vmem>>, vector<1x16xf32>
    %347 = vector.broadcast %346 : vector<1x16xf32> to vector<64x16xf32>
    %348 = arith.mulf %52, %347 : vector<64x16xf32>
    %349 = arith.addf %345, %348 : vector<64x16xf32>
    %c38 = arith.constant 38 : index
    %c0_137 = arith.constant 0 : index
    %350 = vector.load %arg8[%c38, %c0_137] : memref<64x16xf32, #tpu.memory_space<vmem>>, vector<1x16xf32>
    %351 = vector.broadcast %350 : vector<1x16xf32> to vector<64x16xf32>
    %352 = arith.mulf %76, %351 : vector<64x16xf32>
    %353 = arith.addf %349, %352 : vector<64x16xf32>
    %c39 = arith.constant 39 : index
    %c0_138 = arith.constant 0 : index
    %354 = vector.load %arg8[%c39, %c0_138] : memref<64x16xf32, #tpu.memory_space<vmem>>, vector<1x16xf32>
    %355 = vector.broadcast %354 : vector<1x16xf32> to vector<64x16xf32>
    %356 = arith.mulf %100, %355 : vector<64x16xf32>
    %357 = arith.addf %353, %356 : vector<64x16xf32>
    %c9_139 = arith.constant 9 : index
    %c0_140 = arith.constant 0 : index
    %358 = vector.load %arg9[%c9_139, %c0_140] : memref<16x16xf32, #tpu.memory_space<vmem>>, vector<1x16xf32>
    %359 = vector.broadcast %358 : vector<1x16xf32> to vector<64x16xf32>
    %360 = arith.addf %357, %359 : vector<64x16xf32>
    %cst_141 = arith.constant 0.000000e+00 : f32
    %361 = vector.broadcast %cst_141 : f32 to vector<64x16xf32>
    %362 = arith.cmpf ogt, %360, %361 : vector<64x16xf32>
    %cst_142 = arith.constant 2.000000e-01 : f32
    %363 = vector.broadcast %cst_142 : f32 to vector<64x16xf32>
    %364 = arith.mulf %363, %360 : vector<64x16xf32>
    %365 = arith.select %362, %360, %364 : vector<64x16xi1>, vector<64x16xf32>
    %c9_143 = arith.constant 9 : index
    %c0_144 = arith.constant 0 : index
    %366 = vector.load %arg10[%c9_143, %c0_144] : memref<16x16xf32, #tpu.memory_space<vmem>>, vector<1x16xf32>
    %367 = vector.broadcast %366 : vector<1x16xf32> to vector<64x16xf32>
    %368 = arith.mulf %365, %367 : vector<64x16xf32>
    %369 = arith.addf %342, %368 : vector<64x16xf32>
    %c40 = arith.constant 40 : index
    %c0_145 = arith.constant 0 : index
    %370 = vector.load %arg8[%c40, %c0_145] : memref<64x16xf32, #tpu.memory_space<vmem>>, vector<1x16xf32>
    %371 = vector.broadcast %370 : vector<1x16xf32> to vector<64x16xf32>
    %372 = arith.mulf %28, %371 : vector<64x16xf32>
    %c41 = arith.constant 41 : index
    %c0_146 = arith.constant 0 : index
    %373 = vector.load %arg8[%c41, %c0_146] : memref<64x16xf32, #tpu.memory_space<vmem>>, vector<1x16xf32>
    %374 = vector.broadcast %373 : vector<1x16xf32> to vector<64x16xf32>
    %375 = arith.mulf %52, %374 : vector<64x16xf32>
    %376 = arith.addf %372, %375 : vector<64x16xf32>
    %c42 = arith.constant 42 : index
    %c0_147 = arith.constant 0 : index
    %377 = vector.load %arg8[%c42, %c0_147] : memref<64x16xf32, #tpu.memory_space<vmem>>, vector<1x16xf32>
    %378 = vector.broadcast %377 : vector<1x16xf32> to vector<64x16xf32>
    %379 = arith.mulf %76, %378 : vector<64x16xf32>
    %380 = arith.addf %376, %379 : vector<64x16xf32>
    %c43 = arith.constant 43 : index
    %c0_148 = arith.constant 0 : index
    %381 = vector.load %arg8[%c43, %c0_148] : memref<64x16xf32, #tpu.memory_space<vmem>>, vector<1x16xf32>
    %382 = vector.broadcast %381 : vector<1x16xf32> to vector<64x16xf32>
    %383 = arith.mulf %100, %382 : vector<64x16xf32>
    %384 = arith.addf %380, %383 : vector<64x16xf32>
    %c10_149 = arith.constant 10 : index
    %c0_150 = arith.constant 0 : index
    %385 = vector.load %arg9[%c10_149, %c0_150] : memref<16x16xf32, #tpu.memory_space<vmem>>, vector<1x16xf32>
    %386 = vector.broadcast %385 : vector<1x16xf32> to vector<64x16xf32>
    %387 = arith.addf %384, %386 : vector<64x16xf32>
    %cst_151 = arith.constant 0.000000e+00 : f32
    %388 = vector.broadcast %cst_151 : f32 to vector<64x16xf32>
    %389 = arith.cmpf ogt, %387, %388 : vector<64x16xf32>
    %cst_152 = arith.constant 2.000000e-01 : f32
    %390 = vector.broadcast %cst_152 : f32 to vector<64x16xf32>
    %391 = arith.mulf %390, %387 : vector<64x16xf32>
    %392 = arith.select %389, %387, %391 : vector<64x16xi1>, vector<64x16xf32>
    %c10_153 = arith.constant 10 : index
    %c0_154 = arith.constant 0 : index
    %393 = vector.load %arg10[%c10_153, %c0_154] : memref<16x16xf32, #tpu.memory_space<vmem>>, vector<1x16xf32>
    %394 = vector.broadcast %393 : vector<1x16xf32> to vector<64x16xf32>
    %395 = arith.mulf %392, %394 : vector<64x16xf32>
    %396 = arith.addf %369, %395 : vector<64x16xf32>
    %c44 = arith.constant 44 : index
    %c0_155 = arith.constant 0 : index
    %397 = vector.load %arg8[%c44, %c0_155] : memref<64x16xf32, #tpu.memory_space<vmem>>, vector<1x16xf32>
    %398 = vector.broadcast %397 : vector<1x16xf32> to vector<64x16xf32>
    %399 = arith.mulf %28, %398 : vector<64x16xf32>
    %c45 = arith.constant 45 : index
    %c0_156 = arith.constant 0 : index
    %400 = vector.load %arg8[%c45, %c0_156] : memref<64x16xf32, #tpu.memory_space<vmem>>, vector<1x16xf32>
    %401 = vector.broadcast %400 : vector<1x16xf32> to vector<64x16xf32>
    %402 = arith.mulf %52, %401 : vector<64x16xf32>
    %403 = arith.addf %399, %402 : vector<64x16xf32>
    %c46 = arith.constant 46 : index
    %c0_157 = arith.constant 0 : index
    %404 = vector.load %arg8[%c46, %c0_157] : memref<64x16xf32, #tpu.memory_space<vmem>>, vector<1x16xf32>
    %405 = vector.broadcast %404 : vector<1x16xf32> to vector<64x16xf32>
    %406 = arith.mulf %76, %405 : vector<64x16xf32>
    %407 = arith.addf %403, %406 : vector<64x16xf32>
    %c47 = arith.constant 47 : index
    %c0_158 = arith.constant 0 : index
    %408 = vector.load %arg8[%c47, %c0_158] : memref<64x16xf32, #tpu.memory_space<vmem>>, vector<1x16xf32>
    %409 = vector.broadcast %408 : vector<1x16xf32> to vector<64x16xf32>
    %410 = arith.mulf %100, %409 : vector<64x16xf32>
    %411 = arith.addf %407, %410 : vector<64x16xf32>
    %c11_159 = arith.constant 11 : index
    %c0_160 = arith.constant 0 : index
    %412 = vector.load %arg9[%c11_159, %c0_160] : memref<16x16xf32, #tpu.memory_space<vmem>>, vector<1x16xf32>
    %413 = vector.broadcast %412 : vector<1x16xf32> to vector<64x16xf32>
    %414 = arith.addf %411, %413 : vector<64x16xf32>
    %cst_161 = arith.constant 0.000000e+00 : f32
    %415 = vector.broadcast %cst_161 : f32 to vector<64x16xf32>
    %416 = arith.cmpf ogt, %414, %415 : vector<64x16xf32>
    %cst_162 = arith.constant 2.000000e-01 : f32
    %417 = vector.broadcast %cst_162 : f32 to vector<64x16xf32>
    %418 = arith.mulf %417, %414 : vector<64x16xf32>
    %419 = arith.select %416, %414, %418 : vector<64x16xi1>, vector<64x16xf32>
    %c11_163 = arith.constant 11 : index
    %c0_164 = arith.constant 0 : index
    %420 = vector.load %arg10[%c11_163, %c0_164] : memref<16x16xf32, #tpu.memory_space<vmem>>, vector<1x16xf32>
    %421 = vector.broadcast %420 : vector<1x16xf32> to vector<64x16xf32>
    %422 = arith.mulf %419, %421 : vector<64x16xf32>
    %423 = arith.addf %396, %422 : vector<64x16xf32>
    %c48 = arith.constant 48 : index
    %c0_165 = arith.constant 0 : index
    %424 = vector.load %arg8[%c48, %c0_165] : memref<64x16xf32, #tpu.memory_space<vmem>>, vector<1x16xf32>
    %425 = vector.broadcast %424 : vector<1x16xf32> to vector<64x16xf32>
    %426 = arith.mulf %28, %425 : vector<64x16xf32>
    %c49 = arith.constant 49 : index
    %c0_166 = arith.constant 0 : index
    %427 = vector.load %arg8[%c49, %c0_166] : memref<64x16xf32, #tpu.memory_space<vmem>>, vector<1x16xf32>
    %428 = vector.broadcast %427 : vector<1x16xf32> to vector<64x16xf32>
    %429 = arith.mulf %52, %428 : vector<64x16xf32>
    %430 = arith.addf %426, %429 : vector<64x16xf32>
    %c50 = arith.constant 50 : index
    %c0_167 = arith.constant 0 : index
    %431 = vector.load %arg8[%c50, %c0_167] : memref<64x16xf32, #tpu.memory_space<vmem>>, vector<1x16xf32>
    %432 = vector.broadcast %431 : vector<1x16xf32> to vector<64x16xf32>
    %433 = arith.mulf %76, %432 : vector<64x16xf32>
    %434 = arith.addf %430, %433 : vector<64x16xf32>
    %c51 = arith.constant 51 : index
    %c0_168 = arith.constant 0 : index
    %435 = vector.load %arg8[%c51, %c0_168] : memref<64x16xf32, #tpu.memory_space<vmem>>, vector<1x16xf32>
    %436 = vector.broadcast %435 : vector<1x16xf32> to vector<64x16xf32>
    %437 = arith.mulf %100, %436 : vector<64x16xf32>
    %438 = arith.addf %434, %437 : vector<64x16xf32>
    %c12_169 = arith.constant 12 : index
    %c0_170 = arith.constant 0 : index
    %439 = vector.load %arg9[%c12_169, %c0_170] : memref<16x16xf32, #tpu.memory_space<vmem>>, vector<1x16xf32>
    %440 = vector.broadcast %439 : vector<1x16xf32> to vector<64x16xf32>
    %441 = arith.addf %438, %440 : vector<64x16xf32>
    %cst_171 = arith.constant 0.000000e+00 : f32
    %442 = vector.broadcast %cst_171 : f32 to vector<64x16xf32>
    %443 = arith.cmpf ogt, %441, %442 : vector<64x16xf32>
    %cst_172 = arith.constant 2.000000e-01 : f32
    %444 = vector.broadcast %cst_172 : f32 to vector<64x16xf32>
    %445 = arith.mulf %444, %441 : vector<64x16xf32>
    %446 = arith.select %443, %441, %445 : vector<64x16xi1>, vector<64x16xf32>
    %c12_173 = arith.constant 12 : index
    %c0_174 = arith.constant 0 : index
    %447 = vector.load %arg10[%c12_173, %c0_174] : memref<16x16xf32, #tpu.memory_space<vmem>>, vector<1x16xf32>
    %448 = vector.broadcast %447 : vector<1x16xf32> to vector<64x16xf32>
    %449 = arith.mulf %446, %448 : vector<64x16xf32>
    %450 = arith.addf %423, %449 : vector<64x16xf32>
    %c52 = arith.constant 52 : index
    %c0_175 = arith.constant 0 : index
    %451 = vector.load %arg8[%c52, %c0_175] : memref<64x16xf32, #tpu.memory_space<vmem>>, vector<1x16xf32>
    %452 = vector.broadcast %451 : vector<1x16xf32> to vector<64x16xf32>
    %453 = arith.mulf %28, %452 : vector<64x16xf32>
    %c53 = arith.constant 53 : index
    %c0_176 = arith.constant 0 : index
    %454 = vector.load %arg8[%c53, %c0_176] : memref<64x16xf32, #tpu.memory_space<vmem>>, vector<1x16xf32>
    %455 = vector.broadcast %454 : vector<1x16xf32> to vector<64x16xf32>
    %456 = arith.mulf %52, %455 : vector<64x16xf32>
    %457 = arith.addf %453, %456 : vector<64x16xf32>
    %c54 = arith.constant 54 : index
    %c0_177 = arith.constant 0 : index
    %458 = vector.load %arg8[%c54, %c0_177] : memref<64x16xf32, #tpu.memory_space<vmem>>, vector<1x16xf32>
    %459 = vector.broadcast %458 : vector<1x16xf32> to vector<64x16xf32>
    %460 = arith.mulf %76, %459 : vector<64x16xf32>
    %461 = arith.addf %457, %460 : vector<64x16xf32>
    %c55 = arith.constant 55 : index
    %c0_178 = arith.constant 0 : index
    %462 = vector.load %arg8[%c55, %c0_178] : memref<64x16xf32, #tpu.memory_space<vmem>>, vector<1x16xf32>
    %463 = vector.broadcast %462 : vector<1x16xf32> to vector<64x16xf32>
    %464 = arith.mulf %100, %463 : vector<64x16xf32>
    %465 = arith.addf %461, %464 : vector<64x16xf32>
    %c13_179 = arith.constant 13 : index
    %c0_180 = arith.constant 0 : index
    %466 = vector.load %arg9[%c13_179, %c0_180] : memref<16x16xf32, #tpu.memory_space<vmem>>, vector<1x16xf32>
    %467 = vector.broadcast %466 : vector<1x16xf32> to vector<64x16xf32>
    %468 = arith.addf %465, %467 : vector<64x16xf32>
    %cst_181 = arith.constant 0.000000e+00 : f32
    %469 = vector.broadcast %cst_181 : f32 to vector<64x16xf32>
    %470 = arith.cmpf ogt, %468, %469 : vector<64x16xf32>
    %cst_182 = arith.constant 2.000000e-01 : f32
    %471 = vector.broadcast %cst_182 : f32 to vector<64x16xf32>
    %472 = arith.mulf %471, %468 : vector<64x16xf32>
    %473 = arith.select %470, %468, %472 : vector<64x16xi1>, vector<64x16xf32>
    %c13_183 = arith.constant 13 : index
    %c0_184 = arith.constant 0 : index
    %474 = vector.load %arg10[%c13_183, %c0_184] : memref<16x16xf32, #tpu.memory_space<vmem>>, vector<1x16xf32>
    %475 = vector.broadcast %474 : vector<1x16xf32> to vector<64x16xf32>
    %476 = arith.mulf %473, %475 : vector<64x16xf32>
    %477 = arith.addf %450, %476 : vector<64x16xf32>
    %c56 = arith.constant 56 : index
    %c0_185 = arith.constant 0 : index
    %478 = vector.load %arg8[%c56, %c0_185] : memref<64x16xf32, #tpu.memory_space<vmem>>, vector<1x16xf32>
    %479 = vector.broadcast %478 : vector<1x16xf32> to vector<64x16xf32>
    %480 = arith.mulf %28, %479 : vector<64x16xf32>
    %c57 = arith.constant 57 : index
    %c0_186 = arith.constant 0 : index
    %481 = vector.load %arg8[%c57, %c0_186] : memref<64x16xf32, #tpu.memory_space<vmem>>, vector<1x16xf32>
    %482 = vector.broadcast %481 : vector<1x16xf32> to vector<64x16xf32>
    %483 = arith.mulf %52, %482 : vector<64x16xf32>
    %484 = arith.addf %480, %483 : vector<64x16xf32>
    %c58 = arith.constant 58 : index
    %c0_187 = arith.constant 0 : index
    %485 = vector.load %arg8[%c58, %c0_187] : memref<64x16xf32, #tpu.memory_space<vmem>>, vector<1x16xf32>
    %486 = vector.broadcast %485 : vector<1x16xf32> to vector<64x16xf32>
    %487 = arith.mulf %76, %486 : vector<64x16xf32>
    %488 = arith.addf %484, %487 : vector<64x16xf32>
    %c59 = arith.constant 59 : index
    %c0_188 = arith.constant 0 : index
    %489 = vector.load %arg8[%c59, %c0_188] : memref<64x16xf32, #tpu.memory_space<vmem>>, vector<1x16xf32>
    %490 = vector.broadcast %489 : vector<1x16xf32> to vector<64x16xf32>
    %491 = arith.mulf %100, %490 : vector<64x16xf32>
    %492 = arith.addf %488, %491 : vector<64x16xf32>
    %c14_189 = arith.constant 14 : index
    %c0_190 = arith.constant 0 : index
    %493 = vector.load %arg9[%c14_189, %c0_190] : memref<16x16xf32, #tpu.memory_space<vmem>>, vector<1x16xf32>
    %494 = vector.broadcast %493 : vector<1x16xf32> to vector<64x16xf32>
    %495 = arith.addf %492, %494 : vector<64x16xf32>
    %cst_191 = arith.constant 0.000000e+00 : f32
    %496 = vector.broadcast %cst_191 : f32 to vector<64x16xf32>
    %497 = arith.cmpf ogt, %495, %496 : vector<64x16xf32>
    %cst_192 = arith.constant 2.000000e-01 : f32
    %498 = vector.broadcast %cst_192 : f32 to vector<64x16xf32>
    %499 = arith.mulf %498, %495 : vector<64x16xf32>
    %500 = arith.select %497, %495, %499 : vector<64x16xi1>, vector<64x16xf32>
    %c14_193 = arith.constant 14 : index
    %c0_194 = arith.constant 0 : index
    %501 = vector.load %arg10[%c14_193, %c0_194] : memref<16x16xf32, #tpu.memory_space<vmem>>, vector<1x16xf32>
    %502 = vector.broadcast %501 : vector<1x16xf32> to vector<64x16xf32>
    %503 = arith.mulf %500, %502 : vector<64x16xf32>
    %504 = arith.addf %477, %503 : vector<64x16xf32>
    %c60 = arith.constant 60 : index
    %c0_195 = arith.constant 0 : index
    %505 = vector.load %arg8[%c60, %c0_195] : memref<64x16xf32, #tpu.memory_space<vmem>>, vector<1x16xf32>
    %506 = vector.broadcast %505 : vector<1x16xf32> to vector<64x16xf32>
    %507 = arith.mulf %28, %506 : vector<64x16xf32>
    %c61 = arith.constant 61 : index
    %c0_196 = arith.constant 0 : index
    %508 = vector.load %arg8[%c61, %c0_196] : memref<64x16xf32, #tpu.memory_space<vmem>>, vector<1x16xf32>
    %509 = vector.broadcast %508 : vector<1x16xf32> to vector<64x16xf32>
    %510 = arith.mulf %52, %509 : vector<64x16xf32>
    %511 = arith.addf %507, %510 : vector<64x16xf32>
    %c62 = arith.constant 62 : index
    %c0_197 = arith.constant 0 : index
    %512 = vector.load %arg8[%c62, %c0_197] : memref<64x16xf32, #tpu.memory_space<vmem>>, vector<1x16xf32>
    %513 = vector.broadcast %512 : vector<1x16xf32> to vector<64x16xf32>
    %514 = arith.mulf %76, %513 : vector<64x16xf32>
    %515 = arith.addf %511, %514 : vector<64x16xf32>
    %c63 = arith.constant 63 : index
    %c0_198 = arith.constant 0 : index
    %516 = vector.load %arg8[%c63, %c0_198] : memref<64x16xf32, #tpu.memory_space<vmem>>, vector<1x16xf32>
    %517 = vector.broadcast %516 : vector<1x16xf32> to vector<64x16xf32>
    %518 = arith.mulf %100, %517 : vector<64x16xf32>
    %519 = arith.addf %515, %518 : vector<64x16xf32>
    %c15_199 = arith.constant 15 : index
    %c0_200 = arith.constant 0 : index
    %520 = vector.load %arg9[%c15_199, %c0_200] : memref<16x16xf32, #tpu.memory_space<vmem>>, vector<1x16xf32>
    %521 = vector.broadcast %520 : vector<1x16xf32> to vector<64x16xf32>
    %522 = arith.addf %519, %521 : vector<64x16xf32>
    %cst_201 = arith.constant 0.000000e+00 : f32
    %523 = vector.broadcast %cst_201 : f32 to vector<64x16xf32>
    %524 = arith.cmpf ogt, %522, %523 : vector<64x16xf32>
    %cst_202 = arith.constant 2.000000e-01 : f32
    %525 = vector.broadcast %cst_202 : f32 to vector<64x16xf32>
    %526 = arith.mulf %525, %522 : vector<64x16xf32>
    %527 = arith.select %524, %522, %526 : vector<64x16xi1>, vector<64x16xf32>
    %c15_203 = arith.constant 15 : index
    %c0_204 = arith.constant 0 : index
    %528 = vector.load %arg10[%c15_203, %c0_204] : memref<16x16xf32, #tpu.memory_space<vmem>>, vector<1x16xf32>
    %529 = vector.broadcast %528 : vector<1x16xf32> to vector<64x16xf32>
    %530 = arith.mulf %527, %529 : vector<64x16xf32>
    %531 = arith.addf %504, %530 : vector<64x16xf32>
    %c0_205 = arith.constant 0 : index
    %c0_206 = arith.constant 0 : index
    %532 = vector.load %arg11[%c0_205, %c0_206] : memref<1x16xf32, #tpu.memory_space<vmem>>, vector<1x16xf32>
    %533 = vector.broadcast %532 : vector<1x16xf32> to vector<64x16xf32>
    %534 = arith.addf %531, %533 : vector<64x16xf32>
    %cst_207 = arith.constant 0.000000e+00 : f32
    %535 = vector.broadcast %cst_207 : f32 to vector<64x16xf32>
    %536 = arith.cmpf ogt, %534, %535 : vector<64x16xf32>
    %cst_208 = arith.constant 2.000000e-01 : f32
    %537 = vector.broadcast %cst_208 : f32 to vector<64x16xf32>
    %538 = arith.mulf %537, %534 : vector<64x16xf32>
    %539 = arith.select %536, %534, %538 : vector<64x16xi1>, vector<64x16xf32>
    %c0_209 = arith.constant 0 : index
    %c0_210 = arith.constant 0 : index
    %540 = vector.load %arg12[%c0_209, %c0_210] : memref<16x128xf32, #tpu.memory_space<vmem>>, vector<16x128xf32>
    %cst_211 = arith.constant dense<0.000000e+00> : vector<64x128xf32>
    %541 = tpu.matmul %539, %540, %cst_211 {dimension_numbers = #tpu.dot_dimension_numbers<[1], [0], [0], [1], [0, 0, 1, 1], [], []>} : vector<64x16xf32>, vector<16x128xf32>, vector<64x128xf32> -> vector<64x128xf32>
    %c0_212 = arith.constant 0 : index
    %c0_213 = arith.constant 0 : index
    %542 = vector.load %arg13[%c0_212, %c0_213] : memref<1x128xf32, #tpu.memory_space<vmem>>, vector<1x128xf32>
    %543 = vector.broadcast %542 : vector<1x128xf32> to vector<64x128xf32>
    %544 = arith.addf %541, %543 : vector<64x128xf32>
    %c0_214 = arith.constant 0 : index
    %c0_215 = arith.constant 0 : index
    %545 = vector.load %arg14[%c0_214, %c0_215] : memref<64x128xf32, #tpu.memory_space<vmem>>, vector<64x128xf32>
    tpu.vector_store %arg14[%c0_214, %c0_215], %544 {strides = array<i32>} : memref<64x128xf32, #tpu.memory_space<vmem>>, vector<64x128xf32>,
    return
  }
  func.func @transform_0(%arg0: i32) -> (i32, i32) {
    %c0_i32 = arith.constant 0 : i32
    %c0_i32_0 = arith.constant 0 : i32
    return %arg0, %c0_i32 : i32, i32
  }
  func.func @transform_1(%arg0: i32) -> (i32, i32) {
    %c0_i32 = arith.constant 0 : i32
    %c0_i32_0 = arith.constant 0 : i32
    return %arg0, %c0_i32 : i32, i32
  }
  func.func @transform_2(%arg0: i32) -> (i32, i32) {
    %c0_i32 = arith.constant 0 : i32
    %c0_i32_0 = arith.constant 0 : i32
    %c0_i32_1 = arith.constant 0 : i32
    return %c0_i32, %c0_i32_0 : i32, i32
  }
  func.func @transform_3(%arg0: i32) -> (i32, i32) {
    %c0_i32 = arith.constant 0 : i32
    %c0_i32_0 = arith.constant 0 : i32
    %c0_i32_1 = arith.constant 0 : i32
    return %c0_i32, %c0_i32_0 : i32, i32
  }
  func.func @transform_4(%arg0: i32) -> (i32, i32) {
    %c0_i32 = arith.constant 0 : i32
    %c0_i32_0 = arith.constant 0 : i32
    %c0_i32_1 = arith.constant 0 : i32
    return %c0_i32, %c0_i32_0 : i32, i32
  }
  func.func @transform_5(%arg0: i32) -> (i32, i32) {
    %c0_i32 = arith.constant 0 : i32
    %c0_i32_0 = arith.constant 0 : i32
    %c0_i32_1 = arith.constant 0 : i32
    return %c0_i32, %c0_i32_0 : i32, i32
  }
  func.func @transform_6(%arg0: i32) -> (i32, i32) {
    %c0_i32 = arith.constant 0 : i32
    %c0_i32_0 = arith.constant 0 : i32
    %c0_i32_1 = arith.constant 0 : i32
    return %c0_i32, %c0_i32_0 : i32, i32
  }
  func.func @transform_7(%arg0: i32) -> (i32, i32) {
    %c0_i32 = arith.constant 0 : i32
    %c0_i32_0 = arith.constant 0 : i32
    %c0_i32_1 = arith.constant 0 : i32
    return %c0_i32, %c0_i32_0 : i32, i32
  }
  func.func @transform_8(%arg0: i32) -> (i32, i32) {
    %c0_i32 = arith.constant 0 : i32
    %c0_i32_0 = arith.constant 0 : i32
    %c0_i32_1 = arith.constant 0 : i32
    return %c0_i32, %c0_i32_0 : i32, i32
  }
  func.func @transform_9(%arg0: i32) -> (i32, i32) {
    %c0_i32 = arith.constant 0 : i32
    %c0_i32_0 = arith.constant 0 : i32
    %c0_i32_1 = arith.constant 0 : i32
    return %c0_i32, %c0_i32_0 : i32, i32
  }
  func.func @transform_10(%arg0: i32) -> (i32, i32) {
    %c0_i32 = arith.constant 0 : i32
    %c0_i32_0 = arith.constant 0 : i32
    %c0_i32_1 = arith.constant 0 : i32
    return %c0_i32, %c0_i32_0 : i32, i32
  }
  func.func @transform_11(%arg0: i32) -> (i32, i32) {
    %c0_i32 = arith.constant 0 : i32
    %c0_i32_0 = arith.constant 0 : i32
    %c0_i32_1 = arith.constant 0 : i32
    return %c0_i32, %c0_i32_0 : i32, i32
  }
  func.func @transform_12(%arg0: i32) -> (i32, i32) {
    %c0_i32 = arith.constant 0 : i32
    %c0_i32_0 = arith.constant 0 : i32
    %c0_i32_1 = arith.constant 0 : i32
    return %c0_i32, %c0_i32_0 : i32, i32
  }
  func.func @transform_13(%arg0: i32) -> (i32, i32) {
    %c0_i32 = arith.constant 0 : i32
    %c0_i32_0 = arith.constant 0 : i32
    return %arg0, %c0_i32 : i32, i32
  }
}

</mosaic_0001>

<bundles_post_ra>
// kernel: tpu_custom_call.1
= control target key start
LH: loop header
LB: loop body
LE: loop exit
PB: predicated region body
PF: predicated region fallthrough
CT: control target
= control target key end

     0   :  { %v4055_v2 = vmov 0   ;;  %s7502_s0 = inlined_call_operand.vmem [shape: f32[64,4], index: 0, kind: input, shape index: {}]   ;;  %s7503_s1 = inlined_call_operand.vmem [shape: f32[64,4], index: 1, kind: input, shape index: {}]   ;;  %s7504_s2 = inlined_call_operand.vmem [shape: f32[1,16], index: 2, kind: input, shape index: {}]   ;;  %s7505_s3 = inlined_call_operand.vmem [shape: f32[1,16], index: 3, kind: input, shape index: {}]   ;;  %s7506_s4 = inlined_call_operand.vmem [shape: f32[1,16], index: 4, kind: input, shape index: {}]   ;;  %s7507_s5 = inlined_call_operand.vmem [shape: f32[16,16], index: 5, kind: input, shape index: {}]   ;;  %s7508_s6 = inlined_call_operand.vmem [shape: f32[1,16], index: 6, kind: input, shape index: {}]   ;;  %s7509_s7 = inlined_call_operand.vmem [shape: f32[64,16], index: 7, kind: input, shape index: {}]   ;;  %s7510_s8 = inlined_call_operand.vmem [shape: f32[16,16], index: 8, kind: input, shape index: {}]   ;;  %s7511_s9 = inlined_call_operand.vmem [shape: f32[16,16], index: 9, kind: input, shape index: {}]   ;;  %s7512_s10 = inlined_call_operand.vmem [shape: f32[1,16], index: 10, kind: input, shape index: {}]   ;;  %s7513_s11 = inlined_call_operand.vmem [shape: f32[16,128], index: 11, kind: input, shape index: {}]   ;;  %s7514_s12 = inlined_call_operand.vmem [shape: f32[1,128], index: 12, kind: input, shape index: {}]   ;;  %s7515_s13 = inlined_call_operand.hbm [shape: f32[64,128], index: 13, kind: output, shape index: {}]  }
   0x1   :  { %v4135_v0 = vld [vmem:[%s7502_s0 + $0x28] sm:$0xff]  ;;  %v4140_v1 = vld [vmem:[%s7502_s0 + $0x20] sm:$0xff]  ;;  %3821 = vset.pattern.permute.xlu1 %v4055_v2  ;;  %3820 = vset.pattern.permute.xlu0 %v4055_v2 }
   0x2   :  { %86 = vperm.xlu1 %3821, %v4135_v0   ;;  %81 = vperm.xlu0 %3820, %v4140_v1   ;;  %v4147_v3 = vld [vmem:[%s7503_s1 + $0x28] sm:$0xff]  ;;  %v4152_v4 = vld [vmem:[%s7503_s1 + $0x20] sm:$0xff] }
   0x6   :  { %148 = vperm.xlu1 %3821, %v4147_v3   ;;  %143 = vperm.xlu0 %3820, %v4152_v4  }
   0x7   :  { %18 = vsyncpa [#allocation3], 0  ;;  %v4159_v5 = vld [vmem:[%s7503_s1 + $0x30] sm:$0xff]  ;;  %v4169_v7 = vld [vmem:[%s7507_s5 + $0x8] sm:$0xff]  ;;  %v4056_v12 = vmov 1   ;;  %v4057_v20 = vmov 2  }
   0x8   :  { %v4164_v6 = vld [vmem:[%s7502_s0 + $0x30] sm:$0xff]  ;;  %3809 = vmatprep.subr.mxu1 %v4169_v7  ;;  %3729 = vmatprep.subr.mxu0 %v4169_v7  ;;  %v4177_v8 = vld [vmem:[%s7507_s5] sm:$0xff]  ;;  %v4185_v9 = vld [vmem:[%s7503_s1 + $0x38] sm:$0xff]  ;;  %v4058_v21 = vmov 3   ;;  %vm227_vm0 = vcmask 130048  }
   0x9   :  { %3811 = vmatpush3.msra.mxu1 %v4169_v7  ;;  %3730 = vmatpush3.msra.mxu0 %v4169_v7  ;;  %v4190_v10 = vld [vmem:[%s7502_s0 + $0x38] sm:$0xff]  ;;  %v113_v11 = vld [vmem:[%s7503_s1] sm:$0xff]  ;;  %v115_v13 = vld [vmem:[%s7503_s1 + $0x10] sm:$0xff] }
   0xa   :  { %153 = vperm.xlu1 %3821, %v4159_v5   ;;  %91 = vperm.xlu0 %3820, %v4164_v6   ;;  %v52_v14 = vld [vmem:[%s7502_s0 + $0x8] sm:$0xff]  ;;  %v53_v15 = vld [vmem:[%s7502_s0 + $0x10] sm:$0xff]  ;;  %v51_v16 = vld [vmem:[%s7502_s0] sm:$0xff] }
   0xb   :  { %3810 = vmatprep.subr.mxu1 %v4177_v8  ;;  %3731 = vmatprep.subr.mxu0 %v4177_v8  ;;  %v54_v17 = vld [vmem:[%s7502_s0 + $0x18] sm:$0xff]  ;;  %v114_v18 = vld [vmem:[%s7503_s1 + $0x8] sm:$0xff]  ;;  %v4249_v24 = vld [vmem:[%s7504_s2] ss:$0 sm:$0xff] }
   0xc   :  { %3812 = vmatpush3.msra.mxu1 %v4177_v8  ;;  %3732 = vmatpush3.msra.mxu0 %v4177_v8  ;;  %v116_v19 = vld [vmem:[%s7503_s1 + $0x18] sm:$0xff]  ;;  %v4254_v25 = vld [vmem:[%s7505_s3] ss:$0 sm:$0xff] }
   0xd   :  { %3745 = vmatprep.subr.mxu1 %v4169_v7  ;;  %3761 = vmatprep.subr.mxu0 %v4169_v7  ;;  %v4264_v32 = vld [vmem:[%s7506_s4] ss:$0 sm:$0xff] }
   0xe   :  { %158 = vperm.xlu1 %3821, %v4185_v9   ;;  %96 = vperm.xlu0 %3820, %v4190_v10  }
  0x12   :  { %3822 = vset.pattern.permute.xlu1 %v4056_v12  ;;  %123 = vperm.xlu0 %3820, %v113_v11  }
  0x13   :  { %422 = vperm.xlu1 %3822, %v113_v11  }
  0x16   :  { %133 = vperm.xlu0 %3820, %v115_v13  }
  0x17   :  { %386 = vperm.xlu1 %3822, %v52_v14  }
  0x1a   :  { %3826 = vset.pattern.permute.xlu0 %v4056_v12 }
  0x1b   :  { %390 = vperm.xlu1 %3822, %v53_v15   ;;  %382 = vperm.xlu0 %3826, %v51_v16  }
  0x1f   :  { %394 = vperm.xlu1 %3822, %v54_v17   ;;  %426 = vperm.xlu0 %3826, %v114_v18  }
  0x23   :  { %3823 = vset.pattern.permute.xlu1 %v4055_v2  ;;  %430 = vperm.xlu0 %3826, %v115_v13  }
  0x24   :  { %61 = vperm.xlu1 %3823, %v51_v16  }
  0x27   :  { %434 = vperm.xlu0 %3826, %v116_v19  }
  0x28   :  { %66 = vperm.xlu1 %3823, %v52_v14  }
  0x2b   :  { %398 = vperm.xlu0 %3826, %v4140_v1  }
  0x2c   :  { %128 = vperm.xlu1 %3823, %v114_v18  }
  0x2f   :  { %442 = vperm.xlu0 %3826, %v4147_v3  }
  0x30   :  { %3824 = vset.pattern.permute.xlu1 %v4056_v12 }
  0x31   :  { %438 = vperm.xlu1 %3824, %v4152_v4  }
  0x33   :  { %406 = vperm.xlu0 %3826, %v4164_v6  }
  0x35   :  { %402 = vperm.xlu1 %3824, %v4135_v0  }
  0x37   :  { %450 = vperm.xlu0 %3826, %v4185_v9  }
  0x39   :  { %3825 = vset.pattern.permute.xlu1 %v4055_v2 }
  0x3a   :  { %71 = vperm.xlu1 %3825, %v53_v15  }
  0x3b   :  { %3829 = vset.pattern.permute.xlu0 %v4057_v20 }
  0x3c   :  { %695 = vperm.xlu0 %3829, %v113_v11  }
  0x3e   :  { %76 = vperm.xlu1 %3825, %v54_v17  }
  0x40   :  { %703 = vperm.xlu0 %3829, %v115_v13  }
  0x42   :  { %138 = vperm.xlu1 %3825, %v116_v19  }
  0x44   :  { %711 = vperm.xlu0 %3829, %v4152_v4  }
  0x46   :  { %3827 = vset.pattern.permute.xlu1 %v4056_v12 }
  0x47   :  { %446 = vperm.xlu1 %3827, %v4159_v5  }
  0x48   :  { %719 = vperm.xlu0 %3829, %v4159_v5  }
  0x4b   :  { %410 = vperm.xlu1 %3827, %v4190_v10  }
  0x4c   :  { %3836 = vset.pattern.permute.xlu0 %v4058_v21 }
  0x4d   :  { %928 = vperm.xlu0 %3836, %v51_v16  }
  0x4f   :  { %3828 = vset.pattern.permute.xlu1 %v4057_v20 }
  0x50   :  { %655 = vperm.xlu1 %3828, %v51_v16  }
  0x51   :  { %972 = vperm.xlu0 %3836, %v114_v18  }
  0x54   :  { %659 = vperm.xlu1 %3828, %v52_v14  }
  0x55   :  { %936 = vperm.xlu0 %3836, %v53_v15  }
  0x58   :  { %699 = vperm.xlu1 %3828, %v114_v18  }
  0x59   :  { %980 = vperm.xlu0 %3836, %v116_v19  }
  0x5c   :  { %3830 = vset.pattern.permute.xlu1 %v4058_v21 }
  0x5d   :  { %968 = vperm.xlu1 %3830, %v113_v11   ;;  %944 = vperm.xlu0 %3836, %v4140_v1  }
  0x61   :  { %932 = vperm.xlu1 %3830, %v52_v14   ;;  %988 = vperm.xlu0 %3836, %v4147_v3  }
  0x65   :  { %3831 = vset.pattern.permute.xlu1 %v4057_v20  ;;  %952 = vperm.xlu0 %3836, %v4164_v6  }
  0x66   :  { %663 = vperm.xlu1 %3831, %v53_v15  }
  0x69   :  { %996 = vperm.xlu0 %3836, %v4185_v9  }
  0x6a   :  { %667 = vperm.xlu1 %3831, %v54_v17  }
  0x6e   :  { %707 = vperm.xlu1 %3831, %v116_v19  }
  0x72   :  { %3832 = vset.pattern.permute.xlu1 %v4058_v21 }
  0x73   :  { %976 = vperm.xlu1 %3832, %v115_v13  }
  0x77   :  { %940 = vperm.xlu1 %3832, %v54_v17  }
  0x7b   :  { %3833 = vset.pattern.permute.xlu1 %v4057_v20 }
  0x7c   :  { %671 = vperm.xlu1 %3833, %v4140_v1  }
  0x7d   :  { %v87_v22 = vpop.permute.xlu1 %86  ;;  %v82_v23 = vpop.permute.xlu0 %81 }
  0x7e   :  { %v109_v26 = vmul.f32 %v4249_v24, %v82_v23  ;;  %v110_v29 = vmul.f32 %v4249_v24, %v87_v22 }
  0x80   :  { %675 = vperm.xlu1 %3833, %v4135_v0  }
  0x81   :  { %v149_v27 = vpop.permute.xlu1 %148  ;;  %v144_v28 = vpop.permute.xlu0 %143 }
  0x82   :  { %v172_v30 = vmul.f32 %v4254_v25, %v149_v27  ;;  %v171_v31 = vmul.f32 %v4254_v25, %v144_v28 }
  0x84   :  { %v180_v33 = vadd.f32 %v172_v30, %v110_v29  ;;  %v179_v34 = vadd.f32 %v171_v31, %v109_v26  ;;  %715 = vperm.xlu1 %3833, %v4147_v3  }
  0x85   :  { %v154_v35 = vpop.permute.xlu1 %153  ;;  %v92_v36 = vpop.permute.xlu0 %91 }
  0x86   :  { %v194_v37 = vadd.f32 %v4264_v32, %v180_v33  ;;  %v193_v38 = vadd.f32 %v4264_v32, %v179_v34  ;;  %v173_v39 = vmul.f32 %v4254_v25, %v154_v35  ;;  %v111_v40 = vmul.f32 %v4249_v24, %v92_v36 }
  0x88   :  { %v181_v41 = vadd.f32 %v173_v39, %v111_v40  ;;  %3834 = vset.pattern.permute.xlu1 %v4058_v21  ;;  %vm201_vm1 = vcmp.gt.f32.partialorder %v193_v38, 0.0  ;;  %v209_v42 = vmul.f32 0.2, %v193_v38  ;;  %vm202_vm2 = vcmp.gt.f32.partialorder %v194_v37, 0.0 }
  0x89   :  { %v159_v43 = vpop.permute.xlu1 %158  ;;  %v97_v44 = vpop.permute.xlu0 %96  ;;  %984 = vperm.xlu1 %3834, %v4152_v4   ;;  %v210_v45 = vmul.f32 0.2, %v194_v37 }
  0x8a   :  { %v195_v46 = vadd.f32 %v4264_v32, %v181_v41  ;;  %v174_v47 = vmul.f32 %v4254_v25, %v159_v43  ;;  %v112_v48 = vmul.f32 %v4249_v24, %v97_v44  ;;  %v217_v49 = vsel %vm201_vm1, %v193_v38, %v209_v42 }
  0x8b   :  { %3739 = vmatprep.mubr.msk.f32.mxu1 %vm227_vm0, %v217_v49  ;;  %v218_v50 = vsel %vm202_vm2, %v194_v37, %v210_v45 }
  0x8c   :  { %v182_v51 = vadd.f32 %v174_v47, %v112_v48  ;;  %3740 = vmatmul.mubr.msk.f32.vlgmr.msra.gmra.mxu1 %vm227_vm0, %v218_v50  ;;  %vm203_vm3 = vcmp.gt.f32.partialorder %v195_v46, 0.0  ;;  %v211_v52 = vmul.f32 0.2, %v195_v46 }
  0x8d   :  { %948 = vperm.xlu1 %3834, %v4135_v0   ;;  %v124_v53 = vpop.permute.xlu0 %123  ;;  %3746 = vmatpush3.msra.mxu1 %v4169_v7 }
  0x8e   :  { %v196_v54 = vadd.f32 %v4264_v32, %v182_v51  ;;  %v423_v55 = vpop.permute.xlu1 %422  ;;  %v219_v56 = vsel %vm203_vm3, %v195_v46, %v211_v52  ;;  %3747 = vmatprep.subr.mxu1 %v4177_v8  ;;  %v167_v14 = vmul.f32 %v4254_v25, %v124_v53 }
  0x8f   :  { %3742 = vmatprep.mubr.msk.f32.mxu1 %vm227_vm0, %v219_v56  ;;  %3748 = vmatpush3.msra.mxu1 %v4177_v8  ;;  %v453_v63 = vmul.f32 %v4254_v25, %v423_v55 }
  0x90   :  { %vm204_vm4 = vcmp.gt.f32.partialorder %v196_v54, 0.0  ;;  %v212_v57 = vmul.f32 0.2, %v196_v54  ;;  %3777 = vmatprep.subr.mxu1 %v4169_v7 }
  0x91   :  { %3835 = vset.pattern.permute.xlu1 %v4057_v20  ;;  %v4286_v58 = vpop.permute.xlu0 %133 }
  0x92   :  { %v387_v59 = vpop.permute.xlu1 %386  ;;  %679 = vperm.xlu1 %3835, %v4164_v6   ;;  %v220_v60 = vsel %vm204_vm4, %v196_v54, %v212_v57 }
  0x93   :  { %3743 = vmatmul.mubr.msk.f32.gmra.mxu1 %vm227_vm0, %v220_v60  ;;  %v414_v4 = vmul.f32 %v4249_v24, %v387_v59 }
  0x96   :  { %v391_v61 = vpop.permute.xlu1 %390  ;;  %v383_v62 = vpop.permute.xlu0 %382  ;;  %683 = vperm.xlu1 %3835, %v4190_v10  }
  0x97   :  { %v413_v0 = vmul.f32 %v4249_v24, %v383_v62  ;;  %v415_v16 = vmul.f32 %v4249_v24, %v391_v61  ;;  %v169_v61 = vmul.f32 %v4254_v25, %v4286_v58 }
  0x99   :  { %v461_v1 = vadd.f32 %v453_v63, %v413_v0 }
  0x9a   :  { %v395_v2 = vpop.permute.xlu1 %394  ;;  %v427_v3 = vpop.permute.xlu0 %426  ;;  %723 = vperm.xlu1 %3835, %v4185_v9  }
  0x9b   :  { %v469_v6 = vadd.f32 %v4264_v32, %v461_v1  ;;  %v454_v11 = vmul.f32 %v4254_v25, %v427_v3 }
  0x9d   :  { %v462_v12 = vadd.f32 %v454_v11, %v414_v4  ;;  %vm477_vm5 = vcmp.gt.f32.partialorder %v469_v6, 0.0  ;;  %v485_v13 = vmul.f32 0.2, %v469_v6 }
  0x9e   :  { %v431_v15 = vpop.permute.xlu0 %430  ;;  %3837 = vset.pattern.permute.xlu1 %v4058_v21  ;;  %v416_v21 = vmul.f32 %v4249_v24, %v395_v2 }
  0x9f   :  { %v470_v17 = vadd.f32 %v4264_v32, %v462_v12  ;;  %v455_v9 = vmul.f32 %v4254_v25, %v431_v15  ;;  %992 = vperm.xlu1 %3837, %v4159_v5   ;;  %v62_v18 = vpop.permute.xlu1 %61  ;;  %v493_v19 = vsel %vm477_vm5, %v469_v6, %v485_v13 }
  0xa0   :  { %v105_v20 = vmul.f32 %v4249_v24, %v62_v18  ;;  %3749 = vmatprep.mubr.msk.f32.mxu1 %vm227_vm0, %v493_v19 }
  0xa1   :  { %vm478_vm6 = vcmp.gt.f32.partialorder %v470_v17, 0.0  ;;  %v486_v22 = vmul.f32 0.2, %v470_v17  ;;  %v463_v23 = vadd.f32 %v455_v9, %v415_v16 }
  0xa2   :  { %v175_v26 = vadd.f32 %v167_v14, %v105_v20  ;;  %v435_v27 = vpop.permute.xlu0 %434 }
  0xa3   :  { %v471_v28 = vadd.f32 %v4264_v32, %v463_v23  ;;  %v456_v29 = vmul.f32 %v4254_v25, %v435_v27  ;;  %956 = vperm.xlu1 %3837, %v4190_v10   ;;  %v67_v5 = vpop.permute.xlu1 %66  ;;  %v494_v30 = vsel %vm478_vm6, %v470_v17, %v486_v22 }
  0xa4   :  { %v189_v31 = vadd.f32 %v4264_v32, %v175_v26  ;;  %3750 = vmatmul.mubr.msk.f32.vlgmr.msra.gmra.mxu1 %vm227_vm0, %v494_v30  ;;  %v106_v39 = vmul.f32 %v4249_v24, %v67_v5 }
  0xa5   :  { %v464_v33 = vadd.f32 %v456_v29, %v416_v21  ;;  %vm479_vm7 = vcmp.gt.f32.partialorder %v471_v28, 0.0  ;;  %v487_v34 = vmul.f32 0.2, %v471_v28  ;;  %3778 = vmatpush3.msra.mxu1 %v4169_v7 }
  0xa6   :  { %vm197_vm8 = vcmp.gt.f32.partialorder %v189_v31, 0.0  ;;  %v205_v35 = vmul.f32 0.2, %v189_v31  ;;  %v399_v36 = vpop.permute.xlu0 %398  ;;  %3779 = vmatprep.subr.mxu1 %v4177_v8 }
  0xa7   :  { %v472_v37 = vadd.f32 %v4264_v32, %v464_v33  ;;  %v129_v38 = vpop.permute.xlu1 %128  ;;  %v495_v10 = vsel %vm479_vm7, %v471_v28, %v487_v34  ;;  %3780 = vmatpush3.msra.mxu1 %v4177_v8  ;;  %v417_v45 = vmul.f32 %v4249_v24, %v399_v36 }
  0xa8   :  { %v168_v40 = vmul.f32 %v4254_v25, %v129_v38  ;;  %3752 = vmatprep.mubr.msk.f32.mxu1 %vm227_vm0, %v495_v10  ;;  %v213_v41 = vsel %vm197_vm8, %v189_v31, %v205_v35 }
  0xa9   :  { %3733 = vmatprep.mubr.msk.f32.mxu0 %vm227_vm0, %v213_v41  ;;  %vm480_vm9 = vcmp.gt.f32.partialorder %v472_v37, 0.0  ;;  %v488_v42 = vmul.f32 0.2, %v472_v37 }
  0xaa   :  { %v176_v43 = vadd.f32 %v168_v40, %v106_v39  ;;  %v443_v44 = vpop.permute.xlu0 %442 }
  0xab   :  { %v496_v46 = vsel %vm480_vm9, %v472_v37, %v488_v42  ;;  %v458_v53 = vmul.f32 %v4254_v25, %v443_v44 }
  0xac   :  { %v190_v47 = vadd.f32 %v4264_v32, %v176_v43  ;;  %v439_v48 = vpop.permute.xlu1 %438  ;;  %3753 = vmatmul.mubr.msk.f32.gmra.mxu1 %vm227_vm0, %v496_v46 }
  0xad   :  { %v457_v49 = vmul.f32 %v4254_v25, %v439_v48 }
  0xae   :  { %vm198_vm10 = vcmp.gt.f32.partialorder %v190_v47, 0.0  ;;  %v206_v50 = vmul.f32 0.2, %v190_v47  ;;  %v407_v51 = vpop.permute.xlu0 %406 }
  0xaf   :  { %v465_v52 = vadd.f32 %v457_v49, %v417_v45  ;;  %v419_v9 = vmul.f32 %v4249_v24, %v407_v51 }
  0xb0   :  { %v403_v54 = vpop.permute.xlu1 %402  ;;  %v214_v55 = vsel %vm198_vm10, %v190_v47, %v206_v50 }
  0xb1   :  { %v473_v56 = vadd.f32 %v4264_v32, %v465_v52  ;;  %v418_v57 = vmul.f32 %v4249_v24, %v403_v54  ;;  %3734 = vmatmul.mubr.msk.f32.vlgmr.msra.gmra.mxu0 %vm227_vm0, %v214_v55 }
  0xb2   :  { %3762 = vmatpush3.msra.mxu0 %v4169_v7  ;;  %v451_v62 = vpop.permute.xlu0 %450 }
  0xb3   :  { %v466_v59 = vadd.f32 %v458_v53, %v418_v57  ;;  %vm481_vm11 = vcmp.gt.f32.partialorder %v473_v56, 0.0  ;;  %v489_v60 = vmul.f32 0.2, %v473_v56  ;;  %3763 = vmatprep.subr.mxu0 %v4177_v8  ;;  %v460_v26 = vmul.f32 %v4254_v25, %v451_v62 }
  0xb4   :  { %3764 = vmatpush3.msra.mxu0 %v4177_v8 }
  0xb5   :  { %v474_v63 = vadd.f32 %v4264_v32, %v466_v59  ;;  %v72_v0 = vpop.permute.xlu1 %71  ;;  %v497_v1 = vsel %vm481_vm11, %v473_v56, %v489_v60 }
  0xb6   :  { %v107_v2 = vmul.f32 %v4249_v24, %v72_v0  ;;  %3755 = vmatprep.mubr.msk.f32.mxu1 %vm227_vm0, %v497_v1 }
  0xb7   :  { %vm482_vm12 = vcmp.gt.f32.partialorder %v474_v63, 0.0  ;;  %v490_v7 = vmul.f32 0.2, %v474_v63  ;;  %v696_v58 = vpop.permute.xlu0 %695 }
  0xb8   :  { %v177_v3 = vadd.f32 %v169_v61, %v107_v2  ;;  %v726_v33 = vmul.f32 %v4254_v25, %v696_v58 }
  0xb9   :  { %v77_v4 = vpop.permute.xlu1 %76  ;;  %v498_v6 = vsel %vm482_vm12, %v474_v63, %v490_v7 }
  0xba   :  { %v191_v11 = vadd.f32 %v4264_v32, %v177_v3  ;;  %3756 = vmatmul.mubr.msk.f32.gmra.mxu1 %vm227_vm0, %v498_v6  ;;  %v108_v13 = vmul.f32 %v4249_v24, %v77_v4 }
  0xbb   :  { %v704_v17 = vpop.permute.xlu0 %703 }
  0xbc   :  { %vm199_vm13 = vcmp.gt.f32.partialorder %v191_v11, 0.0  ;;  %v207_v8 = vmul.f32 0.2, %v191_v11  ;;  %v728_v1 = vmul.f32 %v4254_v25, %v704_v17 }
  0xbd   :  { %v139_v12 = vpop.permute.xlu1 %138 }
  0xbe   :  { %v170_v14 = vmul.f32 %v4254_v25, %v139_v12  ;;  %v215_v15 = vsel %vm199_vm13, %v191_v11, %v207_v8 }
  0xbf   :  { %3736 = vmatprep.mubr.msk.f32.mxu0 %vm227_vm0, %v215_v15  ;;  %v4344_v28 = vpop.permute.xlu0 %711 }
  0xc0   :  { %v178_v16 = vadd.f32 %v170_v14, %v108_v13 }
  0xc2   :  { %v192_v18 = vadd.f32 %v4264_v32, %v178_v16  ;;  %v447_v19 = vpop.permute.xlu1 %446 }
  0xc3   :  { %v459_v20 = vmul.f32 %v4254_v25, %v447_v19  ;;  %v4353_v38 = vpop.permute.xlu0 %719 }
  0xc4   :  { %vm200_vm14 = vcmp.gt.f32.partialorder %v192_v18, 0.0  ;;  %v208_v22 = vmul.f32 0.2, %v192_v18 }
  0xc5   :  { %v467_v23 = vadd.f32 %v459_v20, %v419_v9 }
  0xc6   :  { %v411_v27 = vpop.permute.xlu1 %410  ;;  %v216_v21 = vsel %vm200_vm14, %v192_v18, %v208_v22 }
  0xc7   :  { %v475_v29 = vadd.f32 %v4264_v32, %v467_v23  ;;  %v420_v5 = vmul.f32 %v4249_v24, %v411_v27  ;;  %3737 = vmatmul.mubr.msk.f32.gmra.mxu0 %vm227_vm0, %v216_v21 }
  0xc8   :  { %v929_v44 = vpop.permute.xlu0 %928 }
  0xc9   :  { %v468_v30 = vadd.f32 %v460_v26, %v420_v5  ;;  %vm483_vm15 = vcmp.gt.f32.partialorder %v475_v29, 0.0  ;;  %v491_v31 = vmul.f32 0.2, %v475_v29  ;;  %v959_v50 = vmul.f32 %v4249_v24, %v929_v44 }
  0xcb   :  { %v476_v34 = vadd.f32 %v4264_v32, %v468_v30  ;;  %v656_v35 = vpop.permute.xlu1 %655  ;;  %v499_v36 = vsel %vm483_vm15, %v475_v29, %v491_v31 }
  0xcc   :  { %v686_v37 = vmul.f32 %v4249_v24, %v656_v35  ;;  %3758 = vmatprep.mubr.msk.f32.mxu1 %vm227_vm0, %v499_v36  ;;  %v973_v53 = vpop.permute.xlu0 %972 }
  0xcd   :  { %vm484_vm1 = vcmp.gt.f32.partialorder %v476_v34, 0.0  ;;  %v492_v10 = vmul.f32 0.2, %v476_v34  ;;  %v1000_v57 = vmul.f32 %v4254_v25, %v973_v53 }
  0xce   :  { %v734_v39 = vadd.f32 %v726_v33, %v686_v37 }
  0xcf   :  { %v660_v40 = vpop.permute.xlu1 %659  ;;  %v500_v41 = vsel %vm484_vm1, %v476_v34, %v492_v10 }
  0xd0   :  { %v742_v42 = vadd.f32 %v4264_v32, %v734_v39  ;;  %3759 = vmatmul.mubr.msk.f32.gmra.mxu1 %vm227_vm0, %v500_v41  ;;  %v687_v46 = vmul.f32 %v4249_v24, %v660_v40  ;;  %v937_v14 = vpop.permute.xlu0 %936  ;;  %v730_v39 = vmul.f32 %v4254_v25, %v4344_v28 }
  0xd1   :  { %v961_v19 = vmul.f32 %v4249_v24, %v937_v14 }
  0xd2   :  { %vm750_vm2 = vcmp.gt.f32.partialorder %v742_v42, 0.0  ;;  %v758_v43 = vmul.f32 0.2, %v742_v42 }
  0xd3   :  { %v700_v45 = vpop.permute.xlu1 %699 }
  0xd4   :  { %v727_v47 = vmul.f32 %v4254_v25, %v700_v45  ;;  %v766_v48 = vsel %vm750_vm2, %v742_v42, %v758_v43  ;;  %v981_v23 = vpop.permute.xlu0 %980 }
  0xd5   :  { %3765 = vmatprep.mubr.msk.f32.mxu0 %vm227_vm0, %v766_v48  ;;  %v1002_v29 = vmul.f32 %v4254_v25, %v981_v23 }
  0xd6   :  { %v735_v49 = vadd.f32 %v727_v47, %v687_v46 }
  0xd8   :  { %v743_v51 = vadd.f32 %v4264_v32, %v735_v49  ;;  %v969_v52 = vpop.permute.xlu1 %968 }
  0xd9   :  { %v999_v54 = vmul.f32 %v4254_v25, %v969_v52 }
  0xda   :  { %vm751_vm3 = vcmp.gt.f32.partialorder %v743_v51, 0.0  ;;  %v759_v55 = vmul.f32 0.2, %v743_v51 }
  0xdb   :  { %v1007_v56 = vadd.f32 %v999_v54, %v959_v50  ;;  %v945_v50 = vpop.permute.xlu0 %944 }
  0xdc   :  { %v933_v59 = vpop.permute.xlu1 %932  ;;  %v767_v60 = vsel %vm751_vm3, %v743_v51, %v759_v55  ;;  %v963_v54 = vmul.f32 %v4249_v24, %v945_v50 }
  0xdd   :  { %v1015_v61 = vadd.f32 %v4264_v32, %v1007_v56  ;;  %v960_v62 = vmul.f32 %v4249_v24, %v933_v59  ;;  %3766 = vmatmul.mubr.msk.f32.vlgmr.msra.gmra.mxu0 %vm227_vm0, %v767_v60 }
  0xdf   :  { %v1008_v63 = vadd.f32 %v1000_v57, %v960_v62  ;;  %vm1023_vm4 = vcmp.gt.f32.partialorder %v1015_v61, 0.0  ;;  %v1031_v0 = vmul.f32 0.2, %v1015_v61  ;;  %v989_v59 = vpop.permute.xlu0 %988 }
  0xe0   :  { %v1004_v62 = vmul.f32 %v4254_v25, %v989_v59 }
  0xe1   :  { %v1016_v2 = vadd.f32 %v4264_v32, %v1008_v63  ;;  %v664_v7 = vpop.permute.xlu1 %663  ;;  %v1039_v3 = vsel %vm1023_vm4, %v1015_v61, %v1031_v0 }
  0xe2   :  { %v688_v4 = vmul.f32 %v4249_v24, %v664_v7  ;;  %3781 = vmatprep.mubr.msk.f32.mxu1 %vm227_vm0, %v1039_v3 }
  0xe3   :  { %vm1024_vm5 = vcmp.gt.f32.partialorder %v1016_v2, 0.0  ;;  %v1032_v6 = vmul.f32 0.2, %v1016_v2 }
  0xe4   :  { %v736_v11 = vadd.f32 %v728_v1, %v688_v4 }
  0xe5   :  { %v668_v58 = vpop.permute.xlu1 %667  ;;  %v1040_v8 = vsel %vm1024_vm5, %v1016_v2, %v1032_v6  ;;  %v732_v6 = vmul.f32 %v4254_v25, %v4353_v38 }
  0xe6   :  { %v744_v12 = vadd.f32 %v4264_v32, %v736_v11  ;;  %3782 = vmatmul.mubr.msk.f32.vlgmr.msra.gmra.mxu1 %vm227_vm0, %v1040_v8  ;;  %v689_v16 = vmul.f32 %v4249_v24, %v668_v58 }
  0xe8   :  { %vm752_vm6 = vcmp.gt.f32.partialorder %v744_v12, 0.0  ;;  %v760_v13 = vmul.f32 0.2, %v744_v12 }
  0xe9   :  { %v708_v15 = vpop.permute.xlu1 %707 }
  0xea   :  { %v729_v17 = vmul.f32 %v4254_v25, %v708_v15  ;;  %v768_v9 = vsel %vm752_vm6, %v744_v12, %v760_v13 }
  0xeb   :  { %3768 = vmatprep.mubr.msk.f32.mxu0 %vm227_vm0, %v768_v9 }
  0xec   :  { %v737_v18 = vadd.f32 %v729_v17, %v689_v16  ;;  %v953_v17 = vpop.permute.xlu0 %952 }
  0xed   :  { %v965_v23 = vmul.f32 %v4249_v24, %v953_v17 }
  0xee   :  { %v745_v20 = vadd.f32 %v4264_v32, %v737_v18  ;;  %v977_v22 = vpop.permute.xlu1 %976 }
  0xef   :  { %v1001_v26 = vmul.f32 %v4254_v25, %v977_v22 }
  0xf0   :  { %vm753_vm7 = vcmp.gt.f32.partialorder %v745_v20, 0.0  ;;  %v761_v27 = vmul.f32 0.2, %v745_v20 }
  0xf1   :  { %v1009_v21 = vadd.f32 %v1001_v26, %v961_v19 }
  0xf2   :  { %v941_v5 = vpop.permute.xlu1 %940  ;;  %v769_v30 = vsel %vm753_vm7, %v745_v20, %v761_v27  ;;  %v997_v27 = vpop.permute.xlu0 %996 }
  0xf3   :  { %v1017_v31 = vadd.f32 %v4264_v32, %v1009_v21  ;;  %v962_v33 = vmul.f32 %v4249_v24, %v941_v5  ;;  %3769 = vmatmul.mubr.msk.f32.gmra.mxu0 %vm227_vm0, %v769_v30 }
  0xf5   :  { %v1010_v34 = vadd.f32 %v1002_v29, %v962_v33  ;;  %vm1025_vm8 = vcmp.gt.f32.partialorder %v1017_v31, 0.0  ;;  %v1033_v35 = vmul.f32 0.2, %v1017_v31 }
  0xf7   :  { %v1018_v36 = vadd.f32 %v4264_v32, %v1010_v34  ;;  %v672_v37 = vpop.permute.xlu1 %671  ;;  %v1041_v10 = vsel %vm1025_vm8, %v1017_v31, %v1033_v35  ;;  %v1006_v31 = vmul.f32 %v4254_v25, %v997_v27  ;;  %v4540_v27 = vld [vmem:[%s7509_s7 + $0x25] ss:$0 sm:$0xff] }
  0xf8   :  { %v690_v40 = vmul.f32 %v4249_v24, %v672_v37  ;;  %3784 = vmatprep.mubr.msk.f32.mxu1 %vm227_vm0, %v1041_v10  ;;  %7774 = vst [vmem:[#allocation15_spill] sm:$0xff] %v4540_v27 }
  0xf9   :  { %vm1026_vm9 = vcmp.gt.f32.partialorder %v1018_v36, 0.0  ;;  %v1034_v41 = vmul.f32 0.2, %v1018_v36 }
  0xfa   :  { %v738_v42 = vadd.f32 %v730_v39, %v690_v40 }
  0xfb   :  { %v676_v43 = vpop.permute.xlu1 %675  ;;  %v1042_v44 = vsel %vm1026_vm9, %v1018_v36, %v1034_v41 }
  0xfc   :  { %v746_v45 = vadd.f32 %v4264_v32, %v738_v42  ;;  %3785 = vmatmul.mubr.msk.f32.gmra.mxu1 %vm227_vm0, %v1042_v44  ;;  %v691_v48 = vmul.f32 %v4249_v24, %v676_v43  ;;  %v3375_v42 = vld [vmem:[%s7513_s11] sm:$0xff] }
  0xfd   :  { %v4429_v43 = vld [vmem:[%s7508_s6] ss:$0 sm:$0xff] }
  0xfe   :  { %vm754_vm10 = vcmp.gt.f32.partialorder %v746_v45, 0.0  ;;  %v762_v46 = vmul.f32 0.2, %v746_v45 }
  0xff   :  { %v716_v47 = vpop.permute.xlu1 %715 }
 0x100   :  { %v731_v28 = vmul.f32 %v4254_v25, %v716_v47  ;;  %v770_v49 = vsel %vm754_vm10, %v746_v45, %v762_v46 }
 0x101   :  { %3771 = vmatprep.mubr.msk.f32.mxu0 %vm227_vm0, %v770_v49 }
 0x102   :  { %v739_v51 = vadd.f32 %v731_v28, %v691_v48 }
 0x104   :  { %v747_v52 = vadd.f32 %v4264_v32, %v739_v51  ;;  %v985_v53 = vpop.permute.xlu1 %984 }
 0x105   :  { %v1003_v55 = vmul.f32 %v4254_v25, %v985_v53  ;;  %v4444_v53 = vld [vmem:[%s7509_s7 + $0x5] ss:$0 sm:$0xff] }
 0x106   :  { %vm755_vm11 = vcmp.gt.f32.partialorder %v747_v52, 0.0  ;;  %v763_v56 = vmul.f32 0.2, %v747_v52  ;;  %7765 = vst [vmem:[#allocation6_spill] sm:$0xff] %v4444_v53 }
 0x107   :  { %v1011_v57 = vadd.f32 %v1003_v55, %v963_v54 }
 0x108   :  { %v949_v60 = vpop.permute.xlu1 %948  ;;  %v771_v61 = vsel %vm755_vm11, %v747_v52, %v763_v56  ;;  %v4439_v52 = vld [vmem:[%s7509_s7 + $0x1] ss:$0 sm:$0xff] }
 0x109   :  { %v1019_v63 = vadd.f32 %v4264_v32, %v1011_v57  ;;  %v964_v0 = vmul.f32 %v4249_v24, %v949_v60  ;;  %3772 = vmatmul.mubr.msk.f32.gmra.mxu0 %vm227_vm0, %v771_v61  ;;  %7764 = vst [vmem:[#allocation5_spill] sm:$0xff] %v4439_v52  ;;  %v4450_v60 = vld [vmem:[%s7509_s7 + $0x9] ss:$0 sm:$0xff] }
 0x10a   :  { %7766 = vst [vmem:[#allocation7_spill] sm:$0xff] %v4450_v60 }
 0x10b   :  { %v1012_v1 = vadd.f32 %v1004_v62, %v964_v0  ;;  %vm1027_vm12 = vcmp.gt.f32.partialorder %v1019_v63, 0.0  ;;  %v1035_v2 = vmul.f32 0.2, %v1019_v63  ;;  %v4457_v62 = vld [vmem:[%s7509_s7 + $0xd] ss:$0 sm:$0xff] }
 0x10c   :  { %7768 = vst [vmem:[#allocation9_spill] sm:$0xff] %v4457_v62  ;;  %v4467_v0 = vld [vmem:[%s7509_s7 + $0x15] ss:$0 sm:$0xff] }
 0x10d   :  { %v1020_v7 = vadd.f32 %v4264_v32, %v1012_v1  ;;  %v680_v3 = vpop.permute.xlu1 %679  ;;  %v1043_v4 = vsel %vm1027_vm12, %v1019_v63, %v1035_v2  ;;  %v4462_v63 = vld [vmem:[%s7509_s7 + $0x11] ss:$0 sm:$0xff] }
 0x10e   :  { %v692_v11 = vmul.f32 %v4249_v24, %v680_v3  ;;  %3787 = vmatprep.mubr.msk.f32.mxu1 %vm227_vm0, %v1043_v4  ;;  %v4476_v3 = vld [vmem:[%s7509_s7 + $0x19] ss:$0 sm:$0xff] }
 0x10f   :  { %vm1028_vm13 = vcmp.gt.f32.partialorder %v1020_v7, 0.0  ;;  %v1036_v58 = vmul.f32 0.2, %v1020_v7 }
 0x110   :  { %v740_v8 = vadd.f32 %v732_v6, %v692_v11 }
 0x111   :  { %v684_v12 = vpop.permute.xlu1 %683  ;;  %v1044_v13 = vsel %vm1028_vm13, %v1020_v7, %v1036_v58 }
 0x112   :  { %v748_v14 = vadd.f32 %v4264_v32, %v740_v8  ;;  %3788 = vmatmul.mubr.msk.f32.gmra.mxu1 %vm227_vm0, %v1044_v13  ;;  %v693_v9 = vmul.f32 %v4249_v24, %v684_v12 }
 0x114   :  { %vm756_vm14 = vcmp.gt.f32.partialorder %v748_v14, 0.0  ;;  %v764_v15 = vmul.f32 0.2, %v748_v14 }
 0x115   :  { %v724_v16 = vpop.permute.xlu1 %723 }
 0x116   :  { %v733_v38 = vmul.f32 %v4254_v25, %v724_v16  ;;  %v772_v18 = vsel %vm756_vm14, %v748_v14, %v764_v15 }
 0x117   :  { %3774 = vmatprep.mubr.msk.f32.mxu0 %vm227_vm0, %v772_v18 }
 0x118   :  { %v741_v19 = vadd.f32 %v733_v38, %v693_v9 }
 0x11a   :  { %v749_v20 = vadd.f32 %v4264_v32, %v741_v19  ;;  %v993_v22 = vpop.permute.xlu1 %992 }
 0x11b   :  { %v1005_v26 = vmul.f32 %v4254_v25, %v993_v22 }
 0x11c   :  { %vm757_vm15 = vcmp.gt.f32.partialorder %v749_v20, 0.0  ;;  %v765_v21 = vmul.f32 0.2, %v749_v20 }
 0x11d   :  { %v1013_v29 = vadd.f32 %v1005_v26, %v965_v23  ;;  %v4530_v23 = vld [vmem:[%s7509_s7 + $0x1d] ss:$0 sm:$0xff]  ;;  %v4535_v26 = vld [vmem:[%s7509_s7 + $0x21] ss:$0 sm:$0xff] }
 0x11e   :  { %v957_v5 = vpop.permute.xlu1 %956  ;;  %v773_v30 = vsel %vm757_vm15, %v749_v20, %v765_v21  ;;  %7772 = vst [vmem:[#allocation13_spill] sm:$0xff] %v4530_v23  ;;  %7773 = vst [vmem:[#allocation14_spill] sm:$0xff] %v4535_v26 }
 0x11f   :  { %v1021_v33 = vadd.f32 %v4264_v32, %v1013_v29  ;;  %v966_v34 = vmul.f32 %v4249_v24, %v957_v5  ;;  %3775 = vmatmul.mubr.msk.f32.gmra.mxu0 %vm227_vm0, %v773_v30  ;;  %v3376_v24 = vld [vmem:[%s7513_s11 + $0x8] sm:$0xff] }
 0x120   :  { %3793 = vmatprep.subr.mxu0 %v3376_v24 }
 0x121   :  { %v1014_v35 = vadd.f32 %v1006_v31, %v966_v34  ;;  %vm1029_vm1 = vcmp.gt.f32.partialorder %v1021_v33, 0.0  ;;  %v1037_v36 = vmul.f32 0.2, %v1021_v33  ;;  %3794 = vmatpush3.msra.mxu0 %v3376_v24  ;;  %v4562_v34 = vld [vmem:[%s7509_s7 + $0x2d] ss:$0 sm:$0xff] }
 0x122   :  { %3795 = vmatprep.subr.mxu0 %v3375_v42  ;;  %7776 = vst [vmem:[#allocation17_spill] sm:$0xff] %v4562_v34 }
 0x123   :  { %v1022_v37 = vadd.f32 %v4264_v32, %v1014_v35  ;;  %v1045_v10 = vsel %vm1029_vm1, %v1021_v33, %v1037_v36  ;;  %3796 = vmatpush3.msra.mxu0 %v3375_v42  ;;  %v4557_v33 = vld [vmem:[%s7509_s7 + $0x29] ss:$0 sm:$0xff]  ;;  %v4567_v35 = vld [vmem:[%s7509_s7 + $0x31] ss:$0 sm:$0xff]  ;;  %v4593_v42 = vld [vmem:[%s7509_s7 + $0x39] ss:$0 sm:$0xff] }
 0x124   :  { %3790 = vmatprep.mubr.msk.f32.mxu1 %vm227_vm0, %v1045_v10  ;;  %7775 = vst [vmem:[#allocation16_spill] sm:$0xff] %v4557_v33  ;;  %7777 = vst [vmem:[#allocation18_spill] sm:$0xff] %v4567_v35 }
 0x125   :  { %vm1030_vm2 = vcmp.gt.f32.partialorder %v1022_v37, 0.0  ;;  %v1038_v39 = vmul.f32 0.2, %v1022_v37  ;;  %7779 = vst [vmem:[#allocation20_spill] sm:$0xff] %v4593_v42 }
 0x127   :  { %v1046_v40 = vsel %vm1030_vm2, %v1022_v37, %v1038_v39  ;;  %v4576_v39 = vld [vmem:[%s7509_s7 + $0x35] ss:$0 sm:$0xff] }
 0x128   :  { %3791 = vmatmul.mubr.msk.f32.gmra.mxu1 %vm227_vm0, %v1046_v40  ;;  %7778 = vst [vmem:[#allocation19_spill] sm:$0xff] %v4576_v39 }
 0x14c   :  { %v3741_v25 = vpop.f32.mrf.mxu1 }
 0x14d   :  { %v344_v45 = vadd.f32 %v3741_v25, %v4429_v43 }
 0x14e   :  { %v338_v41 = vpop.f32.mrf.mxu1 }
 0x14f   :  { %v339_v46 = vadd.f32 %v4429_v43, %v338_v41  ;;  %v370_v28 = vmul.f32 0.2, %v344_v45  ;;  %vm362_vm3 = vcmp.gt.f32.partialorder %v344_v45, 0.0 }
 0x151   :  { %v369_v50 = vmul.f32 0.2, %v339_v46  ;;  %vm361_vm4 = vcmp.gt.f32.partialorder %v339_v46, 0.0  ;;  %v4452_v61 = vsel %vm362_vm3, %v344_v45, %v370_v28 }
 0x152   :  { %7767 = vst [vmem:[#allocation8_spill] sm:$0xff] %v4452_v61 }
 0x153   :  { %v3744_v32 = vpop.f32.mrf.mxu1  ;;  %v4469_v1 = vsel %vm361_vm4, %v339_v46, %v369_v50 }
 0x154   :  { %v354_v47 = vadd.f32 %v3744_v32, %v4429_v43  ;;  %7769 = vst [vmem:[#allocation10_spill] sm:$0xff] %v4469_v1  ;;  %v4598_v32 = vld [vmem:[%s7509_s7 + $0x3d] ss:$0 sm:$0xff] }
 0x155   :  { %v348_v44 = vpop.f32.mrf.mxu1  ;;  %7780 = vst [vmem:[#allocation21_spill] sm:$0xff] %v4598_v32 }
 0x156   :  { %v349_v48 = vadd.f32 %v4429_v43, %v348_v44  ;;  %vm364_vm5 = vcmp.gt.f32.partialorder %v354_v47, 0.0  ;;  %v372_v54 = vmul.f32 0.2, %v354_v47 }
 0x158   :  { %v371_v55 = vmul.f32 0.2, %v349_v48  ;;  %vm363_vm6 = vcmp.gt.f32.partialorder %v349_v48, 0.0  ;;  %v4479_v4 = vsel %vm364_vm5, %v354_v47, %v372_v54 }
 0x159   :  { %7770 = vst [vmem:[#allocation11_spill] sm:$0xff] %v4479_v4 }
 0x15a   :  { %v4481_v6 = vsel %vm363_vm6, %v349_v48, %v371_v55 }
 0x15b   :  { %7771 = vst [vmem:[#allocation12_spill] sm:$0xff] %v4481_v6 }
 0x164   :  { %v3751_v49 = vpop.f32.mrf.mxu1 }
 0x165   :  { %v597_v51 = vadd.f32 %v3751_v49, %v4429_v43 }
 0x166   :  { %v591_v56 = vpop.f32.mrf.mxu1 }
 0x167   :  { %vm631_vm7 = vcmp.gt.f32.partialorder %v597_v51, 0.0  ;;  %v639_v57 = vmul.f32 0.2, %v597_v51  ;;  %v592_v59 = vadd.f32 %v4429_v43, %v591_v56 }
 0x169   :  { %v4471_v2 = vsel %vm631_vm7, %v597_v51, %v639_v57  ;;  %vm630_vm8 = vcmp.gt.f32.partialorder %v592_v59, 0.0  ;;  %v638_v7 = vmul.f32 0.2, %v592_v59 }
 0x16a   :  { %v4485_v11 = vmul.f32 %v4439_v52, %v4471_v2  ;;  %v4489_v58 = vmul.f32 %v4444_v53, %v4471_v2  ;;  %v4493_v12 = vmul.f32 %v4450_v60, %v4471_v2  ;;  %v4497_v13 = vmul.f32 %v4457_v62, %v4471_v2 }
 0x16b   :  { %v646_v8 = vsel %vm630_vm8, %v592_v59, %v638_v7  ;;  %v4501_v14 = vmul.f32 %v4462_v63, %v4471_v2  ;;  %v4511_v9 = vmul.f32 %v4467_v0, %v4471_v2  ;;  %v4515_v38 = vmul.f32 %v4476_v3, %v4471_v2 }
 0x16c   :  { %v3754_v15 = vpop.f32.mrf.mxu1  ;;  %v4504_v16 = vmul.f32 %v4439_v52, %v646_v8  ;;  %v4507_v17 = vmul.f32 %v4444_v53, %v646_v8  ;;  %v4519_v19 = vmul.f32 %v4450_v60, %v646_v8  ;;  %v4522_v20 = vmul.f32 %v4457_v62, %v646_v8 }
 0x16d   :  { %v607_v18 = vadd.f32 %v3754_v15, %v4429_v43  ;;  %v4525_v22 = vmul.f32 %v4462_v63, %v646_v8  ;;  %v4543_v29 = vmul.f32 %v4467_v0, %v646_v8  ;;  %v4546_v5 = vmul.f32 %v4476_v3, %v646_v8  ;;  %v4640_v15 = vld [vmem:[%s7509_s7] ss:$0 sm:$0xff] }
 0x16e   :  { %v601_v21 = vpop.f32.mrf.mxu1  ;;  %v4549_v30 = vmul.f32 %v4530_v23, %v646_v8  ;;  %v4552_v31 = vmul.f32 %v4535_v26, %v646_v8  ;;  %v4571_v10 = vmul.f32 %v4540_v27, %v646_v8  ;;  %v4579_v40 = vmul.f32 %v4557_v33, %v646_v8  ;;  %7782 = vst [vmem:[#allocation23_spill] sm:$0xff] %v4640_v15 }
 0x16f   :  { %vm633_vm9 = vcmp.gt.f32.partialorder %v607_v18, 0.0  ;;  %v641_v36 = vmul.f32 0.2, %v607_v18  ;;  %v602_v37 = vadd.f32 %v4429_v43, %v601_v21  ;;  %v4582_v25 = vmul.f32 %v4562_v34, %v646_v8 }
 0x170   :  { %v4585_v41 = vmul.f32 %v4567_v35, %v646_v8  ;;  %v4588_v24 = vmul.f32 %v4576_v39, %v646_v8  ;;  %v4601_v46 = vmul.f32 %v4593_v42, %v646_v8  ;;  %v4604_v47 = vmul.f32 %v4598_v32, %v646_v8 }
 0x171   :  { %vm632_vm10 = vcmp.gt.f32.partialorder %v602_v37, 0.0  ;;  %v640_v44 = vmul.f32 0.2, %v602_v37  ;;  %v3735_v45 = vpop.f32.mrf.mxu0  ;;  %v4607_v48 = vsel %vm633_vm9, %v607_v18, %v641_v36  ;;  %v4612_v49 = vmul.f32 %v4530_v23, %v4471_v2 }
 0x172   :  { %7781 = vst [vmem:[#allocation22_spill] sm:$0xff] %v4607_v48  ;;  %v324_v28 = vadd.f32 %v3735_v45, %v4429_v43  ;;  %v4616_v50 = vmul.f32 %v4535_v26, %v4471_v2  ;;  %v4622_v55 = vmul.f32 %v4540_v27, %v4471_v2  ;;  %v4626_v56 = vmul.f32 %v4557_v33, %v4471_v2 }
 0x173   :  { %v4618_v51 = vsel %vm632_vm10, %v602_v37, %v640_v44  ;;  %v318_v54 = vpop.f32.mrf.mxu0  ;;  %v4630_v57 = vmul.f32 %v4562_v34, %v4471_v2  ;;  %v4635_v8 = vmul.f32 %v4567_v35, %v4471_v2  ;;  %v4644_v18 = vmul.f32 %v4576_v39, %v4471_v2 }
 0x174   :  { %vm358_vm11 = vcmp.gt.f32.partialorder %v324_v28, 0.0  ;;  %v366_v59 = vmul.f32 0.2, %v324_v28  ;;  %v319_v7 = vadd.f32 %v4429_v43, %v318_v54  ;;  %v4648_v21 = vmul.f32 %v4593_v42, %v4471_v2  ;;  %v4663_v54 = vld [vmem:[%s7509_s7 + $0x4] ss:$0 sm:$0xff] }
 0x175   :  { %v4652_v36 = vmul.f32 %v4598_v32, %v4471_v2  ;;  %v4656_v37 = vmul.f32 %v4439_v52, %v4618_v51  ;;  %7784 = vst [vmem:[#allocation25_spill] sm:$0xff] %v4663_v54  ;;  %v4667_v4 = vmul.f32 %v4444_v53, %v4618_v51  ;;  %v4672_v2 = vld [vmem:[%s7509_s7 + $0x8] ss:$0 sm:$0xff]  ;;  %v4690_v1 = vmul.f32 %v4450_v60, %v4618_v51 }
 0x176   :  { %v4658_v44 = vsel %vm358_vm11, %v324_v28, %v366_v59  ;;  %vm357_vm12 = vcmp.gt.f32.partialorder %v319_v7, 0.0  ;;  %v365_v45 = vmul.f32 0.2, %v319_v7  ;;  %7786 = vst [vmem:[#allocation27_spill] sm:$0xff] %v4672_v2  ;;  %v4677_v28 = vld [vmem:[%s7509_s7 + $0xc] ss:$0 sm:$0xff]  ;;  %v4694_v53 = vmul.f32 %v4457_v62, %v4618_v51 }
 0x177   :  { %7783 = vst [vmem:[#allocation24_spill] sm:$0xff] %v4656_v37  ;;  %7785 = vst [vmem:[#allocation26_spill] sm:$0xff] %v4667_v4  ;;  %v4682_v59 = vld [vmem:[%s7509_s7 + $0x10] ss:$0 sm:$0xff]  ;;  %v1206_v6 = vmul.f32 %v4640_v15, %v4658_v44  ;;  %v1332_v61 = vmul.f32 %v4663_v54, %v4658_v44  ;;  %v1466_v48 = vmul.f32 %v4672_v2, %v4658_v44 }
 0x178   :  { %7787 = vst [vmem:[#allocation28_spill] sm:$0xff] %v4677_v28  ;;  %7788 = vst [vmem:[#allocation29_spill] sm:$0xff] %v4682_v59  ;;  %v373_v52 = vsel %vm357_vm12, %v319_v7, %v365_v45  ;;  %v1600_v4 = vmul.f32 %v4677_v28, %v4658_v44  ;;  %v1734_v37 = vmul.f32 %v4682_v59, %v4658_v44  ;;  %v4709_v7 = vld [vmem:[%s7509_s7 + $0x14] ss:$0 sm:$0xff]  ;;  %v4714_v45 = vld [vmem:[%s7509_s7 + $0x18] ss:$0 sm:$0xff] }
 0x179   :  { %7789 = vst [vmem:[#allocation30_spill] sm:$0xff] %v4690_v1  ;;  %7790 = vst [vmem:[#allocation31_spill] sm:$0xff] %v4694_v53  ;;  %v1205_v32 = vmul.f32 %v4640_v15, %v373_v52  ;;  %v1331_v42 = vmul.f32 %v4663_v54, %v373_v52  ;;  %v1465_v60 = vmul.f32 %v4672_v2, %v373_v52  ;;  %v4721_v2 = vld [vmem:[%s7509_s7 + $0x1c] ss:$0 sm:$0xff] }
 0x17a   :  { %v1599_v1 = vmul.f32 %v4677_v28, %v373_v52  ;;  %7791 = vst [vmem:[#allocation32_spill] sm:$0xff] %v4709_v7  ;;  %v3757_v62 = vpop.f32.mrf.mxu1  ;;  %v1733_v53 = vmul.f32 %v4682_v59, %v373_v52  ;;  %v1867_v15 = vmul.f32 %v4709_v7, %v373_v52  ;;  %v1868_v28 = vmul.f32 %v4709_v7, %v4658_v44 }
 0x17b   :  { %v2002_v54 = vmul.f32 %v4714_v45, %v4658_v44  ;;  %v617_v39 = vadd.f32 %v3757_v62, %v4429_v43  ;;  %v4729_v35 = vadd.f32 %v4504_v16, %v1205_v32  ;;  %v2001_v59 = vmul.f32 %v4714_v45, %v373_v52  ;;  %v4748_v62 = vld [vmem:[%s7509_s7 + $0x20] ss:$0 sm:$0xff]  ;;  %v4753_v16 = vld [vmem:[%s7509_s7 + $0x24] ss:$0 sm:$0xff] }
 0x17c   :  { %v2135_v34 = vmul.f32 %v4721_v2, %v373_v52  ;;  %v611_v33 = vpop.f32.mrf.mxu1  ;;  %v4734_v27 = vadd.f32 %v4507_v17, %v1331_v42  ;;  %v4737_v26 = vadd.f32 %v4519_v19, %v1465_v60  ;;  %v4740_v7 = vadd.f32 %v4522_v20, %v1599_v1  ;;  %v4758_v60 = vld [vmem:[%s7509_s7 + $0x28] ss:$0 sm:$0xff]  ;;  %v4767_v19 = vld [vmem:[%s7509_s7 + $0x2c] ss:$0 sm:$0xff] }
 0x17d   :  { %7792 = vst [vmem:[#allocation33_spill] sm:$0xff] %v4729_v35  ;;  %v4743_v23 = vadd.f32 %v4525_v22, %v1733_v53  ;;  %vm635_vm13 = vcmp.gt.f32.partialorder %v617_v39, 0.0  ;;  %v643_v1 = vmul.f32 0.2, %v617_v39  ;;  %v612_v53 = vadd.f32 %v4429_v43, %v611_v33  ;;  %v4776_v33 = vld [vmem:[%s7509_s7 + $0x30] ss:$0 sm:$0xff] }
 0x17e   :  { %7793 = vst [vmem:[#allocation34_spill] sm:$0xff] %v4734_v27  ;;  %7794 = vst [vmem:[#allocation35_spill] sm:$0xff] %v4737_v26  ;;  %v4762_v17 = vadd.f32 %v4543_v29, %v1867_v15  ;;  %v2269_v20 = vmul.f32 %v4748_v62, %v373_v52  ;;  %v2403_v22 = vmul.f32 %v4753_v16, %v373_v52  ;;  %v4796_v35 = vld [vmem:[%s7509_s7 + $0x34] ss:$0 sm:$0xff] }
 0x17f   :  { %7795 = vst [vmem:[#allocation36_spill] sm:$0xff] %v4740_v7  ;;  %7796 = vst [vmem:[#allocation37_spill] sm:$0xff] %v4743_v23  ;;  %v2537_v42 = vmul.f32 %v4758_v60, %v373_v52  ;;  %v2671_v32 = vmul.f32 %v4767_v19, %v373_v52  ;;  %vm634_vm14 = vcmp.gt.f32.partialorder %v612_v53, 0.0  ;;  %v642_v29 = vmul.f32 0.2, %v612_v53 }
 0x180   :  { %7797 = vst [vmem:[#allocation38_spill] sm:$0xff] %v4762_v17  ;;  %v4779_v15 = vadd.f32 %v4546_v5, %v2001_v59  ;;  %v2805_v17 = vmul.f32 %v4776_v33, %v373_v52  ;;  %v4782_v23 = vsel %vm635_vm13, %v617_v39, %v643_v1  ;;  %v4785_v7 = vadd.f32 %v4549_v30, %v2135_v34  ;;  %v4801_v5 = vld [vmem:[%s7509_s7 + $0x38] ss:$0 sm:$0xff] }
 0x181   :  { %7798 = vst [vmem:[#allocation39_spill] sm:$0xff] %v4782_v23  ;;  %v4788_v26 = vadd.f32 %v4552_v31, %v2269_v20  ;;  %v4791_v27 = vadd.f32 %v4571_v10, %v2403_v22  ;;  %v4804_v39 = vadd.f32 %v4579_v40, %v2537_v42  ;;  %v4807_v30 = vadd.f32 %v4582_v25, %v2671_v32  ;;  %v4814_v10 = vld [vmem:[%s7509_s7 + $0x3c] ss:$0 sm:$0xff] }
 0x182   :  { %v2939_v31 = vmul.f32 %v4796_v35, %v373_v52  ;;  %v3073_v34 = vmul.f32 %v4801_v5, %v373_v52  ;;  %v4816_v59 = vsel %vm634_vm14, %v612_v53, %v642_v29  ;;  %v4819_v1 = vadd.f32 %v4585_v41, %v2805_v17 }
 0x183   :  { %7799 = vst [vmem:[#allocation40_spill] sm:$0xff] %v4791_v27  ;;  %7800 = vst [vmem:[#allocation41_spill] sm:$0xff] %v4804_v39  ;;  %v3207_v40 = vmul.f32 %v4814_v10, %v373_v52  ;;  %v4823_v20 = vadd.f32 %v4485_v11, %v1206_v6  ;;  %v4832_v42 = vadd.f32 %v4489_v58, %v1332_v61 }
 0x184   :  { %7801 = vst [vmem:[#allocation42_spill] sm:$0xff] %v4807_v30  ;;  %7802 = vst [vmem:[#allocation43_spill] sm:$0xff] %v4816_v59  ;;  %v4826_v25 = vadd.f32 %v4588_v24, %v2939_v31  ;;  %v4829_v22 = vadd.f32 %v4601_v46, %v3073_v34  ;;  %v4835_v53 = vadd.f32 %v4493_v12, %v1466_v48 }
 0x185   :  { %7803 = vst [vmem:[#allocation44_spill] sm:$0xff] %v4819_v1  ;;  %7804 = vst [vmem:[#allocation45_spill] sm:$0xff] %v4823_v20  ;;  %v4838_v41 = vadd.f32 %v4604_v47, %v3207_v40  ;;  %v4841_v52 = vadd.f32 %v4497_v13, %v1600_v4  ;;  %v4844_v6 = vadd.f32 %v4501_v14, %v1734_v37 }
 0x186   :  { %7805 = vst [vmem:[#allocation46_spill] sm:$0xff] %v4826_v25  ;;  %7806 = vst [vmem:[#allocation47_spill] sm:$0xff] %v4829_v22  ;;  %v2136_v11 = vmul.f32 %v4721_v2, %v4658_v44  ;;  %v2270_v24 = vmul.f32 %v4748_v62, %v4658_v44  ;;  %v2404_v61 = vmul.f32 %v4753_v16, %v4658_v44  ;;  %v7845_v25 = vld [vmem:[#allocation31_spill] sm:$0xff] }
 0x187   :  { %7807 = vst [vmem:[#allocation48_spill] sm:$0xff] %v4832_v42  ;;  %7808 = vst [vmem:[#allocation49_spill] sm:$0xff] %v4835_v53  ;;  %v2538_v58 = vmul.f32 %v4758_v60, %v4658_v44  ;;  %v2672_v12 = vmul.f32 %v4767_v19, %v4658_v44  ;;  %v4857_v4 = vadd.f32 %v4511_v9, %v1868_v28  ;;  %v3738_v47 = vpop.f32.mrf.mxu0 }
 0x188   :  { %7809 = vst [vmem:[#allocation50_spill] sm:$0xff] %v4838_v41  ;;  %7810 = vst [vmem:[#allocation51_spill] sm:$0xff] %v4841_v52  ;;  %v2806_v13 = vmul.f32 %v4776_v33, %v4658_v44  ;;  %v2940_v14 = vmul.f32 %v4796_v35, %v4658_v44  ;;  %v3074_v46 = vmul.f32 %v4801_v5, %v4658_v44  ;;  %v7839_v52 = vld [vmem:[#allocation24_spill] sm:$0xff]  ;;  %v7843_v41 = vld [vmem:[#allocation30_spill] sm:$0xff] }
 0x189   :  { %7811 = vst [vmem:[#allocation52_spill] sm:$0xff] %v4844_v6  ;;  %7812 = vst [vmem:[#allocation53_spill] sm:$0xff] %v4857_v4  ;;  %v4866_v48 = vadd.f32 %v4515_v38, %v2002_v54  ;;  %v4869_v37 = vadd.f32 %v4612_v49, %v2136_v11  ;;  %v4872_v17 = vadd.f32 %v4616_v50, %v2270_v24  ;;  %v328_v54 = vpop.f32.mrf.mxu0 }
 0x18a   :  { %v4875_v9 = vadd.f32 %v4622_v55, %v2404_v61  ;;  %v334_v28 = vadd.f32 %v3738_v47, %v4429_v43  ;;  %v4879_v32 = vadd.f32 %v4626_v56, %v2538_v58  ;;  %v4882_v29 = vadd.f32 %v4630_v57, %v2672_v12  ;;  %v7826_v58 = vld [vmem:[#allocation15_spill] sm:$0xff]  ;;  %v7829_v47 = vld [vmem:[#allocation18_spill] sm:$0xff] }
 0x18b   :  { %7813 = vst [vmem:[#allocation54_spill] sm:$0xff] %v4866_v48  ;;  %7814 = vst [vmem:[#allocation55_spill] sm:$0xff] %v4869_v37  ;;  %v4885_v38 = vadd.f32 %v4635_v8, %v2806_v13  ;;  %v4888_v49 = vadd.f32 %v4644_v18, %v2940_v14  ;;  %v4891_v50 = vadd.f32 %v4648_v21, %v3074_v46  ;;  %v7823_v21 = vld [vmem:[#allocation13_spill] sm:$0xff]  ;;  %v7827_v13 = vld [vmem:[#allocation16_spill] sm:$0xff] }
 0x18c   :  { %7815 = vst [vmem:[#allocation56_spill] sm:$0xff] %v4872_v17  ;;  %7816 = vst [vmem:[#allocation57_spill] sm:$0xff] %v4875_v9  ;;  %v3208_v55 = vmul.f32 %v4814_v10, %v4658_v44  ;;  %v1748_v56 = vmul.f32 %v4462_v63, %v4618_v51  ;;  %vm360_vm15 = vcmp.gt.f32.partialorder %v334_v28, 0.0  ;;  %v368_v31 = vmul.f32 0.2, %v334_v28  ;;  %v7824_v44 = vld [vmem:[#allocation14_spill] sm:$0xff] }
 0x18d   :  { %7817 = vst [vmem:[#allocation58_spill] sm:$0xff] %v4879_v32  ;;  %7818 = vst [vmem:[#allocation59_spill] sm:$0xff] %v4882_v29  ;;  %v329_v57 = vadd.f32 %v4429_v43, %v328_v54  ;;  %v1882_v8 = vmul.f32 %v4467_v0, %v4618_v51  ;;  %v2016_v18 = vmul.f32 %v4476_v3, %v4618_v51  ;;  %v7828_v14 = vld [vmem:[#allocation17_spill] sm:$0xff]  ;;  %v7835_v17 = vld [vmem:[#allocation27_spill] sm:$0xff] }
 0x18e   :  { %7819 = vst [vmem:[#allocation60_spill] sm:$0xff] %v4885_v38  ;;  %7820 = vst [vmem:[#allocation61_spill] sm:$0xff] %v4888_v49  ;;  %v4901_v34 = vadd.f32 %v4652_v36, %v3208_v55  ;;  %v2150_v40 = vmul.f32 %v7823_v21, %v4618_v51  ;;  %v2284_v11 = vmul.f32 %v7824_v44, %v4618_v51  ;;  %v7830_v55 = vld [vmem:[#allocation19_spill] sm:$0xff]  ;;  %v7834_v32 = vld [vmem:[#allocation25_spill] sm:$0xff] }
 0x18f   :  { %7821 = vst [vmem:[#allocation62_spill] sm:$0xff] %v4891_v50  ;;  %v4909_v24 = vsel %vm360_vm15, %v334_v28, %v368_v31  ;;  %vm359_vm1 = vcmp.gt.f32.partialorder %v329_v57, 0.0  ;;  %v367_v61 = vmul.f32 0.2, %v329_v57  ;;  %v2418_v12 = vmul.f32 %v7826_v58, %v4618_v51  ;;  %v7831_v28 = vld [vmem:[#allocation20_spill] sm:$0xff]  ;;  %v7833_v49 = vld [vmem:[#allocation23_spill] sm:$0xff] }
 0x190   :  { %7822 = vst [vmem:[#allocation63_spill] sm:$0xff] %v4901_v34  ;;  %7825 = vst [vmem:[#allocation13_spill] sm:$0xff] %v4909_v24  ;;  %v2552_v36 = vmul.f32 %v7827_v13, %v4618_v51  ;;  %v2686_v46 = vmul.f32 %v7828_v14, %v4618_v51  ;;  %v2820_v54 = vmul.f32 %v7829_v47, %v4618_v51  ;;  %v7832_v34 = vld [vmem:[#allocation21_spill] sm:$0xff]  ;;  %v7836_v47 = vld [vmem:[#allocation28_spill] sm:$0xff]  ;;  %v3760_v4 = vpop.f32.mrf.mxu1 }
 0x191   :  { %v2954_v23 = vmul.f32 %v7830_v55, %v4618_v51  ;;  %v375_v59 = vsel %vm359_vm1, %v329_v57, %v367_v61  ;;  %v3088_v31 = vmul.f32 %v7831_v28, %v4618_v51  ;;  %v3222_v50 = vmul.f32 %v7832_v34, %v4618_v51  ;;  %v7837_v55 = vld [vmem:[#allocation29_spill] sm:$0xff]  ;;  %v7838_v61 = vld [vmem:[#allocation32_spill] sm:$0xff] }
 0x192   :  { %v1208_v38 = vmul.f32 %v7833_v49, %v4909_v24  ;;  %v1207_v29 = vmul.f32 %v7833_v49, %v375_v59  ;;  %v1333_v9 = vmul.f32 %v7834_v32, %v375_v59  ;;  %v1467_v37 = vmul.f32 %v7835_v17, %v375_v59  ;;  %v7841_v49 = vld [vmem:[#allocation26_spill] sm:$0xff]  ;;  %v621_v22 = vpop.f32.mrf.mxu1 }
 0x193   :  { %v1601_v48 = vmul.f32 %v7836_v47, %v375_v59  ;;  %v1735_v57 = vmul.f32 %v7837_v55, %v375_v59  ;;  %v1869_v6 = vmul.f32 %v7838_v61, %v375_v59  ;;  %v2003_v28 = vmul.f32 %v4714_v45, %v375_v59 }
 0x194   :  { %v2137_v51 = vmul.f32 %v4721_v2, %v375_v59  ;;  %v627_v34 = vadd.f32 %v3760_v4, %v4429_v43  ;;  %v4937_v53 = vadd.f32 %v7839_v52, %v1207_v29  ;;  %v4940_v42 = vadd.f32 %v7841_v49, %v1333_v9 }
 0x195   :  { %v4943_v20 = vadd.f32 %v7843_v41, %v1467_v37  ;;  %v4946_v1 = vadd.f32 %v7845_v25, %v1601_v48  ;;  %v4948_v30 = vadd.f32 %v1748_v56, %v1735_v57  ;;  %v4950_v39 = vadd.f32 %v1882_v8, %v1869_v6  ;;  %v7852_v56 = vld [vmem:[#allocation22_spill] sm:$0xff]  ;;  %v7853_v8 = vld [vmem:[#allocation5_spill] sm:$0xff] }
 0x196   :  { %7840 = vst [vmem:[#allocation14_spill] sm:$0xff] %v4937_v53  ;;  %7842 = vst [vmem:[#allocation15_spill] sm:$0xff] %v4940_v42  ;;  %v4952_v27 = vadd.f32 %v2016_v18, %v2003_v28  ;;  %vm637_vm2 = vcmp.gt.f32.partialorder %v627_v34, 0.0  ;;  %v645_v4 = vmul.f32 0.2, %v627_v34  ;;  %v622_v52 = vadd.f32 %v4429_v43, %v621_v22 }
 0x197   :  { %7844 = vst [vmem:[#allocation16_spill] sm:$0xff] %v4943_v20  ;;  %7846 = vst [vmem:[#allocation17_spill] sm:$0xff] %v4946_v1  ;;  %v4955_v29 = vadd.f32 %v2150_v40, %v2137_v51  ;;  %v2271_v9 = vmul.f32 %v4748_v62, %v375_v59  ;;  %v2405_v41 = vmul.f32 %v4753_v16, %v375_v59  ;;  %v5299_v20 = vld [vmem:[%s7510_s8 + $0x2] ss:$0 sm:$0xff] }
 0x198   :  { %7847 = vst [vmem:[#allocation18_spill] sm:$0xff] %v4948_v30  ;;  %7848 = vst [vmem:[#allocation19_spill] sm:$0xff] %v4950_v39  ;;  %v2539_v37 = vmul.f32 %v4758_v60, %v375_v59  ;;  %v2673_v25 = vmul.f32 %v4767_v19, %v375_v59  ;;  %v4961_v48 = vsel %vm637_vm2, %v627_v34, %v645_v4  ;;  %vm636_vm3 = vcmp.gt.f32.partialorder %v622_v52, 0.0  ;;  %v5289_v39 = vld [vmem:[%s7510_s8] ss:$0 sm:$0xff] }
 0x199   :  { %7849 = vst [vmem:[#allocation20_spill] sm:$0xff] %v4952_v27  ;;  %7850 = vst [vmem:[#allocation21_spill] sm:$0xff] %v4955_v29  ;;  %v2807_v6 = vmul.f32 %v4776_v33, %v375_v59  ;;  %v1221_v18 = vmul.f32 %v7853_v8, %v7852_v56  ;;  %v1334_v22 = vmul.f32 %v7834_v32, %v4909_v24  ;;  %v644_v49 = vmul.f32 0.2, %v622_v52  ;;  %v7860_v32 = vld [vmem:[#allocation6_spill] sm:$0xff] }
 0x19a   :  { %7851 = vst [vmem:[#allocation23_spill] sm:$0xff] %v4961_v48  ;;  %v4968_v40 = vadd.f32 %v2284_v11, %v2271_v9  ;;  %v4970_v57 = vadd.f32 %v2418_v12, %v2405_v41  ;;  %v4972_v28 = vadd.f32 %v2552_v36, %v2539_v37  ;;  %v4974_v51 = vadd.f32 %v2686_v46, %v2673_v25 }
 0x19b   :  { %v4976_v34 = vadd.f32 %v2820_v54, %v2807_v6  ;;  %v2941_v33 = vmul.f32 %v4796_v35, %v375_v59  ;;  %v3075_v4 = vmul.f32 %v4801_v5, %v375_v59  ;;  %v3209_v8 = vmul.f32 %v4814_v10, %v375_v59  ;;  %v7863_v54 = vld [vmem:[#allocation7_spill] sm:$0xff]  ;;  %v7866_v59 = vld [vmem:[#allocation9_spill] sm:$0xff] }
 0x19c   :  { %7854 = vst [vmem:[#allocation25_spill] sm:$0xff] %v4968_v40  ;;  %7855 = vst [vmem:[#allocation27_spill] sm:$0xff] %v4970_v57  ;;  %v4981_v48 = vadd.f32 %v1221_v18, %v1208_v38  ;;  %v1347_v11 = vmul.f32 %v7860_v32, %v7852_v56  ;;  %v1468_v12 = vmul.f32 %v7835_v17, %v4909_v24 }
 0x19d   :  { %7856 = vst [vmem:[#allocation28_spill] sm:$0xff] %v4972_v28  ;;  %7857 = vst [vmem:[#allocation29_spill] sm:$0xff] %v4974_v51  ;;  %v4987_v36 = vadd.f32 %v2954_v23, %v2941_v33  ;;  %v4989_v46 = vadd.f32 %v3088_v31, %v3075_v4  ;;  %v1481_v9 = vmul.f32 %v7863_v54, %v7852_v56  ;;  %v3767_v6 = vpop.f32.mrf.mxu0  ;;  %v5037_v4 = vld [vmem:[%s7509_s7 + $0x2] ss:$0 sm:$0xff]  ;;  %v5061_v54 = vld [vmem:[%s7509_s7 + $0xe] ss:$0 sm:$0xff] }
 0x19e   :  { %7858 = vst [vmem:[#allocation32_spill] sm:$0xff] %v4976_v34  ;;  %7859 = vst [vmem:[#allocation24_spill] sm:$0xff] %v4981_v48  ;;  %v1602_v35 = vmul.f32 %v7836_v47, %v4909_v24  ;;  %v4995_v5 = vadd.f32 %v3222_v50, %v3209_v8  ;;  %v4997_v10 = vadd.f32 %v1347_v11, %v1334_v22  ;;  %v7899_v48 = vld [vmem:[#allocation42_spill] sm:$0xff]  ;;  %v5271_v51 = vld [vmem:[%s7509_s7 + $0x1b] ss:$0 sm:$0xff] }
 0x19f   :  { %7861 = vst [vmem:[#allocation26_spill] sm:$0xff] %v4987_v36  ;;  %7862 = vst [vmem:[#allocation30_spill] sm:$0xff] %v4989_v46  ;;  %v1615_v38 = vmul.f32 %v7866_v59, %v7852_v56  ;;  %v1736_v17 = vmul.f32 %v7837_v55, %v4909_v24  ;;  %v5003_v23 = vadd.f32 %v1481_v9, %v1468_v12  ;;  %v864_v33 = vpop.f32.mrf.mxu0  ;;  %v5220_v46 = vld [vmem:[%s7509_s7 + $0x36] ss:$0 sm:$0xff]  ;;  %v5225_v36 = vld [vmem:[%s7509_s7 + $0x3a] ss:$0 sm:$0xff] }
 0x1a0   :  { %7864 = vst [vmem:[#allocation31_spill] sm:$0xff] %v4995_v5  ;;  %7865 = vst [vmem:[#allocation5_spill] sm:$0xff] %v4997_v10  ;;  %v1749_v31 = vmul.f32 %v4462_v63, %v7852_v56  ;;  %v1870_v41 = vmul.f32 %v7838_v61, %v4909_v24  ;;  %v1883_v50 = vmul.f32 %v4467_v0, %v7852_v56  ;;  %v5276_v28 = vld [vmem:[%s7509_s7 + $0x1f] ss:$0 sm:$0xff] }
 0x1a1   :  { %7867 = vst [vmem:[#allocation6_spill] sm:$0xff] %v5003_v23  ;;  %v5011_v47 = vadd.f32 %v1615_v38, %v1602_v35  ;;  %v2004_v37 = vmul.f32 %v4714_v45, %v4909_v24  ;;  %v2017_v25 = vmul.f32 %v4476_v3, %v7852_v56  ;;  %v2138_v55 = vmul.f32 %v4721_v2, %v4909_v24  ;;  %v5159_v23 = vld [vmem:[%s7509_s7 + $0x22] ss:$0 sm:$0xff] }
 0x1a2   :  { %v5019_v18 = vadd.f32 %v1749_v31, %v1736_v17  ;;  %v5021_v63 = vadd.f32 %v1883_v50, %v1870_v41  ;;  %v2151_v61 = vmul.f32 %v7823_v21, %v7852_v56  ;;  %v2272_v0 = vmul.f32 %v4748_v62, %v4909_v24  ;;  %7872 = vst [vmem:[#allocation66_spill] sm:$0xff] %v5037_v4  ;;  %v5042_v62 = vld [vmem:[%s7509_s7 + $0x6] ss:$0 sm:$0xff]  ;;  %v5047_v21 = vld [vmem:[%s7509_s7 + $0xa] ss:$0 sm:$0xff] }
 0x1a3   :  { %7868 = vst [vmem:[#allocation7_spill] sm:$0xff] %v5011_v47  ;;  %v870_v22 = vadd.f32 %v3767_v6, %v4429_v43  ;;  %v5028_v45 = vadd.f32 %v2017_v25, %v2004_v37  ;;  %v2285_v3 = vmul.f32 %v7824_v44, %v7852_v56  ;;  %v2406_v2 = vmul.f32 %v4753_v16, %v4909_v24 }
 0x1a4   :  { %7869 = vst [vmem:[#allocation9_spill] sm:$0xff] %v5019_v18  ;;  %7870 = vst [vmem:[#allocation64_spill] sm:$0xff] %v5021_v63  ;;  %v5049_v44 = vadd.f32 %v2151_v61, %v2138_v55  ;;  %v2419_v16 = vmul.f32 %v7826_v58, %v7852_v56  ;;  %v2540_v8 = vmul.f32 %v4758_v60, %v4909_v24  ;;  %v5071_v60 = vld [vmem:[%s7509_s7 + $0x12] ss:$0 sm:$0xff]  ;;  %v5076_v58 = vld [vmem:[%s7509_s7 + $0x16] ss:$0 sm:$0xff] }
 0x1a5   :  { %7871 = vst [vmem:[#allocation65_spill] sm:$0xff] %v5028_v45  ;;  %7873 = vst [vmem:[#allocation67_spill] sm:$0xff] %v5042_v62  ;;  %v2553_v32 = vmul.f32 %v7827_v13, %v7852_v56  ;;  %vm904_vm4 = vcmp.gt.f32.partialorder %v870_v22, 0.0  ;;  %v912_v11 = vmul.f32 0.2, %v870_v22  ;;  %v865_v12 = vadd.f32 %v4429_v43, %v864_v33  ;;  %v7891_v63 = vld [vmem:[#allocation38_spill] sm:$0xff] }
 0x1a6   :  { %7874 = vst [vmem:[#allocation68_spill] sm:$0xff] %v5047_v21  ;;  %7875 = vst [vmem:[#allocation69_spill] sm:$0xff] %v5049_v44  ;;  %v5063_v9 = vadd.f32 %v2285_v3, %v2272_v0  ;;  %v5066_v35 = vsel %vm636_vm3, %v622_v52, %v644_v49  ;;  %v5081_v13 = vld [vmem:[%s7509_s7 + $0x1a] ss:$0 sm:$0xff]  ;;  %v5083_v59 = vadd.f32 %v2419_v16, %v2406_v2  ;;  %v5138_v2 = vld [vmem:[%s7509_s7 + $0x1e] ss:$0 sm:$0xff]  ;;  %v3783_v33 = vpop.f32.mrf.mxu1 }
 0x1a7   :  { %7876 = vst [vmem:[#allocation70_spill] sm:$0xff] %v5061_v54  ;;  %7878 = vst [vmem:[#allocation72_spill] sm:$0xff] %v5066_v35  ;;  %v5085_v38 = vadd.f32 %v2553_v32, %v2540_v8  ;;  %v5089_v52 = vmul.f32 %v4767_v19, %v4909_v24  ;;  %v5091_v49 = vsel %vm904_vm4, %v870_v22, %v912_v11  ;;  %vm903_vm5 = vcmp.gt.f32.partialorder %v865_v12, 0.0  ;;  %v7890_v44 = vld [vmem:[#allocation37_spill] sm:$0xff] }
 0x1a8   :  { %7877 = vst [vmem:[#allocation71_spill] sm:$0xff] %v5063_v9  ;;  %7879 = vst [vmem:[#allocation73_spill] sm:$0xff] %v5071_v60  ;;  %v911_v17 = vmul.f32 0.2, %v865_v12  ;;  %v5095_v31 = vmul.f32 %v7828_v14, %v7852_v56  ;;  %v5099_v41 = vmul.f32 %v5037_v4, %v5091_v49  ;;  %v5103_v50 = vmul.f32 %v5042_v62, %v5091_v49  ;;  %v7887_v56 = vld [vmem:[#allocation34_spill] sm:$0xff] }
 0x1a9   :  { %7880 = vst [vmem:[#allocation74_spill] sm:$0xff] %v5076_v58  ;;  %7881 = vst [vmem:[#allocation75_spill] sm:$0xff] %v5081_v13  ;;  %v5107_v19 = vmul.f32 %v5047_v21, %v5091_v49  ;;  %v5111_v37 = vmul.f32 %v5061_v54, %v5091_v49  ;;  %v5117_v14 = vmul.f32 %v5071_v60, %v5091_v49 }
 0x1aa   :  { %7882 = vst [vmem:[#allocation76_spill] sm:$0xff] %v5083_v59  ;;  %7883 = vst [vmem:[#allocation77_spill] sm:$0xff] %v5085_v38  ;;  %v5113_v25 = vsel %vm903_vm5, %v865_v12, %v911_v17  ;;  %v5121_v55 = vmul.f32 %v5076_v58, %v5091_v49  ;;  %v5125_v6 = vmul.f32 %v5081_v13, %v5091_v49  ;;  %v7886_v17 = vld [vmem:[#allocation33_spill] sm:$0xff]  ;;  %v1137_v38 = vpop.f32.mrf.mxu1  ;;  %v7889_v59 = vld [vmem:[#allocation36_spill] sm:$0xff] }
 0x1ab   :  { %7884 = vst [vmem:[#allocation78_spill] sm:$0xff] %v5089_v52  ;;  %7885 = vst [vmem:[#allocation79_spill] sm:$0xff] %v5095_v31  ;;  %v1239_v61 = vmul.f32 %v5037_v4, %v5113_v25  ;;  %v1365_v0 = vmul.f32 %v5042_v62, %v5113_v25  ;;  %v1499_v22 = vmul.f32 %v5047_v21, %v5113_v25  ;;  %v7888_v31 = vld [vmem:[#allocation35_spill] sm:$0xff] }
 0x1ac   :  { %v1633_v3 = vmul.f32 %v5061_v54, %v5113_v25  ;;  %v1767_v16 = vmul.f32 %v5071_v60, %v5113_v25  ;;  %v1901_v8 = vmul.f32 %v5076_v58, %v5113_v25  ;;  %v2035_v32 = vmul.f32 %v5081_v13, %v5113_v25  ;;  %7900 = vst [vmem:[#allocation38_spill] sm:$0xff] %v5220_v46  ;;  %v5294_v58 = vld [vmem:[%s7510_s8 + $0x1] ss:$0 sm:$0xff] }
 0x1ad   :  { %v2169_v11 = vmul.f32 %v5138_v2, %v5113_v25  ;;  %v1143_v12 = vadd.f32 %v3783_v33, %v4429_v43  ;;  %v1247_v35 = vadd.f32 %v1239_v61, %v7886_v17  ;;  %v1373_v24 = vadd.f32 %v1365_v0, %v7887_v56  ;;  %v5164_v56 = vld [vmem:[%s7509_s7 + $0x26] ss:$0 sm:$0xff] }
 0x1ae   :  { %v1507_v52 = vadd.f32 %v1499_v22, %v7888_v31  ;;  %v1641_v9 = vadd.f32 %v1633_v3, %v7889_v59  ;;  %v1775_v45 = vadd.f32 %v1767_v16, %v7890_v44  ;;  %v1909_v18 = vadd.f32 %v1901_v8, %v7891_v63  ;;  %v5169_v59 = vld [vmem:[%s7509_s7 + $0x2a] ss:$0 sm:$0xff]  ;;  %v5176_v31 = vld [vmem:[%s7509_s7 + $0x2e] ss:$0 sm:$0xff]  ;;  %v5196_v16 = vld [vmem:[%s7509_s7 + $0x3] ss:$0 sm:$0xff] }
 0x1af   :  { %v2043_v47 = vadd.f32 %v2035_v32, %v4779_v15  ;;  %7892 = vst [vmem:[#allocation33_spill] sm:$0xff] %v5169_v59  ;;  %vm1177_vm6 = vcmp.gt.f32.partialorder %v1143_v12, 0.0  ;;  %v1185_v44 = vmul.f32 0.2, %v1143_v12  ;;  %v1138_v63 = vadd.f32 %v4429_v43, %v1137_v38  ;;  %7893 = vst [vmem:[#allocation34_spill] sm:$0xff] %v5176_v31 }
 0x1b0   :  { %v2177_v15 = vadd.f32 %v2169_v11, %v4785_v7  ;;  %v2303_v61 = vmul.f32 %v5159_v23, %v5113_v25  ;;  %v2437_v0 = vmul.f32 %v5164_v56, %v5113_v25  ;;  %v2571_v22 = vmul.f32 %v5169_v59, %v5113_v25  ;;  %v5189_v7 = vld [vmem:[%s7509_s7 + $0x32] ss:$0 sm:$0xff]  ;;  %7895 = vst [vmem:[#allocation36_spill] sm:$0xff] %v5196_v16  ;;  %v5203_v32 = vld [vmem:[%s7509_s7 + $0x7] ss:$0 sm:$0xff] }
 0x1b1   :  { %v2705_v3 = vmul.f32 %v5176_v31, %v5113_v25  ;;  %7894 = vst [vmem:[#allocation35_spill] sm:$0xff] %v5189_v7  ;;  %v5191_v38 = vsel %vm1177_vm6, %v1143_v12, %v1185_v44  ;;  %vm1176_vm7 = vcmp.gt.f32.partialorder %v1138_v63, 0.0  ;;  %v1184_v33 = vmul.f32 0.2, %v1138_v63  ;;  %7896 = vst [vmem:[#allocation37_spill] sm:$0xff] %v5203_v32  ;;  %v7897_v12 = vld [vmem:[#allocation40_spill] sm:$0xff] }
 0x1b2   :  { %v2839_v8 = vmul.f32 %v5189_v7, %v5113_v25  ;;  %v5206_v11 = vadd.f32 %v2303_v61, %v4788_v26  ;;  %v5209_v17 = vadd.f32 %v2437_v0, %v7897_v12  ;;  %v7898_v44 = vld [vmem:[#allocation41_spill] sm:$0xff]  ;;  %7901 = vst [vmem:[#allocation40_spill] sm:$0xff] %v5225_v36  ;;  %v5232_v61 = vld [vmem:[%s7509_s7 + $0xb] ss:$0 sm:$0xff]  ;;  %v5242_v0 = vld [vmem:[%s7509_s7 + $0x13] ss:$0 sm:$0xff] }
 0x1b3   :  { %v5212_v10 = vadd.f32 %v2571_v22, %v7898_v44  ;;  %v5215_v5 = vadd.f32 %v2705_v3, %v7899_v48  ;;  %v5227_v26 = vsel %vm1176_vm7, %v1138_v63, %v1184_v33  ;;  %7902 = vst [vmem:[#allocation41_spill] sm:$0xff] %v5232_v61  ;;  %v5237_v48 = vld [vmem:[%s7509_s7 + $0xf] ss:$0 sm:$0xff]  ;;  %v7903_v22 = vld [vmem:[#allocation44_spill] sm:$0xff]  ;;  %v5249_v63 = vmul.f32 %v5220_v46, %v5113_v25 }
 0x1b4   :  { %v5245_v3 = vadd.f32 %v2839_v8, %v7903_v22  ;;  %v5253_v33 = vmul.f32 %v5225_v36, %v5113_v25  ;;  %v1260_v12 = vmul.f32 %v5196_v16, %v5227_v26  ;;  %v1386_v44 = vmul.f32 %v5203_v32, %v5227_v26  ;;  %v5266_v22 = vld [vmem:[%s7509_s7 + $0x17] ss:$0 sm:$0xff] }
 0x1b5   :  { %v1520_v34 = vmul.f32 %v5232_v61, %v5227_v26  ;;  %v1654_v8 = vmul.f32 %v5237_v48, %v5227_v26  ;;  %v1788_v57 = vmul.f32 %v5242_v0, %v5227_v26  ;;  %v1922_v40 = vmul.f32 %v5266_v22, %v5227_v26 }
 0x1b6   :  { %v2056_v29 = vmul.f32 %v5271_v51, %v5227_v26  ;;  %v2190_v27 = vmul.f32 %v5276_v28, %v5227_v26  ;;  %v1268_v13 = vadd.f32 %v1260_v12, %v1247_v35  ;;  %v1394_v30 = vadd.f32 %v1386_v44, %v1373_v24  ;;  %v5304_v35 = vld [vmem:[%s7510_s8 + $0x3] ss:$0 sm:$0xff]  ;;  %v5309_v24 = vld [vmem:[%s7510_s8 + $0x4] ss:$0 sm:$0xff] }
 0x1b7   :  { %v1528_v1 = vadd.f32 %v1520_v34, %v1507_v52  ;;  %v1662_v60 = vadd.f32 %v1654_v8, %v1641_v9  ;;  %v1796_v12 = vadd.f32 %v1788_v57, %v1775_v45  ;;  %v1930_v44 = vadd.f32 %v1922_v40, %v1909_v18  ;;  %v5318_v57 = vld [vmem:[%s7510_s8 + $0x5] ss:$0 sm:$0xff]  ;;  %v5323_v45 = vld [vmem:[%s7510_s8 + $0x6] ss:$0 sm:$0xff] }
 0x1b8   :  { %v2064_v54 = vadd.f32 %v2056_v29, %v2043_v47  ;;  %v2198_v34 = vadd.f32 %v2190_v27, %v2177_v15  ;;  %v1281_v9 = vadd.f32 %v5289_v39, %v1268_v13  ;;  %v1407_v52 = vadd.f32 %v5294_v58, %v1394_v30  ;;  %v5328_v27 = vld [vmem:[%s7510_s8 + $0x7] ss:$0 sm:$0xff]  ;;  %v3770_v30 = vpop.f32.mrf.mxu0 }
 0x1b9   :  { %v1541_v8 = vadd.f32 %v5299_v20, %v1528_v1  ;;  %v1675_v42 = vadd.f32 %v5304_v35, %v1662_v60  ;;  %7904 = vst [vmem:[#allocation42_spill] sm:$0xff] %v5328_v27  ;;  %v1809_v1 = vadd.f32 %v5309_v24, %v1796_v12  ;;  %v1943_v29 = vadd.f32 %v5318_v57, %v1930_v44 }
 0x1ba   :  { %v2077_v40 = vadd.f32 %v5323_v45, %v2064_v54  ;;  %v2211_v47 = vadd.f32 %v5328_v27, %v2198_v34  ;;  %v880_v18 = vadd.f32 %v3770_v30, %v4429_v43  ;;  %vm1289_vm8 = vcmp.gt.f32.partialorder %v1281_v9, 0.0  ;;  %v874_v13 = vpop.f32.mrf.mxu0  ;;  %v5339_v54 = vld [vmem:[%s7511_s9] ss:$0 sm:$0xff]  ;;  %v5345_v30 = vld [vmem:[%s7511_s9 + $0x1] ss:$0 sm:$0xff] }
 0x1bb   :  { %v1297_v60 = vmul.f32 0.2, %v1281_v9  ;;  %vm1415_vm9 = vcmp.gt.f32.partialorder %v1407_v52, 0.0  ;;  %v1423_v15 = vmul.f32 0.2, %v1407_v52  ;;  %vm1549_vm10 = vcmp.gt.f32.partialorder %v1541_v8, 0.0 }
 0x1bc   :  { %v1557_v21 = vmul.f32 0.2, %v1541_v8  ;;  %vm1683_vm11 = vcmp.gt.f32.partialorder %v1675_v42, 0.0  ;;  %vm906_vm12 = vcmp.gt.f32.partialorder %v880_v18, 0.0  ;;  %v914_v53 = vmul.f32 0.2, %v880_v18 }
 0x1bd   :  { %v875_v12 = vadd.f32 %v4429_v43, %v874_v13  ;;  %v1305_v62 = vsel %vm1289_vm8, %v1281_v9, %v1297_v60  ;;  %v1431_v34 = vsel %vm1415_vm9, %v1407_v52, %v1423_v15  ;;  %v1691_v36 = vmul.f32 0.2, %v1675_v42  ;;  %v5353_v60 = vld [vmem:[%s7511_s9 + $0x2] ss:$0 sm:$0xff] }
 0x1be   :  { %v1318_v44 = vmul.f32 %v5339_v54, %v1305_v62  ;;  %v1565_v4 = vsel %vm1549_vm10, %v1541_v8, %v1557_v21  ;;  %v5347_v46 = vsel %vm906_vm12, %v880_v18, %v914_v53  ;;  %v1444_v9 = vmul.f32 %v5345_v30, %v1431_v34  ;;  %v5360_v21 = vld [vmem:[%s7511_s9 + $0x3] ss:$0 sm:$0xff]  ;;  %v5368_v34 = vld [vmem:[%s7511_s9 + $0x4] ss:$0 sm:$0xff] }
 0x1bf   :  { %7905 = vst [vmem:[#allocation44_spill] sm:$0xff] %v5347_v46  ;;  %vm905_vm13 = vcmp.gt.f32.partialorder %v875_v12, 0.0  ;;  %v913_v13 = vmul.f32 0.2, %v875_v12  ;;  %v1578_v62 = vmul.f32 %v5353_v60, %v1565_v4  ;;  %v1699_v52 = vsel %vm1683_vm11, %v1675_v42, %v1691_v36  ;;  %v3786_v46 = vpop.f32.mrf.mxu1 }
 0x1c0   :  { %vm1817_vm14 = vcmp.gt.f32.partialorder %v1809_v1, 0.0  ;;  %v1825_v53 = vmul.f32 0.2, %v1809_v1  ;;  %v1452_v18 = vadd.f32 %v1444_v9, %v1318_v44  ;;  %v1712_v15 = vmul.f32 %v5360_v21, %v1699_v52  ;;  %v5374_v44 = vld [vmem:[%s7509_s7 + $0x23] ss:$0 sm:$0xff] }
 0x1c1   :  { %v5362_v8 = vsel %vm905_vm13, %v875_v12, %v913_v13  ;;  %vm1951_vm15 = vcmp.gt.f32.partialorder %v1943_v29, 0.0  ;;  %v1959_v42 = vmul.f32 0.2, %v1943_v29  ;;  %vm2085_vm1 = vcmp.gt.f32.partialorder %v2077_v40, 0.0 }
 0x1c2   :  { %7906 = vst [vmem:[#allocation80_spill] sm:$0xff] %v5362_v8  ;;  %v1833_v4 = vsel %vm1817_vm14, %v1809_v1, %v1825_v53  ;;  %v2093_v36 = vmul.f32 0.2, %v2077_v40  ;;  %v1586_v7 = vadd.f32 %v1578_v62, %v1452_v18  ;;  %vm2219_vm2 = vcmp.gt.f32.partialorder %v2211_v47, 0.0  ;;  %v5380_v1 = vld [vmem:[%s7511_s9 + $0x5] ss:$0 sm:$0xff]  ;;  %v1147_v18 = vpop.f32.mrf.mxu1 }
 0x1c3   :  { %v1846_v31 = vmul.f32 %v5368_v34, %v1833_v4  ;;  %v2227_v12 = vmul.f32 0.2, %v2211_v47  ;;  %v1153_v13 = vadd.f32 %v3786_v46, %v4429_v43  ;;  %v1967_v9 = vsel %vm1951_vm15, %v1943_v29, %v1959_v42  ;;  %v5385_v62 = vld [vmem:[%s7511_s9 + $0x6] ss:$0 sm:$0xff]  ;;  %v5394_v42 = vld [vmem:[%s7511_s9 + $0x7] ss:$0 sm:$0xff] }
 0x1c4   :  { %v2101_v52 = vsel %vm2085_vm1, %v2077_v40, %v2093_v36  ;;  %7907 = vst [vmem:[#allocation81_spill] sm:$0xff] %v5385_v62  ;;  %v2324_v53 = vmul.f32 %v5374_v44, %v5227_v26  ;;  %v1720_v4 = vadd.f32 %v1712_v15, %v1586_v7  ;;  %v1980_v8 = vmul.f32 %v5380_v1, %v1967_v9  ;;  %v5399_v40 = vld [vmem:[%s7509_s7 + $0x27] ss:$0 sm:$0xff] }
 0x1c5   :  { %v2114_v46 = vmul.f32 %v5385_v62, %v2101_v52  ;;  %v2235_v29 = vsel %vm2219_vm2, %v2211_v47, %v2227_v12  ;;  %7908 = vst [vmem:[#allocation82_spill] sm:$0xff] %v5394_v42  ;;  %vm1179_vm3 = vcmp.gt.f32.partialorder %v1153_v13, 0.0  ;;  %v1187_v36 = vmul.f32 0.2, %v1153_v13  ;;  %v5406_v47 = vld [vmem:[%s7509_s7 + $0x2b] ss:$0 sm:$0xff] }
 0x1c6   :  { %v1148_v59 = vadd.f32 %v4429_v43, %v1147_v18  ;;  %v2248_v7 = vmul.f32 %v5394_v42, %v2235_v29  ;;  %7909 = vst [vmem:[#allocation83_spill] sm:$0xff] %v5406_v47  ;;  %v1854_v15 = vadd.f32 %v1846_v31, %v1720_v4  ;;  %v2332_v12 = vadd.f32 %v2324_v53, %v5206_v11  ;;  %v5416_v43 = vld [vmem:[%s7509_s7 + $0x2f] ss:$0 sm:$0xff]  ;;  %v5423_v31 = vld [vmem:[%s7510_s8 + $0x8] ss:$0 sm:$0xff] }
 0x1c7   :  { %v2458_v9 = vmul.f32 %v5399_v40, %v5227_v26  ;;  %v2592_v52 = vmul.f32 %v5406_v47, %v5227_v26  ;;  %7910 = vst [vmem:[#allocation84_spill] sm:$0xff] %v5416_v43  ;;  %v5418_v18 = vsel %vm1179_vm3, %v1153_v13, %v1187_v36  ;;  %7912 = vst [vmem:[#allocation86_spill] sm:$0xff] %v5423_v31  ;;  %v5433_v13 = vld [vmem:[%s7509_s7 + $0x33] ss:$0 sm:$0xff] }
 0x1c8   :  { %7911 = vst [vmem:[#allocation85_spill] sm:$0xff] %v5418_v18  ;;  %vm1178_vm4 = vcmp.gt.f32.partialorder %v1148_v59, 0.0  ;;  %v1186_v29 = vmul.f32 0.2, %v1148_v59  ;;  %v2726_v11 = vmul.f32 %v5416_v43, %v5227_v26  ;;  %v1988_v53 = vadd.f32 %v1980_v8, %v1854_v15  ;;  %7913 = vst [vmem:[#allocation87_spill] sm:$0xff] %v5433_v13  ;;  %v7918_v15 = vld [vmem:[#allocation46_spill] sm:$0xff] }
 0x1c9   :  { %v2345_v4 = vadd.f32 %v5423_v31, %v2332_v12  ;;  %v2466_v42 = vadd.f32 %v2458_v9, %v5209_v17  ;;  %v2600_v62 = vadd.f32 %v2592_v52, %v5212_v10  ;;  %v5440_v18 = vld [vmem:[%s7510_s8 + $0x9] ss:$0 sm:$0xff]  ;;  %v5445_v8 = vld [vmem:[%s7510_s8 + $0xa] ss:$0 sm:$0xff]  ;;  %v5451_v10 = vld [vmem:[%s7510_s8 + $0xb] ss:$0 sm:$0xff]  ;;  %v2981_v12 = vadd.f32 %v5249_v63, %v7918_v15 }
 0x1ca   :  { %v5435_v36 = vsel %vm1178_vm4, %v1148_v59, %v1186_v29  ;;  %7915 = vst [vmem:[#allocation89_spill] sm:$0xff] %v5440_v18  ;;  %7916 = vst [vmem:[#allocation90_spill] sm:$0xff] %v5445_v8  ;;  %v2734_v17 = vadd.f32 %v2726_v11, %v5215_v5  ;;  %v2860_v59 = vmul.f32 %v5433_v13, %v5227_v26  ;;  %v5461_v5 = vld [vmem:[%s7509_s7 + $0x37] ss:$0 sm:$0xff] }
 0x1cb   :  { %7914 = vst [vmem:[#allocation88_spill] sm:$0xff] %v5435_v36  ;;  %7917 = vst [vmem:[#allocation91_spill] sm:$0xff] %v5451_v10  ;;  %v2122_v9 = vadd.f32 %v2114_v46, %v1988_v53  ;;  %vm2353_vm5 = vcmp.gt.f32.partialorder %v2345_v4, 0.0  ;;  %v2361_v52 = vmul.f32 0.2, %v2345_v4  ;;  %v2479_v29 = vadd.f32 %v5440_v18, %v2466_v42 }
 0x1cc   :  { %7919 = vst [vmem:[#allocation46_spill] sm:$0xff] %v5461_v5  ;;  %v2613_v11 = vadd.f32 %v5445_v8, %v2600_v62  ;;  %v2747_v36 = vadd.f32 %v5451_v10, %v2734_v17  ;;  %v2868_v43 = vadd.f32 %v2860_v59, %v5245_v3  ;;  %v2994_v13 = vmul.f32 %v5461_v5, %v5227_v26  ;;  %v5471_v42 = vld [vmem:[%s7511_s9 + $0x8] ss:$0 sm:$0xff]  ;;  %v5477_v3 = vld [vmem:[%s7510_s8 + $0xc] ss:$0 sm:$0xff] }
 0x1cd   :  { %v2256_v63 = vadd.f32 %v2248_v7, %v2122_v9  ;;  %v2369_v46 = vsel %vm2353_vm5, %v2345_v4, %v2361_v52  ;;  %7920 = vst [vmem:[#allocation92_spill] sm:$0xff] %v5471_v42  ;;  %vm2487_vm6 = vcmp.gt.f32.partialorder %v2479_v29, 0.0  ;;  %v2495_v53 = vmul.f32 0.2, %v2479_v29  ;;  %7921 = vst [vmem:[#allocation93_spill] sm:$0xff] %v5477_v3  ;;  %v3773_v52 = vpop.f32.mrf.mxu0 }
 0x1ce   :  { %v2382_v15 = vmul.f32 %v5471_v42, %v2369_v46  ;;  %vm2621_vm7 = vcmp.gt.f32.partialorder %v2613_v11, 0.0  ;;  %v2629_v62 = vmul.f32 0.2, %v2613_v11  ;;  %vm2755_vm8 = vcmp.gt.f32.partialorder %v2747_v36, 0.0  ;;  %v5482_v7 = vld [vmem:[%s7511_s9 + $0x9] ss:$0 sm:$0xff] }
 0x1cf   :  { %v2503_v17 = vsel %vm2487_vm6, %v2479_v29, %v2495_v53  ;;  %7922 = vst [vmem:[#allocation94_spill] sm:$0xff] %v5482_v7  ;;  %v2763_v4 = vmul.f32 0.2, %v2747_v36  ;;  %v2881_v59 = vadd.f32 %v5477_v3, %v2868_v43  ;;  %v3002_v9 = vadd.f32 %v2994_v13, %v2981_v12  ;;  %v5489_v8 = vld [vmem:[%s7511_s9 + $0xa] ss:$0 sm:$0xff]  ;;  %v7924_v29 = vld [vmem:[#allocation47_spill] sm:$0xff] }
 0x1d0   :  { %v2390_v46 = vadd.f32 %v2382_v15, %v2256_v63  ;;  %v2516_v10 = vmul.f32 %v5482_v7, %v2503_v17  ;;  %v2637_v5 = vsel %vm2621_vm7, %v2613_v11, %v2629_v62  ;;  %7923 = vst [vmem:[#allocation95_spill] sm:$0xff] %v5489_v8  ;;  %v3115_v53 = vadd.f32 %v5253_v33, %v7924_v29  ;;  %v5496_v42 = vld [vmem:[%s7508_s6] ss:$0 sm:$0xff]  ;;  %v5504_v11 = vld [vmem:[%s7511_s9 + $0xb] ss:$0 sm:$0xff]  ;;  %v884_v63 = vpop.f32.mrf.mxu0 }
 0x1d1   :  { %v890_v43 = vadd.f32 %v5496_v42, %v3773_v52  ;;  %v2650_v13 = vmul.f32 %v5489_v8, %v2637_v5  ;;  %v2771_v12 = vsel %vm2755_vm8, %v2747_v36, %v2763_v4  ;;  %7925 = vst [vmem:[#allocation47_spill] sm:$0xff] %v5504_v11  ;;  %vm2889_vm9 = vcmp.gt.f32.partialorder %v2881_v59, 0.0  ;;  %v5509_v33 = vld [vmem:[%s7510_s8 + $0xd] ss:$0 sm:$0xff]  ;;  %v5516_v36 = vld [vmem:[%s7509_s7 + $0x3b] ss:$0 sm:$0xff] }
 0x1d2   :  { %7926 = vst [vmem:[#allocation96_spill] sm:$0xff] %v5509_v33  ;;  %v2524_v15 = vadd.f32 %v2516_v10, %v2390_v46  ;;  %v2784_v62 = vmul.f32 %v5504_v11, %v2771_v12  ;;  %v2897_v17 = vmul.f32 0.2, %v2881_v59  ;;  %v3015_v5 = vadd.f32 %v5509_v33, %v3002_v9  ;;  %v5524_v10 = vld [vmem:[%s7511_s9 + $0xc] ss:$0 sm:$0xff]  ;;  %v7936_v11 = vld [vmem:[#allocation49_spill] sm:$0xff] }
 0x1d3   :  { %vm908_vm10 = vcmp.gt.f32.partialorder %v890_v43, 0.0  ;;  %v916_v4 = vmul.f32 0.2, %v890_v43  ;;  %v885_v52 = vadd.f32 %v5496_v42, %v884_v63  ;;  %v3128_v29 = vmul.f32 %v5516_v36, %v5227_v26  ;;  %7927 = vst [vmem:[#allocation97_spill] sm:$0xff] %v5524_v10  ;;  %v5532_v63 = vld [vmem:[%s7509_s7 + $0x3e] ss:$0 sm:$0xff] }
 0x1d4   :  { %v2658_v3 = vadd.f32 %v2650_v13, %v2524_v15  ;;  %v2905_v8 = vsel %vm2889_vm9, %v2881_v59, %v2897_v17  ;;  %vm3023_vm11 = vcmp.gt.f32.partialorder %v3015_v5, 0.0  ;;  %v3031_v9 = vmul.f32 0.2, %v3015_v5  ;;  %v5537_v15 = vld [vmem:[%s7511_s9 + $0xd] ss:$0 sm:$0xff] }
 0x1d5   :  { %v5526_v46 = vsel %vm908_vm10, %v890_v43, %v916_v4  ;;  %vm907_vm12 = vcmp.gt.f32.partialorder %v885_v52, 0.0  ;;  %v915_v12 = vmul.f32 0.2, %v885_v52  ;;  %v2918_v33 = vmul.f32 %v5524_v10, %v2905_v8  ;;  %7929 = vst [vmem:[#allocation99_spill] sm:$0xff] %v5537_v15  ;;  %v5544_v8 = vld [vmem:[%s7509_s7 + $0x3f] ss:$0 sm:$0xff] }
 0x1d6   :  { %7928 = vst [vmem:[#allocation98_spill] sm:$0xff] %v5526_v46  ;;  %v2792_v13 = vadd.f32 %v2784_v62, %v2658_v3  ;;  %v3039_v59 = vsel %vm3023_vm11, %v3015_v5, %v3031_v9  ;;  %v3136_v17 = vadd.f32 %v3128_v29, %v3115_v53  ;;  %v3241_v43 = vmul.f32 %v5532_v63, %v5113_v25  ;;  %v5552_v3 = vld [vmem:[%s7510_s8 + $0xe] ss:$0 sm:$0xff]  ;;  %v7933_v62 = vld [vmem:[#allocation45_spill] sm:$0xff] }
 0x1d7   :  { %7930 = vst [vmem:[#allocation100_spill] sm:$0xff] %v5544_v8  ;;  %v5546_v4 = vsel %vm907_vm12, %v885_v52, %v915_v12  ;;  %v3052_v46 = vmul.f32 %v5537_v15, %v3039_v59  ;;  %7932 = vst [vmem:[#allocation102_spill] sm:$0xff] %v5552_v3  ;;  %v3262_v53 = vmul.f32 %v5544_v8, %v5227_v26  ;;  %v7934_v9 = vld [vmem:[#allocation50_spill] sm:$0xff]  ;;  %v3789_v12 = vpop.f32.mrf.mxu1  ;;  %v7935_v59 = vld [vmem:[#allocation48_spill] sm:$0xff] }
 0x1d8   :  { %7931 = vst [vmem:[#allocation101_spill] sm:$0xff] %v5546_v4  ;;  %v1248_v25 = vadd.f32 %v5099_v41, %v7933_v62  ;;  %v2926_v5 = vadd.f32 %v2918_v33, %v2792_v13  ;;  %v3149_v29 = vadd.f32 %v5552_v3, %v3136_v17  ;;  %v3249_v10 = vadd.f32 %v3241_v43, %v7934_v9  ;;  %v5574_v62 = vld [vmem:[%s7511_s9 + $0xe] ss:$0 sm:$0xff] }
 0x1d9   :  { %v1261_v52 = vmul.f32 %v5196_v16, %v5191_v38  ;;  %v1374_v4 = vadd.f32 %v5103_v50, %v7935_v59  ;;  %v1387_v15 = vmul.f32 %v5203_v32, %v5191_v38  ;;  %v1508_v26 = vadd.f32 %v5107_v19, %v7936_v11  ;;  %v1157_v43 = vpop.f32.mrf.mxu1 }
 0x1da   :  { %v1521_v41 = vmul.f32 %v5232_v61, %v5191_v38  ;;  %v1163_v33 = vadd.f32 %v5496_v42, %v3789_v12  ;;  %v3060_v13 = vadd.f32 %v3052_v46, %v2926_v5  ;;  %vm3157_vm13 = vcmp.gt.f32.partialorder %v3149_v29, 0.0  ;;  %v5580_v46 = vld [vmem:[%s7510_s8 + $0xf] ss:$0 sm:$0xff] }
 0x1db   :  { %v3165_v17 = vmul.f32 0.2, %v3149_v29  ;;  %v3270_v50 = vadd.f32 %v3262_v53, %v3249_v10  ;;  %v1269_v9 = vadd.f32 %v1261_v52, %v1248_v25  ;;  %v1395_v59 = vadd.f32 %v1387_v15, %v1374_v4 }
 0x1dc   :  { %v1529_v32 = vadd.f32 %v1521_v41, %v1508_v26  ;;  %vm1181_vm14 = vcmp.gt.f32.partialorder %v1163_v33, 0.0  ;;  %v1189_v19 = vmul.f32 0.2, %v1163_v33  ;;  %v1158_v11 = vadd.f32 %v5496_v42, %v1157_v43  ;;  %v7939_v43 = vld [vmem:[#allocation51_spill] sm:$0xff] }
 0x1dd   :  { %v3173_v61 = vsel %vm3157_vm13, %v3149_v29, %v3165_v17  ;;  %v3283_v12 = vadd.f32 %v5580_v46, %v3270_v50  ;;  %v1282_v16 = vadd.f32 %v5289_v39, %v1269_v9  ;;  %v1408_v10 = vadd.f32 %v5294_v58, %v1395_v59  ;;  %v5594_v17 = vld [vmem:[%s7511_s9 + $0xf] ss:$0 sm:$0xff] }
 0x1de   :  { %v3186_v5 = vmul.f32 %v5574_v62, %v3173_v61  ;;  %v5586_v15 = vsel %vm1181_vm14, %v1163_v33, %v1189_v19  ;;  %vm1180_vm15 = vcmp.gt.f32.partialorder %v1158_v11, 0.0  ;;  %v1188_v4 = vmul.f32 0.2, %v1158_v11 }
 0x1df   :  { %7937 = vst [vmem:[#allocation45_spill] sm:$0xff] %v5586_v15  ;;  %v1542_v53 = vadd.f32 %v5299_v20, %v1529_v32  ;;  %vm3291_vm1 = vcmp.gt.f32.partialorder %v3283_v12, 0.0  ;;  %v3299_v29 = vmul.f32 0.2, %v3283_v12  ;;  %vm1290_vm2 = vcmp.gt.f32.partialorder %v1282_v16, 0.0 }
 0x1e0   :  { %v3194_v25 = vadd.f32 %v3186_v5, %v3060_v13  ;;  %v5589_v52 = vsel %vm1180_vm15, %v1158_v11, %v1188_v4  ;;  %v1298_v26 = vmul.f32 0.2, %v1282_v16  ;;  %vm1416_vm3 = vcmp.gt.f32.partialorder %v1408_v10, 0.0 }
 0x1e1   :  { %7938 = vst [vmem:[#allocation50_spill] sm:$0xff] %v5589_v52  ;;  %v1424_v61 = vmul.f32 0.2, %v1408_v10  ;;  %v3307_v41 = vsel %vm3291_vm1, %v3283_v12, %v3299_v29  ;;  %vm1550_vm4 = vcmp.gt.f32.partialorder %v1542_v53, 0.0  ;;  %v1558_v33 = vmul.f32 0.2, %v1542_v53 }
 0x1e2   :  { %v1642_v32 = vadd.f32 %v5111_v37, %v7939_v43  ;;  %v3320_v13 = vmul.f32 %v5594_v17, %v3307_v41  ;;  %v1306_v50 = vsel %vm1290_vm2, %v1282_v16, %v1298_v26  ;;  %v1655_v59 = vmul.f32 %v5237_v48, %v5191_v38  ;;  %v7940_v12 = vld [vmem:[#allocation52_spill] sm:$0xff]  ;;  %v5611_v16 = vld [vmem:[%s7512_s10] ss:$0 sm:$0xff] }
 0x1e3   :  { %v1432_v9 = vsel %vm1416_vm3, %v1408_v10, %v1424_v61  ;;  %v1319_v19 = vmul.f32 %v5339_v54, %v1306_v50  ;;  %v1566_v5 = vsel %vm1550_vm4, %v1542_v53, %v1558_v33  ;;  %v1776_v4 = vadd.f32 %v5117_v14, %v7940_v12  ;;  %v7941_v26 = vld [vmem:[#allocation53_spill] sm:$0xff]  ;;  %v7942_v14 = vld [vmem:[#allocation54_spill] sm:$0xff] }
 0x1e4   :  { %v1445_v11 = vmul.f32 %v5345_v30, %v1432_v9  ;;  %v3328_v29 = vadd.f32 %v3320_v13, %v3194_v25  ;;  %v1579_v15 = vmul.f32 %v5353_v60, %v1566_v5  ;;  %v1663_v52 = vadd.f32 %v1655_v59, %v1642_v32  ;;  %v7943_v5 = vld [vmem:[#allocation55_spill] sm:$0xff] }
 0x1e5   :  { %v1789_v37 = vmul.f32 %v5242_v0, %v5191_v38  ;;  %v1910_v61 = vadd.f32 %v5121_v55, %v7941_v26  ;;  %v1923_v53 = vmul.f32 %v5266_v22, %v5191_v38  ;;  %v2044_v25 = vadd.f32 %v5125_v6, %v7942_v14 }
 0x1e6   :  { %v1453_v10 = vadd.f32 %v1445_v11, %v1319_v19  ;;  %v3343_v41 = vadd.f32 %v5611_v16, %v3328_v29  ;;  %v1676_v33 = vadd.f32 %v5304_v35, %v1663_v52  ;;  %v2057_v32 = vmul.f32 %v5271_v51, %v5191_v38 }
 0x1e7   :  { %v1797_v43 = vadd.f32 %v1789_v37, %v1776_v4  ;;  %v1931_v50 = vadd.f32 %v1923_v53, %v1910_v61  ;;  %v2170_v9 = vmul.f32 %v5138_v2, %v5091_v49  ;;  %v2191_v55 = vmul.f32 %v5276_v28, %v5191_v38 }
 0x1e8   :  { %v1587_v13 = vadd.f32 %v1579_v15, %v1453_v10  ;;  %vm3351_vm5 = vcmp.gt.f32.partialorder %v3343_v41, 0.0  ;;  %v3359_v59 = vmul.f32 0.2, %v3343_v41  ;;  %vm1684_vm6 = vcmp.gt.f32.partialorder %v1676_v33, 0.0 }
 0x1e9   :  { %v1692_v6 = vmul.f32 0.2, %v1676_v33  ;;  %v1810_v19 = vadd.f32 %v5309_v24, %v1797_v43  ;;  %v1944_v52 = vadd.f32 %v5318_v57, %v1931_v50  ;;  %v2065_v11 = vadd.f32 %v2057_v32, %v2044_v25  ;;  %v7944_v25 = vld [vmem:[#allocation56_spill] sm:$0xff] }
 0x1ea   :  { %v2178_v12 = vadd.f32 %v2170_v9, %v7943_v5  ;;  %v3367_v4 = vsel %vm3351_vm5, %v3343_v41, %v3359_v59  ;;  %v2304_v29 = vmul.f32 %v5159_v23, %v5091_v49  ;;  %v2325_v37 = vmul.f32 %v5374_v44, %v5191_v38 }
 0x1eb   :  { %v1700_v15 = vsel %vm1684_vm6, %v1676_v33, %v1692_v6  ;;  %3797 = vmatprep.mubr.msk.f32.mxu0 %vm227_vm0, %v3367_v4  ;;  %vm1818_vm7 = vcmp.gt.f32.partialorder %v1810_v19, 0.0  ;;  %v1826_v26 = vmul.f32 0.2, %v1810_v19  ;;  %vm1952_vm8 = vcmp.gt.f32.partialorder %v1944_v52, 0.0 }
 0x1ec   :  { %v1713_v10 = vmul.f32 %v5360_v21, %v1700_v15  ;;  %v1960_v61 = vmul.f32 0.2, %v1944_v52  ;;  %v2078_v53 = vadd.f32 %v5323_v45, %v2065_v11  ;;  %v2199_v14 = vadd.f32 %v2191_v55, %v2178_v12  ;;  %v7945_v12 = vld [vmem:[#allocation57_spill] sm:$0xff] }
 0x1ed   :  { %v2312_v41 = vadd.f32 %v2304_v29, %v7944_v25  ;;  %v1834_v43 = vsel %vm1818_vm7, %v1810_v19, %v1826_v26  ;;  %v2438_v32 = vmul.f32 %v5164_v56, %v5091_v49  ;;  %v2459_v50 = vmul.f32 %v5399_v40, %v5191_v38  ;;  %v7946_v15 = vld [vmem:[#allocation33_spill] sm:$0xff] }
 0x1ee   :  { %v1721_v33 = vadd.f32 %v1713_v10, %v1587_v13  ;;  %v1847_v9 = vmul.f32 %v5368_v34, %v1834_v43  ;;  %v1968_v59 = vsel %vm1952_vm8, %v1944_v52, %v1960_v61  ;;  %vm2086_vm9 = vcmp.gt.f32.partialorder %v2078_v53, 0.0  ;;  %v7947_v26 = vld [vmem:[#allocation81_spill] sm:$0xff] }
 0x1ef   :  { %v2094_v6 = vmul.f32 0.2, %v2078_v53  ;;  %v1981_v5 = vmul.f32 %v5380_v1, %v1968_v59  ;;  %v2212_v11 = vadd.f32 %v5328_v27, %v2199_v14  ;;  %v2333_v55 = vadd.f32 %v2325_v37, %v2312_v41  ;;  %v7948_v14 = vld [vmem:[#allocation58_spill] sm:$0xff] }
 0x1f0   :  { %v2446_v4 = vadd.f32 %v2438_v32, %v7945_v12  ;;  %v1855_v13 = vadd.f32 %v1847_v9, %v1721_v33  ;;  %v2572_v29 = vmul.f32 %v7946_v15, %v5091_v49  ;;  %v2593_v10 = vmul.f32 %v5406_v47, %v5191_v38  ;;  %v7949_v41 = vld [vmem:[#allocation34_spill] sm:$0xff]  ;;  %v7950_v9 = vld [vmem:[#allocation84_spill] sm:$0xff] }
 0x1f1   :  { %v2102_v19 = vsel %vm2086_vm9, %v2078_v53, %v2094_v6  ;;  %vm2220_vm10 = vcmp.gt.f32.partialorder %v2212_v11, 0.0  ;;  %v2228_v52 = vmul.f32 0.2, %v2212_v11  ;;  %v2346_v61 = vadd.f32 %v5423_v31, %v2333_v55  ;;  %v7951_v27 = vld [vmem:[#allocation82_spill] sm:$0xff] }
 0x1f2   :  { %v2115_v25 = vmul.f32 %v7947_v26, %v2102_v19  ;;  %v1989_v43 = vadd.f32 %v1981_v5, %v1855_v13  ;;  %v2467_v59 = vadd.f32 %v2459_v50, %v2446_v4  ;;  %v2580_v37 = vadd.f32 %v2572_v29, %v7948_v14  ;;  %v7952_v5 = vld [vmem:[#allocation59_spill] sm:$0xff]  ;;  %v7955_v14 = vld [vmem:[#allocation92_spill] sm:$0xff] }
 0x1f3   :  { %v2706_v33 = vmul.f32 %v7949_v41, %v5091_v49  ;;  %v2236_v53 = vsel %vm2220_vm10, %v2212_v11, %v2228_v52  ;;  %vm2354_vm11 = vcmp.gt.f32.partialorder %v2346_v61, 0.0  ;;  %v2362_v32 = vmul.f32 0.2, %v2346_v61  ;;  %v7953_v4 = vld [vmem:[#allocation35_spill] sm:$0xff] }
 0x1f4   :  { %v2727_v6 = vmul.f32 %v7950_v9, %v5191_v38  ;;  %v2123_v12 = vadd.f32 %v2115_v25, %v1989_v43  ;;  %v2249_v19 = vmul.f32 %v7951_v27, %v2236_v53  ;;  %v2480_v26 = vadd.f32 %v5440_v18, %v2467_v59  ;;  %v7954_v29 = vld [vmem:[#allocation87_spill] sm:$0xff]  ;;  %v7956_v25 = vld [vmem:[#allocation90_spill] sm:$0xff]  ;;  %v7957_v27 = vld [vmem:[#allocation60_spill] sm:$0xff] }
 0x1f5   :  { %v2601_v47 = vadd.f32 %v2593_v10, %v2580_v37  ;;  %v2370_v55 = vsel %vm2354_vm11, %v2346_v61, %v2362_v32  ;;  %v2714_v50 = vadd.f32 %v2706_v33, %v7952_v5  ;;  %v2840_v13 = vmul.f32 %v7953_v4, %v5091_v49  ;;  %v7958_v10 = vld [vmem:[#allocation38_spill] sm:$0xff] }
 0x1f6   :  { %v2861_v11 = vmul.f32 %v7954_v29, %v5191_v38  ;;  %v2257_v52 = vadd.f32 %v2249_v19, %v2123_v12  ;;  %v2383_v31 = vmul.f32 %v7955_v14, %v2370_v55  ;;  %vm2488_vm12 = vcmp.gt.f32.partialorder %v2480_v26, 0.0  ;;  %v7959_v32 = vld [vmem:[#allocation46_spill] sm:$0xff]  ;;  %v7960_v29 = vld [vmem:[#allocation40_spill] sm:$0xff]  ;;  %v7961_v14 = vld [vmem:[#allocation91_spill] sm:$0xff] }
 0x1f7   :  { %v2496_v9 = vmul.f32 0.2, %v2480_v26  ;;  %v2614_v43 = vadd.f32 %v7956_v25, %v2601_v47  ;;  %v2735_v53 = vadd.f32 %v2727_v6, %v2714_v50  ;;  %v2848_v59 = vadd.f32 %v2840_v13, %v7957_v27  ;;  %v3776_v6 = vpop.f32.mrf.mxu0  ;;  %v7962_v27 = vld [vmem:[#allocation61_spill] sm:$0xff]  ;;  %v7963_v25 = vld [vmem:[#allocation62_spill] sm:$0xff] }
 0x1f8   :  { %v2974_v61 = vmul.f32 %v7958_v10, %v5091_v49  ;;  %v2391_v37 = vadd.f32 %v2383_v31, %v2257_v52  ;;  %v2995_v5 = vmul.f32 %v7959_v32, %v5191_v38  ;;  %v3108_v12 = vmul.f32 %v7960_v29, %v5091_v49  ;;  %v7964_v29 = vld [vmem:[#allocation95_spill] sm:$0xff] }
 0x1f9   :  { %v2504_v33 = vsel %vm2488_vm12, %v2480_v26, %v2496_v9  ;;  %vm2622_vm13 = vcmp.gt.f32.partialorder %v2614_v43, 0.0  ;;  %v2630_v55 = vmul.f32 0.2, %v2614_v43  ;;  %v2748_v47 = vadd.f32 %v7961_v14, %v2735_v53 }
 0x1fa   :  { %v2517_v19 = vmul.f32 %v5482_v7, %v2504_v33  ;;  %v2869_v50 = vadd.f32 %v2861_v11, %v2848_v59  ;;  %v2982_v13 = vadd.f32 %v2974_v61, %v7962_v27  ;;  %v3116_v10 = vadd.f32 %v3108_v12, %v7963_v25  ;;  %v7965_v33 = vld [vmem:[#allocation93_spill] sm:$0xff]  ;;  %v894_v61 = vpop.f32.mrf.mxu0  ;;  %v7966_v12 = vld [vmem:[#allocation47_spill] sm:$0xff]  ;;  %v7967_v27 = vld [vmem:[#allocation96_spill] sm:$0xff] }
 0x1fb   :  { %v3129_v31 = vmul.f32 %v5516_v36, %v5191_v38  ;;  %v2638_v9 = vsel %vm2622_vm13, %v2614_v43, %v2630_v55  ;;  %vm2756_vm14 = vcmp.gt.f32.partialorder %v2748_v47, 0.0  ;;  %v2764_v52 = vmul.f32 0.2, %v2748_v47 }
 0x1fc   :  { %v2525_v26 = vadd.f32 %v2517_v19, %v2391_v37  ;;  %v2651_v32 = vmul.f32 %v7964_v29, %v2638_v9  ;;  %v2882_v7 = vadd.f32 %v7965_v33, %v2869_v50  ;;  %v3003_v18 = vadd.f32 %v2995_v5, %v2982_v13  ;;  %v3792_v37 = vpop.f32.mrf.mxu1 }
 0x1fd   :  { %v3137_v4 = vadd.f32 %v3129_v31, %v3116_v10  ;;  %v2772_v53 = vsel %vm2756_vm14, %v2748_v47, %v2764_v52  ;;  %v3242_v11 = vmul.f32 %v5532_v63, %v5091_v49  ;;  %v3263_v25 = vmul.f32 %v5544_v8, %v5191_v38  ;;  %v7968_v47 = vld [vmem:[#allocation63_spill] sm:$0xff] }
 0x1fe   :  { %v900_v59 = vadd.f32 %v5496_v42, %v3776_v6  ;;  %v2659_v43 = vadd.f32 %v2651_v32, %v2525_v26  ;;  %v2785_v19 = vmul.f32 %v7966_v12, %v2772_v53  ;;  %vm2890_vm15 = vcmp.gt.f32.partialorder %v2882_v7, 0.0  ;;  %v7969_v6 = vld [vmem:[#allocation97_spill] sm:$0xff]  ;;  %v1167_v26 = vpop.f32.mrf.mxu1 }
 0x1ff   :  { %v2898_v55 = vmul.f32 0.2, %v2882_v7  ;;  %v3016_v50 = vadd.f32 %v7967_v27, %v3003_v18  ;;  %v3150_v5 = vadd.f32 %v5552_v3, %v3137_v4  ;;  %v3250_v13 = vadd.f32 %v3242_v11, %v7968_v47 }
 0x200   :  { %vm910_vm1 = vcmp.gt.f32.partialorder %v900_v59, 0.0  ;;  %v2793_v49 = vadd.f32 %v2785_v19, %v2659_v43  ;;  %v918_v31 = vmul.f32 0.2, %v900_v59  ;;  %v895_v38 = vadd.f32 %v5496_v42, %v894_v61 }
 0x201   :  { %v2906_v10 = vsel %vm2890_vm15, %v2882_v7, %v2898_v55  ;;  %vm3024_vm2 = vcmp.gt.f32.partialorder %v3016_v50, 0.0  ;;  %v3032_v32 = vmul.f32 0.2, %v3016_v50  ;;  %vm3158_vm3 = vcmp.gt.f32.partialorder %v3150_v5, 0.0  ;;  %v7971_v7 = vld [vmem:[#allocation99_spill] sm:$0xff] }
 0x202   :  { %v2919_v9 = vmul.f32 %v7969_v6, %v2906_v10  ;;  %v3166_v52 = vmul.f32 0.2, %v3150_v5  ;;  %v3271_v53 = vadd.f32 %v3263_v25, %v3250_v13  ;;  %v5692_v8 = vsel %vm910_vm1, %v900_v59, %v918_v31  ;;  %v7975_v31 = vld [vmem:[#allocation66_spill] sm:$0xff] }
 0x203   :  { %7970 = vst [vmem:[#allocation48_spill] sm:$0xff] %v5692_v8  ;;  %vm909_vm4 = vcmp.gt.f32.partialorder %v895_v38, 0.0  ;;  %v3040_v4 = vsel %vm3024_vm2, %v3016_v50, %v3032_v32  ;;  %v917_v11 = vmul.f32 0.2, %v895_v38  ;;  %v1173_v43 = vadd.f32 %v5496_v42, %v3792_v37  ;;  %v7977_v32 = vld [vmem:[#allocation36_spill] sm:$0xff] }
 0x204   :  { %v2927_v18 = vadd.f32 %v2919_v9, %v2793_v49  ;;  %v3053_v19 = vmul.f32 %v7971_v7, %v3040_v4  ;;  %v3174_v55 = vsel %vm3158_vm3, %v3150_v5, %v3166_v52  ;;  %v3284_v61 = vadd.f32 %v5580_v46, %v3271_v53  ;;  %v7974_v49 = vld [vmem:[#allocation80_spill] sm:$0xff]  ;;  %v7979_v4 = vld [vmem:[#allocation37_spill] sm:$0xff] }
 0x205   :  { %v1168_v47 = vadd.f32 %v5496_v42, %v1167_v26  ;;  %v3187_v10 = vmul.f32 %v5574_v62, %v3174_v55  ;;  %v5699_v3 = vsel %vm909_vm4, %v895_v38, %v917_v11  ;;  %vm1183_vm5 = vcmp.gt.f32.partialorder %v1173_v43, 0.0  ;;  %v7976_v9 = vld [vmem:[#allocation88_spill] sm:$0xff]  ;;  %v7978_v38 = vld [vmem:[#allocation67_spill] sm:$0xff] }
 0x206   :  { %7972 = vst [vmem:[#allocation49_spill] sm:$0xff] %v5699_v3  ;;  %v1191_v25 = vmul.f32 0.2, %v1173_v43  ;;  %v3061_v59 = vadd.f32 %v3053_v19, %v2927_v18  ;;  %vm3292_vm6 = vcmp.gt.f32.partialorder %v3284_v61, 0.0  ;;  %v3300_v13 = vmul.f32 0.2, %v3284_v61 }
 0x207   :  { %vm1182_vm7 = vcmp.gt.f32.partialorder %v1168_v47, 0.0  ;;  %v1190_v37 = vmul.f32 0.2, %v1168_v47  ;;  %v1241_v5 = vmul.f32 %v7975_v31, %v7974_v49  ;;  %v1262_v52 = vmul.f32 %v7977_v32, %v7976_v9 }
 0x208   :  { %v5701_v50 = vsel %vm1183_vm5, %v1173_v43, %v1191_v25  ;;  %v3195_v42 = vadd.f32 %v3187_v10, %v3061_v59  ;;  %v3308_v26 = vsel %vm3292_vm6, %v3284_v61, %v3300_v13  ;;  %v1367_v53 = vmul.f32 %v7978_v38, %v7974_v49  ;;  %v7981_v43 = vld [vmem:[#allocation14_spill] sm:$0xff]  ;;  %v7982_v25 = vld [vmem:[#allocation68_spill] sm:$0xff]  ;;  %v7984_v10 = vld [vmem:[#allocation41_spill] sm:$0xff] }
 0x209   :  { %7973 = vst [vmem:[#allocation51_spill] sm:$0xff] %v5701_v50  ;;  %v1388_v18 = vmul.f32 %v7979_v4, %v7976_v9  ;;  %v3321_v11 = vmul.f32 %v5594_v17, %v3308_v26  ;;  %v5712_v19 = vsel %vm1182_vm7, %v1168_v47, %v1190_v37  ;;  %v1249_v55 = vadd.f32 %v1241_v5, %v7981_v43  ;;  %v7983_v50 = vld [vmem:[#allocation15_spill] sm:$0xff]  ;;  %v7985_v59 = vld [vmem:[#allocation70_spill] sm:$0xff]  ;;  %v7986_v47 = vld [vmem:[#allocation16_spill] sm:$0xff] }
 0x20a   :  { %7980 = vst [vmem:[#allocation52_spill] sm:$0xff] %v5712_v19  ;;  %v1501_v31 = vmul.f32 %v7982_v25, %v7974_v49  ;;  %v1375_v8 = vadd.f32 %v1367_v53, %v7983_v50  ;;  %v1522_v61 = vmul.f32 %v7984_v10, %v7976_v9  ;;  %v1635_v13 = vmul.f32 %v7985_v59, %v7974_v49  ;;  %v7987_v5 = vld [vmem:[#allocation73_spill] sm:$0xff]  ;;  %v7989_v53 = vld [vmem:[#allocation74_spill] sm:$0xff] }
 0x20b   :  { %v1656_v32 = vmul.f32 %v5237_v48, %v7976_v9  ;;  %v3329_v38 = vadd.f32 %v3321_v11, %v3195_v42  ;;  %v1270_v26 = vadd.f32 %v1262_v52, %v1249_v55  ;;  %v1769_v4 = vmul.f32 %v7987_v5, %v7974_v49  ;;  %v7988_v25 = vld [vmem:[#allocation17_spill] sm:$0xff]  ;;  %v7990_v52 = vld [vmem:[#allocation18_spill] sm:$0xff] }
 0x20c   :  { %v1509_v37 = vadd.f32 %v1501_v31, %v7986_v47  ;;  %v1396_v43 = vadd.f32 %v1388_v18, %v1375_v8  ;;  %v1643_v19 = vadd.f32 %v1635_v13, %v7988_v25  ;;  %v1790_v50 = vmul.f32 %v5242_v0, %v7976_v9  ;;  %v7991_v47 = vld [vmem:[#allocation19_spill] sm:$0xff] }
 0x20d   :  { %v1903_v10 = vmul.f32 %v7989_v53, %v7974_v49  ;;  %v3344_v59 = vadd.f32 %v5611_v16, %v3329_v38  ;;  %v1283_v48 = vadd.f32 %v5289_v39, %v1270_v26  ;;  %v1777_v11 = vadd.f32 %v1769_v4, %v7990_v52  ;;  %v7992_v53 = vld [vmem:[#allocation75_spill] sm:$0xff] }
 0x20e   :  { %v1530_v42 = vadd.f32 %v1522_v61, %v1509_v37  ;;  %v1409_v55 = vadd.f32 %v5294_v58, %v1396_v43  ;;  %v1664_v31 = vadd.f32 %v1656_v32, %v1643_v19  ;;  %v1924_v18 = vmul.f32 %v5266_v22, %v7976_v9 }
 0x20f   :  { %v1911_v8 = vadd.f32 %v1903_v10, %v7991_v47  ;;  %vm3352_vm8 = vcmp.gt.f32.partialorder %v3344_v59, 0.0  ;;  %v3360_v0 = vmul.f32 0.2, %v3344_v59  ;;  %vm1291_vm9 = vcmp.gt.f32.partialorder %v1283_v48, 0.0 }
 0x210   :  { %v1299_v13 = vmul.f32 0.2, %v1283_v48  ;;  %vm1417_vm10 = vcmp.gt.f32.partialorder %v1409_v55, 0.0  ;;  %v1425_v5 = vmul.f32 0.2, %v1409_v55  ;;  %v1543_v38 = vadd.f32 %v5299_v20, %v1530_v42 }
 0x211   :  { %v1677_v39 = vadd.f32 %v5304_v35, %v1664_v31  ;;  %v3368_v61 = vsel %vm3352_vm8, %v3344_v59, %v3360_v0  ;;  %v1798_v37 = vadd.f32 %v1790_v50, %v1777_v11  ;;  %v1932_v58 = vadd.f32 %v1924_v18, %v1911_v8  ;;  %v7993_v11 = vld [vmem:[#allocation20_spill] sm:$0xff] }
 0x212   :  { %v1307_v26 = vsel %vm1291_vm9, %v1283_v48, %v1299_v13  ;;  %3798 = vmatmul.mubr.msk.f32.vlgmr.msra.gmra.mxu0 %vm227_vm0, %v3368_v61  ;;  %v1433_v32 = vsel %vm1417_vm10, %v1409_v55, %v1425_v5  ;;  %vm1551_vm11 = vcmp.gt.f32.partialorder %v1543_v38, 0.0  ;;  %v1559_v22 = vmul.f32 0.2, %v1543_v38  ;;  %v7994_v5 = vld [vmem:[#allocation21_spill] sm:$0xff] }
 0x213   :  { %v1320_v19 = vmul.f32 %v5339_v54, %v1307_v26  ;;  %v1446_v4 = vmul.f32 %v5345_v30, %v1433_v32  ;;  %vm1685_vm12 = vcmp.gt.f32.partialorder %v1677_v39, 0.0  ;;  %v1693_v43 = vmul.f32 0.2, %v1677_v39 }
 0x214   :  { %v1811_v25 = vadd.f32 %v5309_v24, %v1798_v37  ;;  %v1567_v20 = vsel %vm1551_vm11, %v1543_v38, %v1559_v22  ;;  %v1945_v35 = vadd.f32 %v5318_v57, %v1932_v58  ;;  %v2037_v50 = vmul.f32 %v7992_v53, %v7974_v49  ;;  %v8001_v53 = vld [vmem:[#allocation29_spill] sm:$0xff] }
 0x215   :  { %v2058_v10 = vmul.f32 %v5271_v51, %v7976_v9  ;;  %v1454_v59 = vadd.f32 %v1446_v4, %v1320_v19  ;;  %v1580_v54 = vmul.f32 %v5353_v60, %v1567_v20  ;;  %v1701_v48 = vsel %vm1685_vm12, %v1677_v39, %v1693_v43  ;;  %v7997_v19 = vld [vmem:[#allocation27_spill] sm:$0xff]  ;;  %v8000_v20 = vld [vmem:[#allocation86_spill] sm:$0xff] }
 0x216   :  { %vm1819_vm13 = vcmp.gt.f32.partialorder %v1811_v25, 0.0  ;;  %v1714_v30 = vmul.f32 %v5360_v21, %v1701_v48  ;;  %v1827_v42 = vmul.f32 0.2, %v1811_v25  ;;  %vm1953_vm14 = vcmp.gt.f32.partialorder %v1945_v35, 0.0 }
 0x217   :  { %v1961_v52 = vmul.f32 0.2, %v1945_v35  ;;  %v1588_v24 = vadd.f32 %v1580_v54, %v1454_v59  ;;  %v2045_v55 = vadd.f32 %v2037_v50, %v7993_v11  ;;  %v2171_v57 = vmul.f32 %v5138_v2, %v7974_v49  ;;  %v7995_v2 = vld [vmem:[#allocation25_spill] sm:$0xff]  ;;  %v8002_v54 = vld [vmem:[#allocation84_spill] sm:$0xff] }
 0x218   :  { %v2192_v31 = vmul.f32 %v5276_v28, %v7976_v9  ;;  %v1835_v51 = vsel %vm1819_vm13, %v1811_v25, %v1827_v42  ;;  %v2305_v60 = vmul.f32 %v5159_v23, %v7974_v49  ;;  %v2326_v21 = vmul.f32 %v5374_v44, %v7976_v9  ;;  %v7999_v25 = vld [vmem:[#allocation42_spill] sm:$0xff]  ;;  %v8004_v42 = vld [vmem:[#allocation81_spill] sm:$0xff] }
 0x219   :  { %v1969_v47 = vsel %vm1953_vm14, %v1945_v35, %v1961_v52  ;;  %v1722_v8 = vadd.f32 %v1714_v30, %v1588_v24  ;;  %v1848_v18 = vmul.f32 %v5368_v34, %v1835_v51  ;;  %v2066_v13 = vadd.f32 %v2058_v10, %v2045_v55  ;;  %v7996_v34 = vld [vmem:[#allocation83_spill] sm:$0xff]  ;;  %v8005_v55 = vld [vmem:[#allocation89_spill] sm:$0xff] }
 0x21a   :  { %v1982_v0 = vmul.f32 %v5380_v1, %v1969_v47  ;;  %v2179_v38 = vadd.f32 %v2171_v57, %v7994_v5  ;;  %v2313_v39 = vadd.f32 %v2305_v60, %v7995_v2  ;;  %v2439_v28 = vmul.f32 %v5164_v56, %v7974_v49  ;;  %v8003_v30 = vld [vmem:[#allocation35_spill] sm:$0xff]  ;;  %v8009_v5 = vld [vmem:[#allocation82_spill] sm:$0xff] }
 0x21b   :  { %v2460_v61 = vmul.f32 %v5399_v40, %v7976_v9  ;;  %v1856_v23 = vadd.f32 %v1848_v18, %v1722_v8  ;;  %v2079_v26 = vadd.f32 %v5323_v45, %v2066_v13  ;;  %v2573_v44 = vmul.f32 %v7946_v15, %v7974_v49  ;;  %v7998_v40 = vld [vmem:[#allocation28_spill] sm:$0xff] }
 0x21c   :  { %v2594_v1 = vmul.f32 %v7996_v34, %v7976_v9  ;;  %v2200_v37 = vadd.f32 %v2192_v31, %v2179_v38  ;;  %v2334_v58 = vadd.f32 %v2326_v21, %v2313_v39  ;;  %v2447_v32 = vadd.f32 %v2439_v28, %v7997_v19  ;;  %v8006_v31 = vld [vmem:[#allocation90_spill] sm:$0xff]  ;;  %v8007_v8 = vld [vmem:[#allocation32_spill] sm:$0xff] }
 0x21d   :  { %v2707_v22 = vmul.f32 %v7949_v41, %v7974_v49  ;;  %v1990_v56 = vadd.f32 %v1982_v0, %v1856_v23  ;;  %vm2087_vm15 = vcmp.gt.f32.partialorder %v2079_v26, 0.0  ;;  %v2095_v4 = vmul.f32 0.2, %v2079_v26  ;;  %v8008_v0 = vld [vmem:[#allocation87_spill] sm:$0xff]  ;;  %v8010_v28 = vld [vmem:[#allocation92_spill] sm:$0xff]  ;;  %v8012_v19 = vld [vmem:[#allocation94_spill] sm:$0xff] }
 0x21e   :  { %v2581_v43 = vadd.f32 %v2573_v44, %v7998_v40  ;;  %v2213_v45 = vadd.f32 %v7999_v25, %v2200_v37  ;;  %v2347_v35 = vadd.f32 %v8000_v20, %v2334_v58  ;;  %v2468_v15 = vadd.f32 %v2460_v61, %v2447_v32  ;;  %v5797_v37 = vld [vmem:[%s7509_s7 + $0x36] ss:$0 sm:$0xff]  ;;  %v8014_v20 = vld [vmem:[#allocation46_spill] sm:$0xff] }
 0x21f   :  { %v2715_v50 = vadd.f32 %v2707_v22, %v8001_v53  ;;  %v2103_v10 = vsel %vm2087_vm15, %v2079_v26, %v2095_v4  ;;  %v2728_v48 = vmul.f32 %v8002_v54, %v7976_v9  ;;  %v2841_v41 = vmul.f32 %v8003_v30, %v7974_v49  ;;  %8011 = vst [vmem:[#allocation53_spill] sm:$0xff] %v5797_v37  ;;  %v8015_v54 = vld [vmem:[#allocation30_spill] sm:$0xff] }
 0x220   :  { %v2602_v59 = vadd.f32 %v2594_v1, %v2581_v43  ;;  %v2116_v52 = vmul.f32 %v8004_v42, %v2103_v10  ;;  %vm2221_vm1 = vcmp.gt.f32.partialorder %v2213_v45, 0.0  ;;  %v2229_v24 = vmul.f32 0.2, %v2213_v45  ;;  %v8013_v43 = vld [vmem:[#allocation26_spill] sm:$0xff] }
 0x221   :  { %vm2355_vm2 = vcmp.gt.f32.partialorder %v2347_v35, 0.0  ;;  %v2363_v11 = vmul.f32 0.2, %v2347_v35  ;;  %v2481_v57 = vadd.f32 %v8005_v55, %v2468_v15  ;;  %v2736_v47 = vadd.f32 %v2728_v48, %v2715_v50  ;;  %v5810_v15 = vld [vmem:[%s7509_s7 + $0x3a] ss:$0 sm:$0xff] }
 0x222   :  { %v2615_v51 = vadd.f32 %v8006_v31, %v2602_v59  ;;  %v2124_v60 = vadd.f32 %v2116_v52, %v1990_v56  ;;  %v2237_v21 = vsel %vm2221_vm1, %v2213_v45, %v2229_v24  ;;  %v2849_v18 = vadd.f32 %v2841_v41, %v8007_v8  ;;  %v8016_v41 = vld [vmem:[#allocation100_spill] sm:$0xff]  ;;  %v5832_v55 = vld [vmem:[%s7509_s7 + $0x3] ss:$0 sm:$0xff] }
 0x223   :  { %v2862_v13 = vmul.f32 %v8008_v0, %v7976_v9  ;;  %v2250_v38 = vmul.f32 %v8009_v5, %v2237_v21  ;;  %v2371_v2 = vsel %vm2355_vm2, %v2347_v35, %v2363_v11  ;;  %vm2489_vm3 = vcmp.gt.f32.partialorder %v2481_v57, 0.0  ;;  %v8018_v11 = vld [vmem:[#allocation44_spill] sm:$0xff]  ;;  %8019 = vst [vmem:[#allocation55_spill] sm:$0xff] %v5832_v55  ;;  %v8025_v5 = vld [vmem:[#allocation102_spill] sm:$0xff] }
 0x224   :  { %v2497_v39 = vmul.f32 0.2, %v2481_v57  ;;  %v2384_v61 = vmul.f32 %v8010_v28, %v2371_v2  ;;  %vm2623_vm4 = vcmp.gt.f32.partialorder %v2615_v51, 0.0  ;;  %v2631_v23 = vmul.f32 0.2, %v2615_v51  ;;  %v8022_v21 = vld [vmem:[#allocation24_spill] sm:$0xff] }
 0x225   :  { %v2749_v26 = vadd.f32 %v7961_v14, %v2736_v47  ;;  %v2258_v44 = vadd.f32 %v2250_v38, %v2124_v60  ;;  %v2870_v1 = vadd.f32 %v2862_v13, %v2849_v18  ;;  %v2975_v58 = vmul.f32 %v5797_v37, %v7974_v49  ;;  %v5843_v18 = vld [vmem:[%s7509_s7 + $0x6] ss:$0 sm:$0xff] }
 0x226   :  { %v2505_v34 = vsel %vm2489_vm3, %v2481_v57, %v2497_v39  ;;  %v2639_v22 = vsel %vm2623_vm4, %v2615_v51, %v2631_v23  ;;  %v2996_v35 = vmul.f32 %v8014_v20, %v7976_v9  ;;  %v3109_v53 = vmul.f32 %v5810_v15, %v7974_v49  ;;  %v8020_v57 = vld [vmem:[#allocation85_spill] sm:$0xff]  ;;  %v8021_v51 = vld [vmem:[#allocation31_spill] sm:$0xff]  ;;  %8023 = vst [vmem:[#allocation56_spill] sm:$0xff] %v5843_v18 }
 0x227   :  { %v2518_v32 = vmul.f32 %v8012_v19, %v2505_v34  ;;  %vm2757_vm5 = vcmp.gt.f32.partialorder %v2749_v26, 0.0  ;;  %v2765_v56 = vmul.f32 0.2, %v2749_v26  ;;  %v2392_v4 = vadd.f32 %v2384_v61, %v2258_v44  ;;  %v8026_v61 = vld [vmem:[#allocation5_spill] sm:$0xff] }
 0x228   :  { %v2652_v40 = vmul.f32 %v7964_v29, %v2639_v22  ;;  %v2883_v14 = vadd.f32 %v7965_v33, %v2870_v1  ;;  %v2983_v25 = vadd.f32 %v2975_v58, %v8013_v43  ;;  %v3130_v50 = vmul.f32 %v5516_v36, %v7976_v9  ;;  %v5825_v36 = vld [vmem:[%s7509_s7 + $0x2] ss:$0 sm:$0xff] }
 0x229   :  { %v2773_v45 = vsel %vm2757_vm5, %v2749_v26, %v2765_v56  ;;  %v2526_v29 = vadd.f32 %v2518_v32, %v2392_v4  ;;  %v3117_v48 = vadd.f32 %v3109_v53, %v8015_v54  ;;  %v3243_v30 = vmul.f32 %v5532_v63, %v7974_v49  ;;  %8017 = vst [vmem:[#allocation54_spill] sm:$0xff] %v5825_v36  ;;  %v5859_v26 = vld [vmem:[%s7509_s7 + $0xa] ss:$0 sm:$0xff]  ;;  %v5868_v32 = vld [vmem:[%s7510_s8] ss:$0 sm:$0xff] }
 0x22a   :  { %v2786_v33 = vmul.f32 %v7966_v12, %v2773_v45  ;;  %vm2891_vm6 = vcmp.gt.f32.partialorder %v2883_v14, 0.0  ;;  %v2899_v10 = vmul.f32 0.2, %v2883_v14  ;;  %v3004_v59 = vadd.f32 %v2996_v35, %v2983_v25  ;;  %v8027_v4 = vld [vmem:[#allocation6_spill] sm:$0xff]  ;;  %v5883_v53 = vld [vmem:[%s7510_s8 + $0x1] ss:$0 sm:$0xff] }
 0x22b   :  { %v3264_v42 = vmul.f32 %v8016_v41, %v7976_v9  ;;  %v2660_v52 = vadd.f32 %v2652_v40, %v2526_v29  ;;  %v1242_v12 = vmul.f32 %v5825_v36, %v8018_v11  ;;  %v1263_v63 = vmul.f32 %v5832_v55, %v8020_v57  ;;  %v5875_v25 = vld [vmem:[%s7509_s7 + $0xb] ss:$0 sm:$0xff]  ;;  %8028 = vst [vmem:[#allocation33_spill] sm:$0xff] %v5883_v53  ;;  %v5904_v41 = vld [vmem:[%s7511_s9] ss:$0 sm:$0xff] }
 0x22c   :  { %v2907_v24 = vsel %vm2891_vm6, %v2883_v14, %v2899_v10  ;;  %v3017_v9 = vadd.f32 %v7967_v27, %v3004_v59  ;;  %v3138_v31 = vadd.f32 %v3130_v50, %v3117_v48  ;;  %v3251_v47 = vadd.f32 %v3243_v30, %v8021_v51  ;;  %v5897_v48 = vld [vmem:[%s7509_s7 + $0xf] ss:$0 sm:$0xff]  ;;  %v5924_v51 = vld [vmem:[%s7509_s7 + $0x13] ss:$0 sm:$0xff] }
 0x22d   :  { %v2920_v49 = vmul.f32 %v7969_v6, %v2907_v24  ;;  %v2794_v60 = vadd.f32 %v2786_v33, %v2660_v52  ;;  %v1250_v8 = vadd.f32 %v1242_v12, %v8022_v21  ;;  %v1368_v0 = vmul.f32 %v5843_v18, %v8018_v11  ;;  %v5850_v6 = vld [vmem:[%s7509_s7 + $0x7] ss:$0 sm:$0xff]  ;;  %v5889_v33 = vld [vmem:[%s7509_s7 + $0xe] ss:$0 sm:$0xff] }
 0x22e   :  { %8024 = vst [vmem:[#allocation57_spill] sm:$0xff] %v5850_v6  ;;  %v1389_v27 = vmul.f32 %v5850_v6, %v8020_v57  ;;  %vm3025_vm7 = vcmp.gt.f32.partialorder %v3017_v9, 0.0  ;;  %v3033_v13 = vmul.f32 0.2, %v3017_v9  ;;  %v3151_v38 = vadd.f32 %v8025_v5, %v3138_v31  ;;  %8029 = vst [vmem:[#allocation58_spill] sm:$0xff] %v5889_v33 }
 0x22f   :  { %v3272_v2 = vadd.f32 %v3264_v42, %v3251_v47  ;;  %v2928_v39 = vadd.f32 %v2920_v49, %v2794_v60  ;;  %v1271_v28 = vadd.f32 %v1263_v63, %v1250_v8  ;;  %v1376_v23 = vadd.f32 %v1368_v0, %v8026_v61  ;;  %v8030_v63 = vld [vmem:[#allocation7_spill] sm:$0xff]  ;;  %v8034_v61 = vld [vmem:[#allocation64_spill] sm:$0xff] }
 0x230   :  { %v1502_v44 = vmul.f32 %v5859_v26, %v8018_v11  ;;  %v3041_v34 = vsel %vm3025_vm7, %v3017_v9, %v3033_v13  ;;  %vm3159_vm8 = vcmp.gt.f32.partialorder %v3151_v38, 0.0  ;;  %v3167_v1 = vmul.f32 0.2, %v3151_v38  ;;  %v5917_v9 = vld [vmem:[%s7509_s7 + $0x12] ss:$0 sm:$0xff] }
 0x231   :  { %v3285_v58 = vadd.f32 %v5580_v46, %v3272_v2  ;;  %v3054_v19 = vmul.f32 %v7971_v7, %v3041_v34  ;;  %v1284_v22 = vadd.f32 %v5868_v32, %v1271_v28  ;;  %v1397_v56 = vadd.f32 %v1389_v27, %v1376_v23  ;;  %8031 = vst [vmem:[#allocation34_spill] sm:$0xff] %v5917_v9  ;;  %v5931_v8 = vld [vmem:[%s7509_s7 + $0x16] ss:$0 sm:$0xff]  ;;  %v5939_v13 = vld [vmem:[%s7511_s9 + $0x1] ss:$0 sm:$0xff] }
 0x232   :  { %v1510_v40 = vadd.f32 %v1502_v44, %v8027_v4  ;;  %v3175_v14 = vsel %vm3159_vm8, %v3151_v38, %v3167_v1  ;;  %v1523_v46 = vmul.f32 %v5875_v25, %v8020_v57  ;;  %v1636_v10 = vmul.f32 %v5889_v33, %v8018_v11  ;;  %8032 = vst [vmem:[#allocation59_spill] sm:$0xff] %v5939_v13  ;;  %v8033_v2 = vld [vmem:[#allocation9_spill] sm:$0xff]  ;;  %v5947_v44 = vld [vmem:[%s7509_s7 + $0x17] ss:$0 sm:$0xff]  ;;  %v5954_v34 = vld [vmem:[%s7509_s7 + $0x1a] ss:$0 sm:$0xff] }
 0x233   :  { %vm3293_vm9 = vcmp.gt.f32.partialorder %v3285_v58, 0.0  ;;  %v3301_v43 = vmul.f32 0.2, %v3285_v58  ;;  %v3062_v7 = vadd.f32 %v3054_v19, %v2928_v39  ;;  %v3188_v45 = vmul.f32 %v5574_v62, %v3175_v14  ;;  %v5967_v4 = vld [vmem:[%s7510_s8 + $0x3] ss:$0 sm:$0xff] }
 0x234   :  { %vm1292_vm10 = vcmp.gt.f32.partialorder %v1284_v22, 0.0  ;;  %v1300_v20 = vmul.f32 0.2, %v1284_v22  ;;  %v1410_v50 = vadd.f32 %v5883_v53, %v1397_v56  ;;  %v1531_v29 = vadd.f32 %v1523_v46, %v1510_v40  ;;  %v8035_v46 = vld [vmem:[#allocation65_spill] sm:$0xff] }
 0x235   :  { %v3309_v35 = vsel %vm3293_vm9, %v3285_v58, %v3301_v43  ;;  %v3196_v62 = vadd.f32 %v3188_v45, %v3062_v7  ;;  %v1657_v30 = vmul.f32 %v5897_v48, %v8020_v57  ;;  %v1644_v49 = vadd.f32 %v1636_v10, %v8030_v63  ;;  %v6002_v63 = vld [vmem:[%s7509_s7 + $0x1f] ss:$0 sm:$0xff] }
 0x236   :  { %v3322_v59 = vmul.f32 %v5594_v17, %v3309_v35  ;;  %v1308_v54 = vsel %vm1292_vm10, %v1284_v22, %v1300_v20  ;;  %vm1418_vm11 = vcmp.gt.f32.partialorder %v1410_v50, 0.0  ;;  %v1426_v52 = vmul.f32 0.2, %v1410_v50  ;;  %v5910_v17 = vld [vmem:[%s7510_s8 + $0x2] ss:$0 sm:$0xff] }
 0x237   :  { %v1321_v42 = vmul.f32 %v5904_v41, %v1308_v54  ;;  %v1544_v24 = vadd.f32 %v5910_v17, %v1531_v29  ;;  %v1770_v31 = vmul.f32 %v5917_v9, %v8018_v11  ;;  %v1791_v47 = vmul.f32 %v5924_v51, %v8020_v57  ;;  %v5961_v22 = vld [vmem:[%s7511_s9 + $0x2] ss:$0 sm:$0xff]  ;;  %v5974_v35 = vld [vmem:[%s7509_s7 + $0x1b] ss:$0 sm:$0xff]  ;;  %v5981_v29 = vld [vmem:[%s7509_s7 + $0x1e] ss:$0 sm:$0xff] }
 0x238   :  { %v3330_v12 = vadd.f32 %v3322_v59, %v3196_v62  ;;  %v1434_v60 = vsel %vm1418_vm11, %v1410_v50, %v1426_v52  ;;  %v1904_v0 = vmul.f32 %v5931_v8, %v8018_v11  ;;  %v1665_v38 = vadd.f32 %v1657_v30, %v1644_v49  ;;  %8036 = vst [vmem:[#allocation60_spill] sm:$0xff] %v5974_v35  ;;  %v5989_v59 = vld [vmem:[%s7510_s8 + $0x4] ss:$0 sm:$0xff]  ;;  %v5995_v30 = vld [vmem:[%s7510_s8 + $0x5] ss:$0 sm:$0xff] }
 0x239   :  { %vm1552_vm12 = vcmp.gt.f32.partialorder %v1544_v24, 0.0  ;;  %v1560_v21 = vmul.f32 0.2, %v1544_v24  ;;  %v1447_v5 = vmul.f32 %v5939_v13, %v1434_v60  ;;  %v1778_v39 = vadd.f32 %v1770_v31, %v8033_v2  ;;  %8037 = vst [vmem:[#allocation38_spill] sm:$0xff] %v5989_v59  ;;  %v6009_v31 = vld [vmem:[%s7509_s7 + $0x22] ss:$0 sm:$0xff] }
 0x23a   :  { %v3345_v27 = vadd.f32 %v5611_v16, %v3330_v12  ;;  %v1912_v23 = vadd.f32 %v1904_v0, %v8034_v61  ;;  %v1925_v16 = vmul.f32 %v5947_v44, %v8020_v57  ;;  %v2038_v1 = vmul.f32 %v5954_v34, %v8018_v11  ;;  %v6016_v0 = vld [vmem:[%s7511_s9 + $0x3] ss:$0 sm:$0xff]  ;;  %v8040_v61 = vld [vmem:[#allocation71_spill] sm:$0xff] }
 0x23b   :  { %v1568_v28 = vsel %vm1552_vm12, %v1544_v24, %v1560_v21  ;;  %v1455_v19 = vadd.f32 %v1447_v5, %v1321_v42  ;;  %v1678_v40 = vadd.f32 %v5967_v4, %v1665_v38  ;;  %v1799_v14 = vadd.f32 %v1791_v47, %v1778_v39  ;;  %v8038_v24 = vld [vmem:[#allocation69_spill] sm:$0xff] }
 0x23c   :  { %vm3353_vm13 = vcmp.gt.f32.partialorder %v3345_v27, 0.0  ;;  %v3361_v58 = vmul.f32 0.2, %v3345_v27  ;;  %v1581_v56 = vmul.f32 %v5961_v22, %v1568_v28  ;;  %v1933_v43 = vadd.f32 %v1925_v16, %v1912_v23  ;;  %v6022_v38 = vld [vmem:[%s7510_s8 + $0x6] ss:$0 sm:$0xff] }
 0x23d   :  { %v2046_v7 = vadd.f32 %v2038_v1, %v8035_v46  ;;  %v2059_v50 = vmul.f32 %v5974_v35, %v8020_v57  ;;  %v2172_v10 = vmul.f32 %v5981_v29, %v8018_v11  ;;  %vm1686_vm14 = vcmp.gt.f32.partialorder %v1678_v40, 0.0  ;;  %8039 = vst [vmem:[#allocation40_spill] sm:$0xff] %v6022_v38  ;;  %v6029_v16 = vld [vmem:[%s7509_s7 + $0x23] ss:$0 sm:$0xff]  ;;  %v6050_v46 = vld [vmem:[%s7511_s9 + $0x5] ss:$0 sm:$0xff] }
 0x23e   :  { %v3369_v45 = vsel %vm3353_vm13, %v3345_v27, %v3361_v58  ;;  %v1589_v20 = vadd.f32 %v1581_v56, %v1455_v19  ;;  %v1694_v62 = vmul.f32 0.2, %v1678_v40  ;;  %v1812_v54 = vadd.f32 %v5989_v59, %v1799_v14  ;;  %8041 = vst [vmem:[#allocation91_spill] sm:$0xff] %v6029_v16  ;;  %v6036_v58 = vld [vmem:[%s7509_s7 + $0x26] ss:$0 sm:$0xff]  ;;  %8043 = vst [vmem:[#allocation62_spill] sm:$0xff] %v6050_v46 }
 0x23f   :  { %3800 = vmatprep.mubr.msk.f32.mxu0 %vm227_vm0, %v3369_v45  ;;  %v1946_v42 = vadd.f32 %v5995_v30, %v1933_v43  ;;  %v2067_v52 = vadd.f32 %v2059_v50, %v2046_v7  ;;  %v2180_v12 = vadd.f32 %v2172_v10, %v8038_v24  ;;  %v2193_v49 = vmul.f32 %v6002_v63, %v8020_v57 }
 0x240   :  { %v2306_v47 = vmul.f32 %v6009_v31, %v8018_v11  ;;  %v1702_v60 = vsel %vm1686_vm14, %v1678_v40, %v1694_v62  ;;  %vm1820_vm15 = vcmp.gt.f32.partialorder %v1812_v54, 0.0  ;;  %v1828_v21 = vmul.f32 0.2, %v1812_v54  ;;  %8042 = vst [vmem:[#allocation61_spill] sm:$0xff] %v6036_v58  ;;  %v6043_v40 = vld [vmem:[%s7511_s9 + $0x4] ss:$0 sm:$0xff] }
 0x241   :  { %vm1954_vm1 = vcmp.gt.f32.partialorder %v1946_v42, 0.0  ;;  %v1715_v27 = vmul.f32 %v6016_v0, %v1702_v60  ;;  %v1962_v5 = vmul.f32 0.2, %v1946_v42  ;;  %v2080_v2 = vadd.f32 %v6022_v38, %v2067_v52  ;;  %v6063_v52 = vld [vmem:[%s7509_s7 + $0x27] ss:$0 sm:$0xff] }
 0x242   :  { %v2201_v39 = vadd.f32 %v2193_v49, %v2180_v12  ;;  %v1836_v28 = vsel %vm1820_vm15, %v1812_v54, %v1828_v21  ;;  %v2314_v23 = vadd.f32 %v2306_v47, %v8040_v61  ;;  %v2327_v1 = vmul.f32 %v6029_v16, %v8020_v57  ;;  %v8045_v54 = vld [vmem:[#allocation76_spill] sm:$0xff]  ;;  %8046 = vst [vmem:[#allocation93_spill] sm:$0xff] %v6063_v52  ;;  %v6070_v12 = vld [vmem:[%s7509_s7 + $0x2a] ss:$0 sm:$0xff]  ;;  %v6077_v21 = vld [vmem:[%s7510_s8 + $0x8] ss:$0 sm:$0xff] }
 0x243   :  { %v2440_v19 = vmul.f32 %v6036_v58, %v8018_v11  ;;  %v1723_v56 = vadd.f32 %v1715_v27, %v1589_v20  ;;  %v1849_v14 = vmul.f32 %v6043_v40, %v1836_v28  ;;  %v1970_v43 = vsel %vm1954_vm1, %v1946_v42, %v1962_v5  ;;  %v6056_v20 = vld [vmem:[%s7510_s8 + $0x7] ss:$0 sm:$0xff]  ;;  %8047 = vst [vmem:[#allocation47_spill] sm:$0xff] %v6070_v12 }
 0x244   :  { %vm2088_vm2 = vcmp.gt.f32.partialorder %v2080_v2, 0.0  ;;  %v1983_v7 = vmul.f32 %v6050_v46, %v1970_v43  ;;  %v2096_v45 = vmul.f32 0.2, %v2080_v2  ;;  %8044 = vst [vmem:[#allocation95_spill] sm:$0xff] %v6056_v20  ;;  %v2214_v50 = vadd.f32 %v6056_v20, %v2201_v39  ;;  %8048 = vst [vmem:[#allocation96_spill] sm:$0xff] %v6077_v21 }
 0x245   :  { %v2335_v10 = vadd.f32 %v2327_v1, %v2314_v23  ;;  %v1857_v62 = vadd.f32 %v1849_v14, %v1723_v56  ;;  %v2448_v42 = vadd.f32 %v2440_v19, %v8045_v54  ;;  %v2461_v24 = vmul.f32 %v6063_v52, %v8020_v57  ;;  %v6083_v39 = vld [vmem:[%s7511_s9 + $0x6] ss:$0 sm:$0xff]  ;;  %v6090_v56 = vld [vmem:[%s7509_s7 + $0x2b] ss:$0 sm:$0xff]  ;;  %v8055_v54 = vld [vmem:[#allocation79_spill] sm:$0xff] }
 0x246   :  { %v2574_v49 = vmul.f32 %v6070_v12, %v8018_v11  ;;  %v2104_v47 = vsel %vm2088_vm2, %v2080_v2, %v2096_v45  ;;  %vm2222_vm3 = vcmp.gt.f32.partialorder %v2214_v50, 0.0  ;;  %v2230_v60 = vmul.f32 0.2, %v2214_v50  ;;  %8049 = vst [vmem:[#allocation63_spill] sm:$0xff] %v6083_v39  ;;  %v8050_v23 = vld [vmem:[#allocation77_spill] sm:$0xff]  ;;  %8051 = vst [vmem:[#allocation97_spill] sm:$0xff] %v6090_v56 }
 0x247   :  { %v2348_v27 = vadd.f32 %v6077_v21, %v2335_v10  ;;  %v1991_v5 = vadd.f32 %v1983_v7, %v1857_v62  ;;  %v2117_v28 = vmul.f32 %v6083_v39, %v2104_v47  ;;  %v2469_v61 = vadd.f32 %v2461_v24, %v2448_v42  ;;  %v6097_v7 = vld [vmem:[%s7511_s9 + $0x7] ss:$0 sm:$0xff]  ;;  %v8054_v62 = vld [vmem:[#allocation78_spill] sm:$0xff] }
 0x248   :  { %v2582_v2 = vadd.f32 %v2574_v49, %v8050_v23  ;;  %v2238_v1 = vsel %vm2222_vm3, %v2214_v50, %v2230_v60  ;;  %v2595_v14 = vmul.f32 %v6090_v56, %v8020_v57  ;;  %8052 = vst [vmem:[#allocation99_spill] sm:$0xff] %v6097_v7  ;;  %v6103_v50 = vld [vmem:[%s7510_s8 + $0x9] ss:$0 sm:$0xff]  ;;  %v2695_v42 = vadd.f32 %v8055_v54, %v8054_v62  ;;  %v6111_v47 = vld [vmem:[%s7509_s7 + $0x2e] ss:$0 sm:$0xff] }
 0x249   :  { %vm2356_vm4 = vcmp.gt.f32.partialorder %v2348_v27, 0.0  ;;  %v2364_v19 = vmul.f32 0.2, %v2348_v27  ;;  %v2125_v43 = vadd.f32 %v2117_v28, %v1991_v5  ;;  %v2251_v45 = vmul.f32 %v6097_v7, %v2238_v1  ;;  %8053 = vst [vmem:[#allocation80_spill] sm:$0xff] %v6103_v50  ;;  %8056 = vst [vmem:[#allocation66_spill] sm:$0xff] %v6111_v47 }
 0x24a   :  { %v2482_v10 = vadd.f32 %v6103_v50, %v2469_v61  ;;  %v2603_v49 = vadd.f32 %v2595_v14, %v2582_v2  ;;  %v2708_v60 = vmul.f32 %v6111_v47, %v8018_v11  ;;  %v6118_v5 = vld [vmem:[%s7509_s7 + $0x2f] ss:$0 sm:$0xff]  ;;  %v6131_v1 = vld [vmem:[%s7510_s8 + $0xa] ss:$0 sm:$0xff]  ;;  %v6144_v54 = vld [vmem:[%s7509_s7 + $0x31] ss:$0 sm:$0xff] }
 0x24b   :  { %v2372_v24 = vsel %vm2356_vm4, %v2348_v27, %v2364_v19  ;;  %8057 = vst [vmem:[#allocation88_spill] sm:$0xff] %v6118_v5  ;;  %v2729_v28 = vmul.f32 %v6118_v5, %v8020_v57  ;;  %v2259_v61 = vadd.f32 %v2251_v45, %v2125_v43  ;;  %v6125_v27 = vld [vmem:[%s7511_s9 + $0x8] ss:$0 sm:$0xff]  ;;  %8059 = vst [vmem:[#allocation67_spill] sm:$0xff] %v6131_v1  ;;  %v6137_v43 = vld [vmem:[%s7509_s7 + $0x30] ss:$0 sm:$0xff] }
 0x24c   :  { %8058 = vst [vmem:[#allocation36_spill] sm:$0xff] %v6125_v27  ;;  %v2385_v23 = vmul.f32 %v6125_v27, %v2372_v24  ;;  %vm2490_vm5 = vcmp.gt.f32.partialorder %v2482_v10, 0.0  ;;  %v2498_v2 = vmul.f32 0.2, %v2482_v10  ;;  %v2616_v19 = vadd.f32 %v6131_v1, %v2603_v49  ;;  %8060 = vst [vmem:[#allocation37_spill] sm:$0xff] %v6137_v43  ;;  %v8061_v45 = vld [vmem:[#allocation13_spill] sm:$0xff] }
 0x24d   :  { %v2716_v14 = vadd.f32 %v2708_v60, %v2695_v42  ;;  %v2808_v62 = vmul.f32 %v6137_v43, %v8061_v45  ;;  %8062 = vst [vmem:[#allocation14_spill] sm:$0xff] %v6144_v54  ;;  %v8063_v24 = vld [vmem:[#allocation22_spill] sm:$0xff]  ;;  %v6151_v42 = vld [vmem:[%s7509_s7 + $0x32] ss:$0 sm:$0xff]  ;;  %v6158_v60 = vld [vmem:[%s7509_s7 + $0x33] ss:$0 sm:$0xff] }
 0x24e   :  { %v2821_v3 = vmul.f32 %v6144_v54, %v8063_v24  ;;  %v2393_v27 = vadd.f32 %v2385_v23, %v2259_v61  ;;  %v2506_v50 = vsel %vm2490_vm5, %v2482_v10, %v2498_v2  ;;  %8064 = vst [vmem:[#allocation68_spill] sm:$0xff] %v6151_v42  ;;  %v2842_v49 = vmul.f32 %v6151_v42, %v8018_v11  ;;  %v6165_v10 = vld [vmem:[%s7511_s9 + $0x9] ss:$0 sm:$0xff]  ;;  %v6171_v42 = vld [vmem:[%s7509_s7 + $0x34] ss:$0 sm:$0xff] }
 0x24f   :  { %8065 = vst [vmem:[#allocation15_spill] sm:$0xff] %v6158_v60  ;;  %v2863_v1 = vmul.f32 %v6158_v60, %v8020_v57  ;;  %8066 = vst [vmem:[#allocation41_spill] sm:$0xff] %v6165_v10  ;;  %v2519_v61 = vmul.f32 %v6165_v10, %v2506_v50  ;;  %vm2624_vm6 = vcmp.gt.f32.partialorder %v2616_v19, 0.0  ;;  %v2632_v23 = vmul.f32 0.2, %v2616_v19 }
 0x250   :  { %v2737_v2 = vadd.f32 %v2729_v28, %v2716_v14  ;;  %v2829_v54 = vadd.f32 %v2821_v3, %v2808_v62  ;;  %8067 = vst [vmem:[#allocation70_spill] sm:$0xff] %v6171_v42  ;;  %v2942_v43 = vmul.f32 %v6171_v42, %v8061_v45  ;;  %v6178_v60 = vld [vmem:[%s7509_s7 + $0x35] ss:$0 sm:$0xff]  ;;  %v2976_v28 = vmul.f32 %v5797_v37, %v8018_v11  ;;  %v6187_v62 = vld [vmem:[%s7510_s8 + $0xb] ss:$0 sm:$0xff] }
 0x251   :  { %8068 = vst [vmem:[#allocation16_spill] sm:$0xff] %v6178_v60  ;;  %v2955_v50 = vmul.f32 %v6178_v60, %v8063_v24  ;;  %v2527_v3 = vadd.f32 %v2519_v61, %v2393_v27  ;;  %v2640_v14 = vsel %vm2624_vm6, %v2616_v19, %v2632_v23  ;;  %8069 = vst [vmem:[#allocation73_spill] sm:$0xff] %v6187_v62  ;;  %v6193_v42 = vld [vmem:[%s7509_s7 + $0x37] ss:$0 sm:$0xff]  ;;  %v6200_v27 = vld [vmem:[%s7511_s9 + $0xa] ss:$0 sm:$0xff] }
 0x252   :  { %v2750_v10 = vadd.f32 %v6187_v62, %v2737_v2  ;;  %8070 = vst [vmem:[#allocation17_spill] sm:$0xff] %v6193_v42  ;;  %v2997_v60 = vmul.f32 %v6193_v42, %v8020_v57  ;;  %8071 = vst [vmem:[#allocation74_spill] sm:$0xff] %v6200_v27  ;;  %v2653_v19 = vmul.f32 %v6200_v27, %v2640_v14  ;;  %v6206_v2 = vld [vmem:[%s7509_s7 + $0x38] ss:$0 sm:$0xff]  ;;  %v6213_v42 = vld [vmem:[%s7509_s7 + $0x39] ss:$0 sm:$0xff] }
 0x253   :  { %v2850_v61 = vadd.f32 %v2842_v49, %v2829_v54  ;;  %v2963_v23 = vadd.f32 %v2955_v50, %v2942_v43  ;;  %8072 = vst [vmem:[#allocation18_spill] sm:$0xff] %v6206_v2  ;;  %v3076_v62 = vmul.f32 %v6206_v2, %v8061_v45  ;;  %8073 = vst [vmem:[#allocation19_spill] sm:$0xff] %v6213_v42  ;;  %v6222_v27 = vld [vmem:[%s7509_s7 + $0x3b] ss:$0 sm:$0xff] }
 0x254   :  { %vm2758_vm7 = vcmp.gt.f32.partialorder %v2750_v10, 0.0  ;;  %v2766_v37 = vmul.f32 0.2, %v2750_v10  ;;  %v3089_v14 = vmul.f32 %v6213_v42, %v8063_v24  ;;  %v3110_v43 = vmul.f32 %v5810_v15, %v8018_v11  ;;  %8074 = vst [vmem:[#allocation75_spill] sm:$0xff] %v6222_v27  ;;  %v6229_v42 = vld [vmem:[%s7509_s7 + $0x3c] ss:$0 sm:$0xff] }
 0x255   :  { %v2661_v54 = vadd.f32 %v2653_v19, %v2527_v3  ;;  %v2871_v49 = vadd.f32 %v2863_v1, %v2850_v61  ;;  %v2984_v50 = vadd.f32 %v2976_v28, %v2963_v23  ;;  %v3131_v2 = vmul.f32 %v6222_v27, %v8020_v57  ;;  %8075 = vst [vmem:[#allocation20_spill] sm:$0xff] %v6229_v42  ;;  %v6236_v1 = vld [vmem:[%s7509_s7 + $0x3d] ss:$0 sm:$0xff]  ;;  %v6255_v61 = vld [vmem:[%s7509_s7 + $0x3e] ss:$0 sm:$0xff]  ;;  %v8087_v27 = vld [vmem:[#allocation50_spill] sm:$0xff] }
 0x256   :  { %v2774_v5 = vsel %vm2758_vm7, %v2750_v10, %v2766_v37  ;;  %v3097_v47 = vadd.f32 %v3089_v14, %v3076_v62  ;;  %v3210_v3 = vmul.f32 %v6229_v42, %v8061_v45  ;;  %8076 = vst [vmem:[#allocation21_spill] sm:$0xff] %v6236_v1  ;;  %v3223_v28 = vmul.f32 %v6236_v1, %v8063_v24  ;;  %v6243_v37 = vld [vmem:[%s7511_s9 + $0xb] ss:$0 sm:$0xff]  ;;  %v6249_v62 = vld [vmem:[%s7510_s8 + $0xc] ss:$0 sm:$0xff] }
 0x257   :  { %8077 = vst [vmem:[#allocation25_spill] sm:$0xff] %v6243_v37  ;;  %v2787_v10 = vmul.f32 %v6243_v37, %v2774_v5  ;;  %8078 = vst [vmem:[#allocation83_spill] sm:$0xff] %v6249_v62  ;;  %v2884_v45 = vadd.f32 %v6249_v62, %v2871_v49  ;;  %v3005_v19 = vadd.f32 %v2997_v60, %v2984_v50  ;;  %v6262_v5 = vld [vmem:[%s7509_s7 + $0x3f] ss:$0 sm:$0xff]  ;;  %v6269_v60 = vld [vmem:[%s7509_s7] ss:$0 sm:$0xff] }
 0x258   :  { %8079 = vst [vmem:[#allocation27_spill] sm:$0xff] %v6255_v61  ;;  %v3244_v24 = vmul.f32 %v6255_v61, %v8018_v11  ;;  %v3118_v23 = vadd.f32 %v3110_v43, %v3097_v47  ;;  %v3231_v14 = vadd.f32 %v3223_v28, %v3210_v3  ;;  %8080 = vst [vmem:[#allocation28_spill] sm:$0xff] %v6262_v5  ;;  %v8082_v49 = vld [vmem:[#allocation10_spill] sm:$0xff]  ;;  %v6282_v28 = vld [vmem:[%s7509_s7 + $0x1] ss:$0 sm:$0xff] }
 0x259   :  { %v3265_v37 = vmul.f32 %v6262_v5, %v8020_v57  ;;  %8081 = vst [vmem:[#allocation42_spill] sm:$0xff] %v6269_v60  ;;  %v1209_v50 = vmul.f32 %v6269_v60, %v8082_v49  ;;  %v2795_v1 = vadd.f32 %v2787_v10, %v2661_v54  ;;  %vm2892_vm8 = vcmp.gt.f32.partialorder %v2884_v45, 0.0  ;;  %v6276_v47 = vld [vmem:[%s7510_s8 + $0xd] ss:$0 sm:$0xff]  ;;  %8084 = vst [vmem:[#allocation29_spill] sm:$0xff] %v6282_v28  ;;  %v8085_v5 = vld [vmem:[#allocation43_spill] sm:$0xff] }
 0x25a   :  { %v2900_v11 = vmul.f32 0.2, %v2884_v45  ;;  %8083 = vst [vmem:[#allocation86_spill] sm:$0xff] %v6276_v47  ;;  %v3018_v43 = vadd.f32 %v6276_v47, %v3005_v19  ;;  %v3139_v3 = vadd.f32 %v3131_v2, %v3118_v23  ;;  %v3252_v57 = vadd.f32 %v3244_v24, %v3231_v14  ;;  %v8086_v54 = vld [vmem:[#allocation101_spill] sm:$0xff]  ;;  %v6293_v2 = vld [vmem:[%s7511_s9 + $0xc] ss:$0 sm:$0xff] }
 0x25b   :  { %v1222_v60 = vmul.f32 %v6282_v28, %v8085_v5  ;;  %v1243_v10 = vmul.f32 %v5825_v36, %v8086_v54  ;;  %v1264_v62 = vmul.f32 %v5832_v55, %v8087_v27  ;;  %8088 = vst [vmem:[#allocation84_spill] sm:$0xff] %v6293_v2  ;;  %v6299_v24 = vld [vmem:[%s7510_s8 + $0xe] ss:$0 sm:$0xff]  ;;  %v6305_v55 = vld [vmem:[%s7509_s7 + $0x4] ss:$0 sm:$0xff] }
 0x25c   :  { %v2908_v61 = vsel %vm2892_vm8, %v2884_v45, %v2900_v11  ;;  %vm3026_vm9 = vcmp.gt.f32.partialorder %v3018_v43, 0.0  ;;  %v3034_v42 = vmul.f32 0.2, %v3018_v43  ;;  %8089 = vst [vmem:[#allocation35_spill] sm:$0xff] %v6299_v24  ;;  %v3152_v23 = vadd.f32 %v6299_v24, %v3139_v3  ;;  %8090 = vst [vmem:[#allocation81_spill] sm:$0xff] %v6305_v55 }
 0x25d   :  { %v2921_v19 = vmul.f32 %v6293_v2, %v2908_v61  ;;  %v3273_v45 = vadd.f32 %v3265_v37, %v3252_v57  ;;  %v1230_v14 = vadd.f32 %v1222_v60, %v1209_v50  ;;  %v1335_v36 = vmul.f32 %v6305_v55, %v8082_v49  ;;  %v6312_v61 = vld [vmem:[%s7509_s7 + $0x5] ss:$0 sm:$0xff]  ;;  %v6321_v60 = vld [vmem:[%s7511_s9 + $0xd] ss:$0 sm:$0xff]  ;;  %v6327_v3 = vld [vmem:[%s7510_s8 + $0xf] ss:$0 sm:$0xff] }
 0x25e   :  { %v3042_v11 = vsel %vm3026_vm9, %v3018_v43, %v3034_v42  ;;  %8091 = vst [vmem:[#allocation89_spill] sm:$0xff] %v6312_v61  ;;  %v1348_v28 = vmul.f32 %v6312_v61, %v8085_v5  ;;  %v1369_v37 = vmul.f32 %v5843_v18, %v8086_v54  ;;  %8092 = vst [vmem:[#allocation90_spill] sm:$0xff] %v6321_v60  ;;  %vm3160_vm10 = vcmp.gt.f32.partialorder %v3152_v23, 0.0  ;;  %v6342_v24 = vld [vmem:[%s7509_s7 + $0x9] ss:$0 sm:$0xff] }
 0x25f   :  { %v2929_v42 = vadd.f32 %v2921_v19, %v2795_v1  ;;  %v3055_v50 = vmul.f32 %v6321_v60, %v3042_v11  ;;  %v3168_v43 = vmul.f32 0.2, %v3152_v23  ;;  %8093 = vst [vmem:[#allocation32_spill] sm:$0xff] %v6327_v3  ;;  %v3286_v57 = vadd.f32 %v6327_v3, %v3273_v45  ;;  %v6335_v11 = vld [vmem:[%s7509_s7 + $0x8] ss:$0 sm:$0xff]  ;;  %8095 = vst [vmem:[#allocation82_spill] sm:$0xff] %v6342_v24 }
 0x260   :  { %v1251_v61 = vadd.f32 %v1243_v10, %v1230_v14  ;;  %v1356_v55 = vadd.f32 %v1348_v28, %v1335_v36  ;;  %v1390_v1 = vmul.f32 %v5850_v6, %v8087_v27  ;;  %8094 = vst [vmem:[#allocation87_spill] sm:$0xff] %v6335_v11  ;;  %v1469_v60 = vmul.f32 %v6335_v11, %v8082_v49  ;;  %v6349_v28 = vld [vmem:[%s7511_s9 + $0xe] ss:$0 sm:$0xff]  ;;  %v6360_v6 = vld [vmem:[%s7509_s7 + $0xc] ss:$0 sm:$0xff] }
 0x261   :  { %v3063_v19 = vadd.f32 %v3055_v50, %v2929_v42  ;;  %v3176_v18 = vsel %vm3160_vm10, %v3152_v23, %v3168_v43  ;;  %v1482_v36 = vmul.f32 %v6342_v24, %v8085_v5  ;;  %vm3294_vm11 = vcmp.gt.f32.partialorder %v3286_v57, 0.0 }
 0x262   :  { %v3189_v10 = vmul.f32 %v6349_v28, %v3176_v18  ;;  %v3302_v23 = vmul.f32 0.2, %v3286_v57  ;;  %v1272_v45 = vadd.f32 %v1264_v62, %v1251_v61  ;;  %v1377_v14 = vadd.f32 %v1369_v37, %v1356_v55  ;;  %v6367_v55 = vld [vmem:[%s7511_s9 + $0xf] ss:$0 sm:$0xff] }
 0x263   :  { %v1490_v42 = vadd.f32 %v1482_v36, %v1469_v60  ;;  %v1503_v50 = vmul.f32 %v5859_v26, %v8086_v54  ;;  %v1524_v43 = vmul.f32 %v5875_v25, %v8087_v27  ;;  %v1603_v18 = vmul.f32 %v6360_v6, %v8082_v49  ;;  %v6373_v60 = vld [vmem:[%s7509_s7 + $0xd] ss:$0 sm:$0xff] }
 0x264   :  { %v3197_v11 = vadd.f32 %v3189_v10, %v3063_v19  ;;  %v3310_v24 = vsel %vm3294_vm11, %v3286_v57, %v3302_v23  ;;  %v1285_v3 = vadd.f32 %v5868_v32, %v1272_v45  ;;  %v1398_v61 = vadd.f32 %v1390_v1, %v1377_v14 }
 0x265   :  { %v3323_v62 = vmul.f32 %v6367_v55, %v3310_v24  ;;  %v1511_v37 = vadd.f32 %v1503_v50, %v1490_v42  ;;  %v1616_v57 = vmul.f32 %v6373_v60, %v8085_v5  ;;  %v1637_v36 = vmul.f32 %v5889_v33, %v8086_v54  ;;  %v6385_v42 = vld [vmem:[%s7509_s7 + $0x10] ss:$0 sm:$0xff]  ;;  %v6392_v33 = vld [vmem:[%s7509_s7 + $0x11] ss:$0 sm:$0xff] }
 0x266   :  { %vm1293_vm12 = vcmp.gt.f32.partialorder %v1285_v3, 0.0  ;;  %v1301_v19 = vmul.f32 0.2, %v1285_v3  ;;  %v1658_v10 = vmul.f32 %v5897_v48, %v8087_v27  ;;  %v1411_v24 = vadd.f32 %v5883_v53, %v1398_v61  ;;  %8096 = vst [vmem:[#allocation92_spill] sm:$0xff] %v6385_v42  ;;  %8097 = vst [vmem:[#allocation94_spill] sm:$0xff] %v6392_v33 }
 0x267   :  { %v3331_v23 = vadd.f32 %v3323_v62, %v3197_v11  ;;  %v1532_v1 = vadd.f32 %v1524_v43, %v1511_v37  ;;  %v1624_v45 = vadd.f32 %v1616_v57, %v1603_v18  ;;  %v1737_v50 = vmul.f32 %v6385_v42, %v8082_v49  ;;  %v6411_v53 = vld [vmem:[%s7509_s7 + $0x14] ss:$0 sm:$0xff] }
 0x268   :  { %v1309_v14 = vsel %vm1293_vm12, %v1285_v3, %v1301_v19  ;;  %v1750_v11 = vmul.f32 %v6392_v33, %v8085_v5  ;;  %v1771_v43 = vmul.f32 %v5917_v9, %v8086_v54  ;;  %v6401_v3 = vld [vmem:[%s7512_s10] ss:$0 sm:$0xff]  ;;  %vm1419_vm13 = vcmp.gt.f32.partialorder %v1411_v24, 0.0  ;;  %8098 = vst [vmem:[#allocation26_spill] sm:$0xff] %v6411_v53 }
 0x269   :  { %v3346_v18 = vadd.f32 %v6401_v3, %v3331_v23  ;;  %v1322_v62 = vmul.f32 %v5904_v41, %v1309_v14  ;;  %v1427_v61 = vmul.f32 0.2, %v1411_v24  ;;  %v1545_v37 = vadd.f32 %v5910_v17, %v1532_v1 }
 0x26a   :  { %v1645_v57 = vadd.f32 %v1637_v36, %v1624_v45  ;;  %v1758_v19 = vadd.f32 %v1750_v11, %v1737_v50  ;;  %v1792_v33 = vmul.f32 %v5924_v51, %v8087_v27  ;;  %v1871_v23 = vmul.f32 %v6411_v53, %v8082_v49  ;;  %v6419_v11 = vld [vmem:[%s7509_s7 + $0x15] ss:$0 sm:$0xff] }
 0x26b   :  { %vm3354_vm14 = vcmp.gt.f32.partialorder %v3346_v18, 0.0  ;;  %v3362_v9 = vmul.f32 0.2, %v3346_v18  ;;  %v1435_v42 = vsel %vm1419_vm13, %v1411_v24, %v1427_v61  ;;  %vm1553_vm15 = vcmp.gt.f32.partialorder %v1545_v37, 0.0 }
 0x26c   :  { %v1448_v14 = vmul.f32 %v5939_v13, %v1435_v42  ;;  %v1561_v1 = vmul.f32 0.2, %v1545_v37  ;;  %v1666_v36 = vadd.f32 %v1658_v10, %v1645_v57  ;;  %v1779_v50 = vadd.f32 %v1771_v43, %v1758_v19  ;;  %v6433_v57 = vld [vmem:[%s7509_s7 + $0x18] ss:$0 sm:$0xff] }
 0x26d   :  { %v3370_v45 = vsel %vm3354_vm14, %v3346_v18, %v3362_v9  ;;  %v1884_v24 = vmul.f32 %v6419_v11, %v8085_v5  ;;  %v1905_v61 = vmul.f32 %v5931_v8, %v8086_v54  ;;  %v1926_v9 = vmul.f32 %v5947_v44, %v8087_v27 }
 0x26e   :  { %3801 = vmatmul.mubr.msk.f32.gmra.mxu0 %vm227_vm0, %v3370_v45  ;;  %v1456_v53 = vadd.f32 %v1448_v14, %v1322_v62  ;;  %v1569_v42 = vsel %vm1553_vm15, %v1545_v37, %v1561_v1  ;;  %v1679_v13 = vadd.f32 %v5967_v4, %v1666_v36  ;;  %v1800_v43 = vadd.f32 %v1792_v33, %v1779_v50  ;;  %v6440_v37 = vld [vmem:[%s7509_s7 + $0x19] ss:$0 sm:$0xff] }
 0x26f   :  { %v1582_v10 = vmul.f32 %v5961_v22, %v1569_v42  ;;  %v1892_v18 = vadd.f32 %v1884_v24, %v1871_v23  ;;  %v2005_v19 = vmul.f32 %v6433_v57, %v8082_v49  ;;  %8099 = vst [vmem:[#allocation46_spill] sm:$0xff] %v6440_v37  ;;  %v2018_v14 = vmul.f32 %v6440_v37, %v8085_v5  ;;  %v6452_v42 = vld [vmem:[%s7509_s7 + $0x1c] ss:$0 sm:$0xff] }
 0x270   :  { %vm1687_vm1 = vcmp.gt.f32.partialorder %v1679_v13, 0.0  ;;  %v1695_v62 = vmul.f32 0.2, %v1679_v13  ;;  %v2039_v33 = vmul.f32 %v5954_v34, %v8086_v54  ;;  %v1813_v1 = vadd.f32 %v5989_v59, %v1800_v43  ;;  %8100 = vst [vmem:[#allocation30_spill] sm:$0xff] %v6452_v42 }
 0x271   :  { %v1590_v23 = vadd.f32 %v1582_v10, %v1456_v53  ;;  %v1913_v36 = vadd.f32 %v1905_v61, %v1892_v18  ;;  %v2060_v45 = vmul.f32 %v5974_v35, %v8087_v27  ;;  %v2026_v24 = vadd.f32 %v2018_v14, %v2005_v19  ;;  %v6459_v53 = vld [vmem:[%s7509_s7 + $0x1d] ss:$0 sm:$0xff] }
 0x272   :  { %v1703_v50 = vsel %vm1687_vm1, %v1679_v13, %v1695_v62  ;;  %v2139_v37 = vmul.f32 %v6452_v42, %v8082_v49  ;;  %8101 = vst [vmem:[#allocation100_spill] sm:$0xff] %v6459_v53  ;;  %v2152_v61 = vmul.f32 %v6459_v53, %v8085_v5  ;;  %vm1821_vm2 = vcmp.gt.f32.partialorder %v1813_v1, 0.0  ;;  %v6472_v53 = vld [vmem:[%s7509_s7 + $0x20] ss:$0 sm:$0xff] }
 0x273   :  { %v1716_v10 = vmul.f32 %v6016_v0, %v1703_v50  ;;  %v1829_v13 = vmul.f32 0.2, %v1813_v1  ;;  %v1934_v43 = vadd.f32 %v1926_v9, %v1913_v36  ;;  %v2047_v18 = vadd.f32 %v2039_v33, %v2026_v24  ;;  %v6480_v50 = vld [vmem:[%s7509_s7 + $0x21] ss:$0 sm:$0xff] }
 0x274   :  { %v2160_v19 = vadd.f32 %v2152_v61, %v2139_v37  ;;  %v2173_v62 = vmul.f32 %v5981_v29, %v8086_v54  ;;  %v2194_v14 = vmul.f32 %v6002_v63, %v8087_v27  ;;  %v2273_v9 = vmul.f32 %v6472_v53, %v8082_v49 }
 0x275   :  { %v1724_v42 = vadd.f32 %v1716_v10, %v1590_v23  ;;  %v1837_v35 = vsel %vm1821_vm2, %v1813_v1, %v1829_v13  ;;  %v1947_v59 = vadd.f32 %v5995_v30, %v1934_v43  ;;  %v2068_v33 = vadd.f32 %v2060_v45, %v2047_v18  ;;  %v6492_v18 = vld [vmem:[%s7509_s7 + $0x24] ss:$0 sm:$0xff] }
 0x276   :  { %v1850_v37 = vmul.f32 %v6043_v40, %v1837_v35  ;;  %v2181_v36 = vadd.f32 %v2173_v62, %v2160_v19  ;;  %v2286_v23 = vmul.f32 %v6480_v50, %v8085_v5  ;;  %v2307_v24 = vmul.f32 %v6009_v31, %v8086_v54  ;;  %8102 = vst [vmem:[#allocation44_spill] sm:$0xff] %v6492_v18  ;;  %v6499_v62 = vld [vmem:[%s7509_s7 + $0x25] ss:$0 sm:$0xff] }
 0x277   :  { %vm1955_vm3 = vcmp.gt.f32.partialorder %v1947_v59, 0.0  ;;  %v1963_v1 = vmul.f32 0.2, %v1947_v59  ;;  %v2328_v61 = vmul.f32 %v6029_v16, %v8087_v27  ;;  %v2081_v35 = vadd.f32 %v6022_v38, %v2068_v33  ;;  %8103 = vst [vmem:[#allocation85_spill] sm:$0xff] %v6499_v62  ;;  %v8119_v38 = vld [vmem:[#allocation67_spill] sm:$0xff] }
 0x278   :  { %v1858_v10 = vadd.f32 %v1850_v37, %v1724_v42  ;;  %v2202_v45 = vadd.f32 %v2194_v14, %v2181_v36  ;;  %v2294_v13 = vadd.f32 %v2286_v23, %v2273_v9  ;;  %v2407_v19 = vmul.f32 %v6492_v18, %v8082_v49 }
 0x279   :  { %v1971_v43 = vsel %vm1955_vm3, %v1947_v59, %v1963_v1  ;;  %v2420_v42 = vmul.f32 %v6499_v62, %v8085_v5  ;;  %v2441_v14 = vmul.f32 %v6036_v58, %v8086_v54  ;;  %vm2089_vm4 = vcmp.gt.f32.partialorder %v2081_v35, 0.0  ;;  %v6512_v1 = vld [vmem:[%s7509_s7 + $0x28] ss:$0 sm:$0xff] }
 0x27a   :  { %v1984_v59 = vmul.f32 %v6050_v46, %v1971_v43  ;;  %v2097_v9 = vmul.f32 0.2, %v2081_v35  ;;  %v2215_v37 = vadd.f32 %v6056_v20, %v2202_v45  ;;  %v2315_v33 = vadd.f32 %v2307_v24, %v2294_v13  ;;  %8104 = vst [vmem:[#allocation31_spill] sm:$0xff] %v6512_v1  ;;  %v6520_v13 = vld [vmem:[%s7509_s7 + $0x29] ss:$0 sm:$0xff] }
 0x27b   :  { %v2428_v36 = vadd.f32 %v2420_v42, %v2407_v19  ;;  %v2462_v23 = vmul.f32 %v6063_v52, %v8087_v27  ;;  %v2541_v62 = vmul.f32 %v6512_v1, %v8082_v49  ;;  %8105 = vst [vmem:[#allocation24_spill] sm:$0xff] %v6520_v13  ;;  %v2554_v19 = vmul.f32 %v6520_v13, %v8085_v5 }
 0x27c   :  { %v1992_v58 = vadd.f32 %v1984_v59, %v1858_v10  ;;  %v2105_v18 = vsel %vm2089_vm4, %v2081_v35, %v2097_v9  ;;  %vm2223_vm5 = vcmp.gt.f32.partialorder %v2215_v37, 0.0  ;;  %v2231_v43 = vmul.f32 0.2, %v2215_v37 }
 0x27d   :  { %v2118_v46 = vmul.f32 %v6083_v39, %v2105_v18  ;;  %v2336_v45 = vadd.f32 %v2328_v61, %v2315_v33  ;;  %v2449_v24 = vadd.f32 %v2441_v14, %v2428_v36  ;;  %v2575_v1 = vmul.f32 %v6070_v12, %v8086_v54  ;;  %v6531_v61 = vld [vmem:[%s7509_s7 + $0x2c] ss:$0 sm:$0xff]  ;;  %v6540_v33 = vld [vmem:[%s7509_s7 + $0x2d] ss:$0 sm:$0xff] }
 0x27e   :  { %v2239_v42 = vsel %vm2223_vm5, %v2215_v37, %v2231_v43  ;;  %v2596_v10 = vmul.f32 %v6090_v56, %v8087_v27  ;;  %8106 = vst [vmem:[#allocation102_spill] sm:$0xff] %v6531_v61  ;;  %v2675_v35 = vmul.f32 %v6531_v61, %v8082_v49  ;;  %v2562_v37 = vadd.f32 %v2554_v19, %v2541_v62  ;;  %v8108_v43 = vld [vmem:[#allocation66_spill] sm:$0xff]  ;;  %v8109_v61 = vld [vmem:[#allocation88_spill] sm:$0xff]  ;;  %v8111_v19 = vld [vmem:[#allocation37_spill] sm:$0xff] }
 0x27f   :  { %v2126_v18 = vadd.f32 %v2118_v46, %v1992_v58  ;;  %v2252_v14 = vmul.f32 %v6097_v7, %v2239_v42  ;;  %v2349_v59 = vadd.f32 %v6077_v21, %v2336_v45  ;;  %v2470_v9 = vadd.f32 %v2462_v23, %v2449_v24  ;;  %8107 = vst [vmem:[#allocation5_spill] sm:$0xff] %v6540_v33  ;;  %v8110_v45 = vld [vmem:[#allocation80_spill] sm:$0xff]  ;;  %v8112_v12 = vld [vmem:[#allocation14_spill] sm:$0xff] }
 0x280   :  { %v2688_v36 = vmul.f32 %v6540_v33, %v8085_v5  ;;  %v2709_v56 = vmul.f32 %v8108_v43, %v8086_v54  ;;  %v2730_v58 = vmul.f32 %v8109_v61, %v8087_v27  ;;  %v2583_v62 = vadd.f32 %v2575_v1, %v2562_v37  ;;  %v8113_v43 = vld [vmem:[#allocation68_spill] sm:$0xff]  ;;  %v8115_v1 = vld [vmem:[#allocation15_spill] sm:$0xff]  ;;  %v8116_v37 = vld [vmem:[#allocation70_spill] sm:$0xff] }
 0x281   :  { %v2260_v46 = vadd.f32 %v2252_v14, %v2126_v18  ;;  %vm2357_vm6 = vcmp.gt.f32.partialorder %v2349_v59, 0.0  ;;  %v2365_v42 = vmul.f32 0.2, %v2349_v59  ;;  %v2483_v23 = vadd.f32 %v8110_v45, %v2470_v9  ;;  %v8114_v61 = vld [vmem:[#allocation36_spill] sm:$0xff]  ;;  %v8118_v45 = vld [vmem:[#allocation41_spill] sm:$0xff] }
 0x282   :  { %v2696_v24 = vadd.f32 %v2688_v36, %v2675_v35  ;;  %v2809_v7 = vmul.f32 %v8111_v19, %v8082_v49  ;;  %v2822_v13 = vmul.f32 %v8112_v12, %v8085_v5  ;;  %v2843_v39 = vmul.f32 %v8113_v43, %v8086_v54  ;;  %v8117_v12 = vld [vmem:[#allocation16_spill] sm:$0xff] }
 0x283   :  { %v2373_v33 = vsel %vm2357_vm6, %v2349_v59, %v2365_v42  ;;  %vm2491_vm7 = vcmp.gt.f32.partialorder %v2483_v23, 0.0  ;;  %v2499_v21 = vmul.f32 0.2, %v2483_v23  ;;  %v2604_v14 = vadd.f32 %v2596_v10, %v2583_v62 }
 0x284   :  { %v2386_v18 = vmul.f32 %v8114_v61, %v2373_v33  ;;  %v2717_v52 = vadd.f32 %v2709_v56, %v2696_v24  ;;  %v2830_v20 = vadd.f32 %v2822_v13, %v2809_v7  ;;  %v2864_v35 = vmul.f32 %v8115_v1, %v8087_v27  ;;  %v8120_v56 = vld [vmem:[#allocation53_spill] sm:$0xff] }
 0x285   :  { %v2507_v9 = vsel %vm2491_vm7, %v2483_v23, %v2499_v21  ;;  %v2943_v36 = vmul.f32 %v8116_v37, %v8082_v49  ;;  %v2956_v59 = vmul.f32 %v8117_v12, %v8085_v5  ;;  %v2617_v43 = vadd.f32 %v8119_v38, %v2604_v14  ;;  %v8121_v7 = vld [vmem:[#allocation17_spill] sm:$0xff] }
 0x286   :  { %v2394_v42 = vadd.f32 %v2386_v18, %v2260_v46  ;;  %v2520_v19 = vmul.f32 %v8118_v45, %v2507_v9  ;;  %v2738_v16 = vadd.f32 %v2730_v58, %v2717_v52  ;;  %v2851_v33 = vadd.f32 %v2843_v39, %v2830_v20  ;;  %v8122_v24 = vld [vmem:[#allocation73_spill] sm:$0xff]  ;;  %v8123_v18 = vld [vmem:[#allocation18_spill] sm:$0xff]  ;;  %v8124_v52 = vld [vmem:[#allocation19_spill] sm:$0xff] }
 0x287   :  { %v2964_v10 = vadd.f32 %v2956_v59, %v2943_v36  ;;  %v2977_v21 = vmul.f32 %v8120_v56, %v8086_v54  ;;  %v2998_v13 = vmul.f32 %v8121_v7, %v8087_v27  ;;  %vm2625_vm8 = vcmp.gt.f32.partialorder %v2617_v43, 0.0  ;;  %v8125_v36 = vld [vmem:[#allocation74_spill] sm:$0xff]  ;;  %v8126_v59 = vld [vmem:[#allocation83_spill] sm:$0xff]  ;;  %v8130_v45 = vld [vmem:[#allocation25_spill] sm:$0xff] }
 0x288   :  { %v2528_v23 = vadd.f32 %v2520_v19, %v2394_v42  ;;  %v2633_v62 = vmul.f32 0.2, %v2617_v43  ;;  %v2751_v37 = vadd.f32 %v8122_v24, %v2738_v16  ;;  %v2872_v12 = vadd.f32 %v2864_v35, %v2851_v33  ;;  %v8127_v33 = vld [vmem:[#allocation75_spill] sm:$0xff] }
 0x289   :  { %v2985_v46 = vadd.f32 %v2977_v21, %v2964_v10  ;;  %v3077_v9 = vmul.f32 %v8123_v18, %v8082_v49  ;;  %v3090_v20 = vmul.f32 %v8124_v52, %v8085_v5  ;;  %v3111_v14 = vmul.f32 %v5810_v15, %v8086_v54  ;;  %v8128_v21 = vld [vmem:[#allocation20_spill] sm:$0xff] }
 0x28a   :  { %v2641_v39 = vsel %vm2625_vm8, %v2617_v43, %v2633_v62  ;;  %vm2759_vm9 = vcmp.gt.f32.partialorder %v2751_v37, 0.0  ;;  %v2767_v58 = vmul.f32 0.2, %v2751_v37  ;;  %v2885_v42 = vadd.f32 %v8126_v59, %v2872_v12  ;;  %v8129_v43 = vld [vmem:[#allocation21_spill] sm:$0xff]  ;;  %v8133_v59 = vld [vmem:[#allocation8_spill] sm:$0xff] }
 0x28b   :  { %v2654_v19 = vmul.f32 %v8125_v36, %v2641_v39  ;;  %v3006_v56 = vadd.f32 %v2998_v13, %v2985_v46  ;;  %v3098_v16 = vadd.f32 %v3090_v20, %v3077_v9  ;;  %v3132_v10 = vmul.f32 %v8127_v33, %v8087_v27  ;;  %v8134_v36 = vld [vmem:[#allocation42_spill] sm:$0xff] }
 0x28c   :  { %v2775_v35 = vsel %vm2759_vm9, %v2751_v37, %v2767_v58  ;;  %v3211_v24 = vmul.f32 %v8128_v21, %v8082_v49  ;;  %v3224_v62 = vmul.f32 %v8129_v43, %v8085_v5  ;;  %vm2893_vm10 = vcmp.gt.f32.partialorder %v2885_v42, 0.0  ;;  %v8131_v37 = vld [vmem:[#allocation27_spill] sm:$0xff]  ;;  %v8132_v58 = vld [vmem:[#allocation28_spill] sm:$0xff] }
 0x28d   :  { %v2662_v52 = vadd.f32 %v2654_v19, %v2528_v23  ;;  %v2788_v18 = vmul.f32 %v8130_v45, %v2775_v35  ;;  %v2901_v15 = vmul.f32 0.2, %v2885_v42  ;;  %v3019_v39 = vadd.f32 %v6276_v47, %v3006_v56  ;;  %v8135_v56 = vld [vmem:[#allocation39_spill] sm:$0xff] }
 0x28e   :  { %v3119_v12 = vadd.f32 %v3111_v14, %v3098_v16  ;;  %v3232_v13 = vadd.f32 %v3224_v62, %v3211_v24  ;;  %v3245_v46 = vmul.f32 %v8131_v37, %v8086_v54  ;;  %v3266_v49 = vmul.f32 %v8132_v58, %v8087_v27  ;;  %v8136_v14 = vld [vmem:[#allocation29_spill] sm:$0xff]  ;;  %v8137_v16 = vld [vmem:[#allocation98_spill] sm:$0xff]  ;;  %v8141_v58 = vld [vmem:[#allocation35_spill] sm:$0xff] }
 0x28f   :  { %v2796_v9 = vadd.f32 %v2788_v18, %v2662_v52  ;;  %v2909_v20 = vsel %vm2893_vm10, %v2885_v42, %v2901_v15  ;;  %v1210_v5 = vmul.f32 %v8134_v36, %v8133_v59  ;;  %vm3027_vm11 = vcmp.gt.f32.partialorder %v3019_v39, 0.0  ;;  %v8138_v62 = vld [vmem:[#allocation54_spill] sm:$0xff]  ;;  %v8139_v18 = vld [vmem:[#allocation45_spill] sm:$0xff]  ;;  %v8140_v52 = vld [vmem:[#allocation55_spill] sm:$0xff] }
 0x290   :  { %v2922_v23 = vmul.f32 %v6293_v2, %v2909_v20  ;;  %v3035_v19 = vmul.f32 0.2, %v3019_v39  ;;  %v3140_v35 = vadd.f32 %v3132_v10, %v3119_v12  ;;  %v3253_v45 = vadd.f32 %v3245_v46, %v3232_v13  ;;  %v8142_v36 = vld [vmem:[#allocation81_spill] sm:$0xff]  ;;  %v8143_v2 = vld [vmem:[#allocation90_spill] sm:$0xff] }
 0x291   :  { %v1223_v24 = vmul.f32 %v8136_v14, %v8135_v56  ;;  %v1244_v54 = vmul.f32 %v8138_v62, %v8137_v16  ;;  %v1265_v42 = vmul.f32 %v8140_v52, %v8139_v18  ;;  %v1336_v20 = vmul.f32 %v8142_v36, %v8133_v59  ;;  %v8144_v13 = vld [vmem:[#allocation89_spill] sm:$0xff]  ;;  %v8145_v62 = vld [vmem:[#allocation56_spill] sm:$0xff] }
 0x292   :  { %v2930_v15 = vadd.f32 %v2922_v23, %v2796_v9  ;;  %v3043_v27 = vsel %vm3027_vm11, %v3019_v39, %v3035_v19  ;;  %v3153_v47 = vadd.f32 %v8141_v58, %v3140_v35  ;;  %v3274_v10 = vadd.f32 %v3266_v49, %v3253_v45  ;;  %v8146_v9 = vld [vmem:[#allocation57_spill] sm:$0xff]  ;;  %v8147_v19 = vld [vmem:[#allocation32_spill] sm:$0xff]  ;;  %v8148_v45 = vld [vmem:[#allocation87_spill] sm:$0xff] }
 0x293   :  { %v3056_v37 = vmul.f32 %v8143_v2, %v3043_v27  ;;  %v1231_v12 = vadd.f32 %v1223_v24, %v1210_v5  ;;  %v1349_v46 = vmul.f32 %v8144_v13, %v8135_v56  ;;  %v1370_v43 = vmul.f32 %v8145_v62, %v8137_v16  ;;  %v8149_v5 = vld [vmem:[#allocation82_spill] sm:$0xff] }
 0x294   :  { %vm3161_vm12 = vcmp.gt.f32.partialorder %v3153_v47, 0.0  ;;  %v3169_v14 = vmul.f32 0.2, %v3153_v47  ;;  %v1391_v39 = vmul.f32 %v8146_v9, %v8139_v18  ;;  %v3287_v35 = vadd.f32 %v8147_v19, %v3274_v10 }
 0x295   :  { %v3064_v23 = vadd.f32 %v3056_v37, %v2930_v15  ;;  %v1252_v52 = vadd.f32 %v1244_v54, %v1231_v12  ;;  %v1357_v36 = vadd.f32 %v1349_v46, %v1336_v20  ;;  %v1470_v49 = vmul.f32 %v8148_v45, %v8133_v59 }
 0x296   :  { %v3177_v58 = vsel %vm3161_vm12, %v3153_v47, %v3169_v14  ;;  %v1483_v24 = vmul.f32 %v8149_v5, %v8135_v56  ;;  %v1504_v27 = vmul.f32 %v5859_v26, %v8137_v16  ;;  %vm3295_vm13 = vcmp.gt.f32.partialorder %v3287_v35, 0.0 }
 0x297   :  { %v3190_v62 = vmul.f32 %v6349_v28, %v3177_v58  ;;  %v3303_v13 = vmul.f32 0.2, %v3287_v35  ;;  %v1273_v9 = vadd.f32 %v1265_v42, %v1252_v52  ;;  %v1378_v37 = vadd.f32 %v1370_v43, %v1357_v36  ;;  %v8150_v36 = vld [vmem:[#allocation58_spill] sm:$0xff] }
 0x298   :  { %v1491_v15 = vadd.f32 %v1483_v24, %v1470_v49  ;;  %v1525_v54 = vmul.f32 %v5875_v25, %v8139_v18  ;;  %v1604_v47 = vmul.f32 %v6360_v6, %v8133_v59  ;;  %v1617_v26 = vmul.f32 %v6373_v60, %v8135_v56  ;;  %v8152_v49 = vld [vmem:[#allocation92_spill] sm:$0xff] }
 0x299   :  { %v3198_v14 = vadd.f32 %v3190_v62, %v3064_v23  ;;  %v3311_v20 = vsel %vm3295_vm13, %v3287_v35, %v3303_v13  ;;  %v1286_v10 = vadd.f32 %v5868_v32, %v1273_v9  ;;  %v1399_v12 = vadd.f32 %v1391_v39, %v1378_v37  ;;  %v8151_v13 = vld [vmem:[#allocation33_spill] sm:$0xff]  ;;  %v8153_v39 = vld [vmem:[#allocation94_spill] sm:$0xff] }
 0x29a   :  { %v3324_v58 = vmul.f32 %v6367_v55, %v3311_v20  ;;  %v1512_v46 = vadd.f32 %v1504_v27, %v1491_v15  ;;  %v1638_v43 = vmul.f32 %v8150_v36, %v8137_v16  ;;  %v1625_v25 = vadd.f32 %v1617_v26, %v1604_v47  ;;  %v8154_v37 = vld [vmem:[#allocation34_spill] sm:$0xff] }
 0x29b   :  { %vm1294_vm14 = vcmp.gt.f32.partialorder %v1286_v10, 0.0  ;;  %v1302_v42 = vmul.f32 0.2, %v1286_v10  ;;  %v1659_v52 = vmul.f32 %v5897_v48, %v8139_v18  ;;  %v1412_v35 = vadd.f32 %v8151_v13, %v1399_v12 }
 0x29c   :  { %v3332_v23 = vadd.f32 %v3324_v58, %v3198_v14  ;;  %v1533_v32 = vadd.f32 %v1525_v54, %v1512_v46  ;;  %v1738_v24 = vmul.f32 %v8152_v49, %v8133_v59  ;;  %v1646_v9 = vadd.f32 %v1638_v43, %v1625_v25  ;;  %v8155_v46 = vld [vmem:[#allocation26_spill] sm:$0xff]  ;;  %v8156_v43 = vld [vmem:[#allocation59_spill] sm:$0xff] }
 0x29d   :  { %v1310_v62 = vsel %vm1294_vm14, %v1286_v10, %v1302_v42  ;;  %v1751_v27 = vmul.f32 %v8153_v39, %v8135_v56  ;;  %v1772_v15 = vmul.f32 %v8154_v37, %v8137_v16  ;;  %vm1420_vm15 = vcmp.gt.f32.partialorder %v1412_v35, 0.0 }
 0x29e   :  { %v3347_v47 = vadd.f32 %v6401_v3, %v3332_v23  ;;  %v1323_v20 = vmul.f32 %v5904_v41, %v1310_v62  ;;  %v1428_v48 = vmul.f32 0.2, %v1412_v35  ;;  %v1546_v14 = vadd.f32 %v5910_v17, %v1533_v32 }
 0x29f   :  { %v1667_v54 = vadd.f32 %v1659_v52, %v1646_v9  ;;  %v1759_v26 = vadd.f32 %v1751_v27, %v1738_v24  ;;  %v1793_v10 = vmul.f32 %v5924_v51, %v8139_v18  ;;  %v1872_v36 = vmul.f32 %v8155_v46, %v8133_v59 }
 0x2a0   :  { %vm3355_vm1 = vcmp.gt.f32.partialorder %v3347_v47, 0.0  ;;  %v3363_v58 = vmul.f32 0.2, %v3347_v47  ;;  %v1436_v12 = vsel %vm1420_vm15, %v1412_v35, %v1428_v48  ;;  %vm1554_vm2 = vcmp.gt.f32.partialorder %v1546_v14, 0.0 }
 0x2a1   :  { %v1449_v42 = vmul.f32 %v8156_v43, %v1436_v12  ;;  %v1562_v25 = vmul.f32 0.2, %v1546_v14  ;;  %v1680_v41 = vadd.f32 %v5967_v4, %v1667_v54  ;;  %v1780_v13 = vadd.f32 %v1772_v15, %v1759_v26  ;;  %v8157_v15 = vld [vmem:[#allocation46_spill] sm:$0xff] }
 0x2a2   :  { %v3371_v23 = vsel %vm3355_vm1, %v3347_v47, %v3363_v58  ;;  %v1885_v17 = vmul.f32 %v6419_v11, %v8135_v56  ;;  %v1906_v51 = vmul.f32 %v5931_v8, %v8137_v16  ;;  %v1927_v4 = vmul.f32 %v5947_v44, %v8139_v18  ;;  %v8160_v58 = vld [vmem:[#allocation30_spill] sm:$0xff] }
 0x2a3   :  { %3803 = vmatprep.mubr.msk.f32.mxu0 %vm227_vm0, %v3371_v23  ;;  %v1457_v52 = vadd.f32 %v1449_v42, %v1323_v20  ;;  %v1570_v35 = vsel %vm1554_vm2, %v1546_v14, %v1562_v25  ;;  %vm1688_vm3 = vcmp.gt.f32.partialorder %v1680_v41, 0.0  ;;  %v1696_v32 = vmul.f32 0.2, %v1680_v41  ;;  %v8158_v14 = vld [vmem:[#allocation38_spill] sm:$0xff] }
 0x2a4   :  { %v1583_v24 = vmul.f32 %v5961_v22, %v1570_v35  ;;  %v1801_v62 = vadd.f32 %v1793_v10, %v1780_v13  ;;  %v1893_v9 = vadd.f32 %v1885_v17, %v1872_v36  ;;  %v2006_v37 = vmul.f32 %v6433_v57, %v8133_v59  ;;  %v8159_v10 = vld [vmem:[#allocation60_spill] sm:$0xff] }
 0x2a5   :  { %v1704_v27 = vsel %vm1688_vm3, %v1680_v41, %v1696_v32  ;;  %v2019_v8 = vmul.f32 %v8157_v15, %v8135_v56  ;;  %v2040_v47 = vmul.f32 %v5954_v34, %v8137_v16  ;;  %v2061_v44 = vmul.f32 %v8159_v10, %v8139_v18  ;;  %v8161_v36 = vld [vmem:[#allocation100_spill] sm:$0xff]  ;;  %v8167_v10 = vld [vmem:[#allocation62_spill] sm:$0xff] }
 0x2a6   :  { %v1591_v20 = vadd.f32 %v1583_v24, %v1457_v52  ;;  %v1717_v48 = vmul.f32 %v6016_v0, %v1704_v27  ;;  %v1814_v22 = vadd.f32 %v8158_v14, %v1801_v62  ;;  %v1914_v54 = vadd.f32 %v1906_v51, %v1893_v9 }
 0x2a7   :  { %v2027_v26 = vadd.f32 %v2019_v8, %v2006_v37  ;;  %v2140_v12 = vmul.f32 %v8160_v58, %v8133_v59  ;;  %v2153_v43 = vmul.f32 %v8161_v36, %v8135_v56  ;;  %v2174_v0 = vmul.f32 %v5981_v29, %v8137_v16  ;;  %v8163_v37 = vld [vmem:[#allocation40_spill] sm:$0xff] }
 0x2a8   :  { %v1725_v42 = vadd.f32 %v1717_v48, %v1591_v20  ;;  %vm1822_vm4 = vcmp.gt.f32.partialorder %v1814_v22, 0.0  ;;  %v1830_v25 = vmul.f32 0.2, %v1814_v22  ;;  %v1935_v34 = vadd.f32 %v1927_v4, %v1914_v54  ;;  %v8164_v20 = vld [vmem:[#allocation44_spill] sm:$0xff] }
 0x2a9   :  { %v2048_v41 = vadd.f32 %v2040_v47, %v2027_v26  ;;  %v2161_v23 = vadd.f32 %v2153_v43, %v2140_v12  ;;  %v2195_v13 = vmul.f32 %v6002_v63, %v8139_v18  ;;  %v2274_v52 = vmul.f32 %v6472_v53, %v8133_v59  ;;  %v8162_v63 = vld [vmem:[#allocation91_spill] sm:$0xff] }
 0x2aa   :  { %v1838_v17 = vsel %vm1822_vm4, %v1814_v22, %v1830_v25  ;;  %v1948_v51 = vadd.f32 %v5995_v30, %v1935_v34  ;;  %v2287_v35 = vmul.f32 %v6480_v50, %v8135_v56  ;;  %v2308_v9 = vmul.f32 %v6009_v31, %v8137_v16  ;;  %v8165_v22 = vld [vmem:[#allocation85_spill] sm:$0xff]  ;;  %v8168_v43 = vld [vmem:[#allocation95_spill] sm:$0xff] }
 0x2ab   :  { %v1851_v32 = vmul.f32 %v6043_v40, %v1838_v17  ;;  %v2069_v24 = vadd.f32 %v2061_v44, %v2048_v41  ;;  %v2182_v62 = vadd.f32 %v2174_v0, %v2161_v23  ;;  %v2329_v27 = vmul.f32 %v8162_v63, %v8139_v18  ;;  %v8166_v31 = vld [vmem:[#allocation61_spill] sm:$0xff]  ;;  %v8170_v0 = vld [vmem:[#allocation31_spill] sm:$0xff] }
 0x2ac   :  { %vm1956_vm5 = vcmp.gt.f32.partialorder %v1948_v51, 0.0  ;;  %v1964_v29 = vmul.f32 0.2, %v1948_v51  ;;  %v2295_v4 = vadd.f32 %v2287_v35, %v2274_v52  ;;  %v2408_v48 = vmul.f32 %v8164_v20, %v8133_v59  ;;  %v8169_v41 = vld [vmem:[#allocation93_spill] sm:$0xff]  ;;  %v8171_v35 = vld [vmem:[#allocation63_spill] sm:$0xff] }
 0x2ad   :  { %v1859_v30 = vadd.f32 %v1851_v32, %v1725_v42  ;;  %v2082_v8 = vadd.f32 %v8163_v37, %v2069_v24  ;;  %v2203_v47 = vadd.f32 %v2195_v13, %v2182_v62  ;;  %v2421_v54 = vmul.f32 %v8165_v22, %v8135_v56  ;;  %v8172_v24 = vld [vmem:[#allocation96_spill] sm:$0xff] }
 0x2ae   :  { %v1972_v14 = vsel %vm1956_vm5, %v1948_v51, %v1964_v29  ;;  %v2316_v40 = vadd.f32 %v2308_v9, %v2295_v4  ;;  %v2442_v26 = vmul.f32 %v8166_v31, %v8137_v16  ;;  %v2463_v23 = vmul.f32 %v8169_v41, %v8139_v18  ;;  %v8173_v29 = vld [vmem:[#allocation24_spill] sm:$0xff] }
 0x2af   :  { %v1985_v44 = vmul.f32 %v8167_v10, %v1972_v14  ;;  %vm2090_vm6 = vcmp.gt.f32.partialorder %v2082_v8, 0.0  ;;  %v2098_v12 = vmul.f32 0.2, %v2082_v8  ;;  %v2216_v42 = vadd.f32 %v8168_v43, %v2203_v47  ;;  %v8175_v47 = vld [vmem:[#allocation97_spill] sm:$0xff]  ;;  %v8179_v43 = vld [vmem:[#allocation66_spill] sm:$0xff]  ;;  %v8180_v41 = vld [vmem:[#allocation88_spill] sm:$0xff] }
 0x2b0   :  { %v2337_v25 = vadd.f32 %v2329_v27, %v2316_v40  ;;  %v2429_v34 = vadd.f32 %v2421_v54, %v2408_v48  ;;  %v2542_v13 = vmul.f32 %v8170_v0, %v8133_v59  ;;  %v2555_v4 = vmul.f32 %v8173_v29, %v8135_v56  ;;  %v8174_v27 = vld [vmem:[#allocation47_spill] sm:$0xff] }
 0x2b1   :  { %v1993_v17 = vadd.f32 %v1985_v44, %v1859_v30  ;;  %v2106_v51 = vsel %vm2090_vm6, %v2082_v8, %v2098_v12  ;;  %vm2224_vm7 = vcmp.gt.f32.partialorder %v2216_v42, 0.0  ;;  %v2232_v52 = vmul.f32 0.2, %v2216_v42  ;;  %v8176_v30 = vld [vmem:[#allocation102_spill] sm:$0xff]  ;;  %v8177_v40 = vld [vmem:[#allocation99_spill] sm:$0xff]  ;;  %v8178_v44 = vld [vmem:[#allocation5_spill] sm:$0xff] }
 0x2b2   :  { %v2119_v32 = vmul.f32 %v8171_v35, %v2106_v51  ;;  %v2350_v62 = vadd.f32 %v8172_v24, %v2337_v25  ;;  %v2450_v9 = vadd.f32 %v2442_v26, %v2429_v34  ;;  %v2576_v37 = vmul.f32 %v8174_v27, %v8137_v16 }
 0x2b3   :  { %v2240_v63 = vsel %vm2224_vm7, %v2216_v42, %v2232_v52  ;;  %v2597_v48 = vmul.f32 %v8175_v47, %v8139_v18  ;;  %v2676_v8 = vmul.f32 %v8176_v30, %v8133_v59  ;;  %v2563_v26 = vadd.f32 %v2555_v4, %v2542_v13  ;;  %v8181_v52 = vld [vmem:[#allocation37_spill] sm:$0xff]  ;;  %v8185_v47 = vld [vmem:[#allocation70_spill] sm:$0xff] }
 0x2b4   :  { %v2127_v14 = vadd.f32 %v2119_v32, %v1993_v17  ;;  %v2253_v54 = vmul.f32 %v8177_v40, %v2240_v63  ;;  %vm2358_vm8 = vcmp.gt.f32.partialorder %v2350_v62, 0.0  ;;  %v2366_v31 = vmul.f32 0.2, %v2350_v62  ;;  %v8182_v32 = vld [vmem:[#allocation80_spill] sm:$0xff] }
 0x2b5   :  { %v2471_v10 = vadd.f32 %v2463_v23, %v2450_v9  ;;  %v2689_v12 = vmul.f32 %v8178_v44, %v8135_v56  ;;  %v2710_v42 = vmul.f32 %v8179_v43, %v8137_v16  ;;  %v2731_v51 = vmul.f32 %v8180_v41, %v8139_v18  ;;  %v8183_v9 = vld [vmem:[#allocation14_spill] sm:$0xff]  ;;  %v8184_v63 = vld [vmem:[#allocation68_spill] sm:$0xff] }
 0x2b6   :  { %v2261_v25 = vadd.f32 %v2253_v54, %v2127_v14  ;;  %v2374_v34 = vsel %vm2358_vm8, %v2350_v62, %v2366_v31  ;;  %v2810_v17 = vmul.f32 %v8181_v52, %v8133_v59  ;;  %v2584_v23 = vadd.f32 %v2576_v37, %v2563_v26  ;;  %v8186_v37 = vld [vmem:[#allocation16_spill] sm:$0xff]  ;;  %v6727_v26 = vld [vmem:[%s7509_s7 + $0x36] ss:$0 sm:$0xff] }
 0x2b7   :  { %v2387_v35 = vmul.f32 %v8114_v61, %v2374_v34  ;;  %v2484_v24 = vadd.f32 %v8182_v32, %v2471_v10  ;;  %v2697_v13 = vadd.f32 %v2689_v12, %v2676_v8  ;;  %v2823_v4 = vmul.f32 %v8183_v9, %v8135_v56  ;;  %8187 = vst [vmem:[#allocation6_spill] sm:$0xff] %v6727_v26  ;;  %v8189_v34 = vld [vmem:[#allocation41_spill] sm:$0xff] }
 0x2b8   :  { %v2844_v27 = vmul.f32 %v8184_v63, %v8137_v16  ;;  %v2865_v62 = vmul.f32 %v8115_v1, %v8139_v18  ;;  %v2944_v14 = vmul.f32 %v8185_v47, %v8133_v59  ;;  %v2605_v61 = vadd.f32 %v2597_v48, %v2584_v23  ;;  %v8188_v48 = vld [vmem:[#allocation18_spill] sm:$0xff]  ;;  %v8190_v23 = vld [vmem:[#allocation19_spill] sm:$0xff]  ;;  %v8192_v9 = vld [vmem:[#allocation73_spill] sm:$0xff] }
 0x2b9   :  { %v2395_v40 = vadd.f32 %v2387_v35, %v2261_v25  ;;  %vm2492_vm9 = vcmp.gt.f32.partialorder %v2484_v24, 0.0  ;;  %v2500_v54 = vmul.f32 0.2, %v2484_v24  ;;  %v2718_v31 = vadd.f32 %v2710_v42, %v2697_v13 }
 0x2ba   :  { %v2831_v10 = vadd.f32 %v2823_v4, %v2810_v17  ;;  %v2957_v8 = vmul.f32 %v8186_v37, %v8135_v56  ;;  %v2978_v1 = vmul.f32 %v6727_v26, %v8137_v16  ;;  %v2618_v43 = vadd.f32 %v8119_v38, %v2605_v61  ;;  %v6742_v38 = vld [vmem:[%s7509_s7 + $0x3a] ss:$0 sm:$0xff]  ;;  %v8193_v61 = vld [vmem:[#allocation74_spill] sm:$0xff]  ;;  %v8194_v37 = vld [vmem:[#allocation83_spill] sm:$0xff] }
 0x2bb   :  { %v2508_v12 = vsel %vm2492_vm9, %v2484_v24, %v2500_v54  ;;  %v2999_v25 = vmul.f32 %v8121_v7, %v8139_v18  ;;  %v3078_v42 = vmul.f32 %v8188_v48, %v8133_v59  ;;  %v2739_v52 = vadd.f32 %v2731_v51, %v2718_v31  ;;  %8191 = vst [vmem:[#allocation7_spill] sm:$0xff] %v6742_v38  ;;  %v8195_v48 = vld [vmem:[#allocation21_spill] sm:$0xff] }
 0x2bc   :  { %v2521_v41 = vmul.f32 %v8189_v34, %v2508_v12  ;;  %v2852_v17 = vadd.f32 %v2844_v27, %v2831_v10  ;;  %v2965_v35 = vadd.f32 %v2957_v8, %v2944_v14  ;;  %vm2626_vm10 = vcmp.gt.f32.partialorder %v2618_v43, 0.0 }
 0x2bd   :  { %v2634_v32 = vmul.f32 0.2, %v2618_v43  ;;  %v3091_v13 = vmul.f32 %v8190_v23, %v8135_v56  ;;  %v3112_v7 = vmul.f32 %v6742_v38, %v8137_v16  ;;  %v2752_v4 = vadd.f32 %v8192_v9, %v2739_v52  ;;  %v8202_v9 = vld [vmem:[#allocation72_spill] sm:$0xff] }
 0x2be   :  { %v2529_v24 = vadd.f32 %v2521_v41, %v2395_v40  ;;  %v2873_v63 = vadd.f32 %v2865_v62, %v2852_v17  ;;  %v2986_v51 = vadd.f32 %v2978_v1, %v2965_v35  ;;  %v3133_v14 = vmul.f32 %v8127_v33, %v8139_v18  ;;  %v8196_v1 = vld [vmem:[#allocation27_spill] sm:$0xff]  ;;  %v8197_v41 = vld [vmem:[#allocation25_spill] sm:$0xff] }
 0x2bf   :  { %v2642_v27 = vsel %vm2626_vm10, %v2618_v43, %v2634_v32  ;;  %v3099_v47 = vadd.f32 %v3091_v13, %v3078_v42  ;;  %v3212_v54 = vmul.f32 %v8128_v21, %v8133_v59  ;;  %vm2760_vm11 = vcmp.gt.f32.partialorder %v2752_v4, 0.0  ;;  %v8198_v21 = vld [vmem:[#allocation86_spill] sm:$0xff]  ;;  %v8200_v13 = vld [vmem:[#allocation12_spill] sm:$0xff] }
 0x2c0   :  { %v2655_v31 = vmul.f32 %v8193_v61, %v2642_v27  ;;  %v2768_v10 = vmul.f32 0.2, %v2752_v4  ;;  %v2886_v8 = vadd.f32 %v8194_v37, %v2873_v63  ;;  %v3007_v12 = vadd.f32 %v2999_v25, %v2986_v51  ;;  %v8199_v25 = vld [vmem:[#allocation28_spill] sm:$0xff]  ;;  %v8203_v63 = vld [vmem:[#allocation29_spill] sm:$0xff] }
 0x2c1   :  { %v3120_v40 = vadd.f32 %v3112_v7, %v3099_v47  ;;  %v3225_v62 = vmul.f32 %v8195_v48, %v8135_v56  ;;  %v3246_v43 = vmul.f32 %v8196_v1, %v8137_v16  ;;  %v3267_v23 = vmul.f32 %v8199_v25, %v8139_v18  ;;  %v8201_v7 = vld [vmem:[#allocation42_spill] sm:$0xff]  ;;  %v8205_v47 = vld [vmem:[#allocation35_spill] sm:$0xff]  ;;  %v8206_v18 = vld [vmem:[#allocation49_spill] sm:$0xff] }
 0x2c2   :  { %v2663_v42 = vadd.f32 %v2655_v31, %v2529_v24  ;;  %v2776_v34 = vsel %vm2760_vm11, %v2752_v4, %v2768_v10  ;;  %vm2894_vm12 = vcmp.gt.f32.partialorder %v2886_v8, 0.0  ;;  %v2902_v33 = vmul.f32 0.2, %v2886_v8  ;;  %v8204_v4 = vld [vmem:[#allocation84_spill] sm:$0xff] }
 0x2c3   :  { %v2789_v59 = vmul.f32 %v8197_v41, %v2776_v34  ;;  %v3020_v52 = vadd.f32 %v8198_v21, %v3007_v12  ;;  %v3141_v17 = vadd.f32 %v3133_v14, %v3120_v40  ;;  %v3233_v35 = vadd.f32 %v3225_v62, %v3212_v54  ;;  %v6770_v54 = vld [vmem:[%s7509_s7 + $0x2] ss:$0 sm:$0xff]  ;;  %v6777_v12 = vld [vmem:[%s7509_s7 + $0x3] ss:$0 sm:$0xff]  ;;  %v8207_v40 = vld [vmem:[#allocation52_spill] sm:$0xff] }
 0x2c4   :  { %v2910_v32 = vsel %vm2894_vm12, %v2886_v8, %v2902_v33  ;;  %v1211_v56 = vmul.f32 %v8201_v7, %v8200_v13  ;;  %v1224_v16 = vmul.f32 %v8203_v63, %v8202_v9  ;;  %v1245_v10 = vmul.f32 %v6770_v54, %v8206_v18  ;;  %v8208_v62 = vld [vmem:[#allocation81_spill] sm:$0xff] }
 0x2c5   :  { %v2797_v24 = vadd.f32 %v2789_v59, %v2663_v42  ;;  %v2923_v51 = vmul.f32 %v8204_v4, %v2910_v32  ;;  %vm3028_vm13 = vcmp.gt.f32.partialorder %v3020_v52, 0.0  ;;  %v3036_v27 = vmul.f32 0.2, %v3020_v52  ;;  %v8209_v41 = vld [vmem:[#allocation89_spill] sm:$0xff]  ;;  %v6809_v4 = vld [vmem:[%s7509_s7 + $0xa] ss:$0 sm:$0xff] }
 0x2c6   :  { %v3154_v61 = vadd.f32 %v8205_v47, %v3141_v17  ;;  %v3254_v31 = vadd.f32 %v3246_v43, %v3233_v35  ;;  %v1232_v14 = vadd.f32 %v1224_v16, %v1211_v56  ;;  %v1266_v48 = vmul.f32 %v6777_v12, %v8207_v40  ;;  %v6789_v21 = vld [vmem:[%s7509_s7 + $0x6] ss:$0 sm:$0xff]  ;;  %v6796_v17 = vld [vmem:[%s7509_s7 + $0x7] ss:$0 sm:$0xff] }
 0x2c7   :  { %v2931_v37 = vadd.f32 %v2923_v51, %v2797_v24  ;;  %v3044_v8 = vsel %vm3028_vm13, %v3020_v52, %v3036_v27  ;;  %v1337_v1 = vmul.f32 %v8208_v62, %v8200_v13  ;;  %v1350_v59 = vmul.f32 %v8209_v41, %v8202_v9 }
 0x2c8   :  { %v3057_v43 = vmul.f32 %v8143_v2, %v3044_v8  ;;  %vm3162_vm14 = vcmp.gt.f32.partialorder %v3154_v61, 0.0  ;;  %v3170_v42 = vmul.f32 0.2, %v3154_v61  ;;  %v3275_v34 = vadd.f32 %v3267_v23, %v3254_v31 }
 0x2c9   :  { %v1253_v33 = vadd.f32 %v1245_v10, %v1232_v14  ;;  %v1371_v52 = vmul.f32 %v6789_v21, %v8206_v18  ;;  %v1392_v2 = vmul.f32 %v6796_v17, %v8207_v40  ;;  %v1471_v23 = vmul.f32 %v8148_v45, %v8200_v13  ;;  %v6816_v45 = vld [vmem:[%s7509_s7 + $0xb] ss:$0 sm:$0xff] }
 0x2ca   :  { %v3065_v35 = vadd.f32 %v3057_v43, %v2931_v37  ;;  %v3178_v32 = vsel %vm3162_vm14, %v3154_v61, %v3170_v42  ;;  %v3288_v25 = vadd.f32 %v8147_v19, %v3275_v34  ;;  %v1358_v63 = vadd.f32 %v1350_v59, %v1337_v1  ;;  %v6833_v37 = vld [vmem:[%s7509_s7 + $0xe] ss:$0 sm:$0xff] }
 0x2cb   :  { %v3191_v7 = vmul.f32 %v6349_v28, %v3178_v32  ;;  %v1274_v56 = vadd.f32 %v1266_v48, %v1253_v33  ;;  %v1484_v16 = vmul.f32 %v8149_v5, %v8202_v9  ;;  %v1505_v19 = vmul.f32 %v6809_v4, %v8206_v18  ;;  %v6823_v5 = vld [vmem:[%s7510_s8] ss:$0 sm:$0xff] }
 0x2cc   :  { %vm3296_vm15 = vcmp.gt.f32.partialorder %v3288_v25, 0.0  ;;  %v3304_v24 = vmul.f32 0.2, %v3288_v25  ;;  %v1526_v28 = vmul.f32 %v6816_v45, %v8207_v40  ;;  %v1379_v47 = vadd.f32 %v1371_v52, %v1358_v63  ;;  %v6872_v63 = vld [vmem:[%s7510_s8 + $0x2] ss:$0 sm:$0xff] }
 0x2cd   :  { %v3199_v51 = vadd.f32 %v3191_v7, %v3065_v35  ;;  %v1287_v27 = vadd.f32 %v6823_v5, %v1274_v56  ;;  %v1492_v61 = vadd.f32 %v1484_v16, %v1471_v23  ;;  %v1605_v14 = vmul.f32 %v6360_v6, %v8200_v13  ;;  %v6841_v6 = vld [vmem:[%s7509_s7 + $0xf] ss:$0 sm:$0xff] }
 0x2ce   :  { %v3312_v31 = vsel %vm3296_vm15, %v3288_v25, %v3304_v24  ;;  %v1618_v10 = vmul.f32 %v6373_v60, %v8202_v9  ;;  %v1639_v8 = vmul.f32 %v6833_v37, %v8206_v18  ;;  %v1400_v1 = vadd.f32 %v1392_v2, %v1379_v47  ;;  %v6858_v2 = vld [vmem:[%s7511_s9] ss:$0 sm:$0xff]  ;;  %v6864_v25 = vld [vmem:[%s7509_s7 + $0x12] ss:$0 sm:$0xff] }
 0x2cf   :  { %v3325_v48 = vmul.f32 %v6367_v55, %v3312_v31  ;;  %vm1295_vm1 = vcmp.gt.f32.partialorder %v1287_v27, 0.0  ;;  %v1303_v62 = vmul.f32 0.2, %v1287_v27  ;;  %v1513_v43 = vadd.f32 %v1505_v19, %v1492_v61  ;;  %v6850_v55 = vld [vmem:[%s7510_s8 + $0x1] ss:$0 sm:$0xff] }
 0x2d0   :  { %v1626_v42 = vadd.f32 %v1618_v10, %v1605_v14  ;;  %v1660_v60 = vmul.f32 %v6841_v6, %v8207_v40  ;;  %v1739_v34 = vmul.f32 %v8152_v49, %v8200_v13  ;;  %v1413_v59 = vadd.f32 %v6850_v55, %v1400_v1  ;;  %v6878_v19 = vld [vmem:[%s7509_s7 + $0x13] ss:$0 sm:$0xff]  ;;  %v6887_v61 = vld [vmem:[%s7511_s9 + $0x1] ss:$0 sm:$0xff]  ;;  %v6893_v10 = vld [vmem:[%s7510_s8 + $0x3] ss:$0 sm:$0xff] }
 0x2d1   :  { %v3333_v33 = vadd.f32 %v3325_v48, %v3199_v51  ;;  %v1311_v41 = vsel %vm1295_vm1, %v1287_v27, %v1303_v62  ;;  %v1752_v52 = vmul.f32 %v8153_v39, %v8202_v9  ;;  %v1534_v49 = vadd.f32 %v1526_v28, %v1513_v43  ;;  %v6901_v1 = vld [vmem:[%s7509_s7 + $0x16] ss:$0 sm:$0xff] }
 0x2d2   :  { %v1324_v35 = vmul.f32 %v6858_v2, %v1311_v41  ;;  %v1647_v32 = vadd.f32 %v1639_v8, %v1626_v42  ;;  %v1773_v23 = vmul.f32 %v6864_v25, %v8206_v18  ;;  %vm1421_vm2 = vcmp.gt.f32.partialorder %v1413_v59, 0.0  ;;  %v6915_v41 = vld [vmem:[%s7510_s8 + $0x4] ss:$0 sm:$0xff] }
 0x2d3   :  { %v3348_v7 = vadd.f32 %v6401_v3, %v3333_v33  ;;  %v1429_v39 = vmul.f32 0.2, %v1413_v59  ;;  %v1760_v56 = vadd.f32 %v1752_v52, %v1739_v34  ;;  %v1547_v16 = vadd.f32 %v6872_v63, %v1534_v49  ;;  %v6909_v33 = vld [vmem:[%s7511_s9 + $0x2] ss:$0 sm:$0xff] }
 0x2d4   :  { %v1668_v24 = vadd.f32 %v1660_v60, %v1647_v32  ;;  %v1794_v28 = vmul.f32 %v6878_v19, %v8207_v40  ;;  %v1873_v3 = vmul.f32 %v8155_v46, %v8200_v13  ;;  %v1886_v62 = vmul.f32 %v6419_v11, %v8202_v9 }
 0x2d5   :  { %vm3356_vm3 = vcmp.gt.f32.partialorder %v3348_v7, 0.0  ;;  %v3364_v51 = vmul.f32 0.2, %v3348_v7  ;;  %v1437_v27 = vsel %vm1421_vm2, %v1413_v59, %v1429_v39  ;;  %v1781_v47 = vadd.f32 %v1773_v23, %v1760_v56  ;;  %v6932_v39 = vld [vmem:[%s7509_s7 + $0x1a] ss:$0 sm:$0xff] }
 0x2d6   :  { %v1450_v31 = vmul.f32 %v6887_v61, %v1437_v27  ;;  %vm1555_vm4 = vcmp.gt.f32.partialorder %v1547_v16, 0.0  ;;  %v1563_v14 = vmul.f32 0.2, %v1547_v16  ;;  %v1681_v46 = vadd.f32 %v6893_v10, %v1668_v24  ;;  %v6939_v24 = vld [vmem:[%s7511_s9 + $0x3] ss:$0 sm:$0xff] }
 0x2d7   :  { %v3372_v8 = vsel %vm3356_vm3, %v3348_v7, %v3364_v51  ;;  %v1802_v48 = vadd.f32 %v1794_v28, %v1781_v47  ;;  %v1907_v43 = vmul.f32 %v6901_v1, %v8206_v18  ;;  %v1894_v52 = vadd.f32 %v1886_v62, %v1873_v3  ;;  %v6945_v51 = vld [vmem:[%s7509_s7 + $0x1b] ss:$0 sm:$0xff]  ;;  %v6963_v62 = vld [vmem:[%s7511_s9 + $0x4] ss:$0 sm:$0xff] }
 0x2d8   :  { %3804 = vmatmul.mubr.msk.f32.gmra.mxu0 %vm227_vm0, %v3372_v8  ;;  %v1458_v42 = vadd.f32 %v1450_v31, %v1324_v35  ;;  %v1571_v60 = vsel %vm1555_vm4, %v1547_v16, %v1563_v14  ;;  %vm1689_vm5 = vcmp.gt.f32.partialorder %v1681_v46, 0.0  ;;  %v1697_v34 = vmul.f32 0.2, %v1681_v46  ;;  %v6921_v35 = vld [vmem:[%s7509_s7 + $0x17] ss:$0 sm:$0xff] }
 0x2d9   :  { %v1584_v11 = vmul.f32 %v6909_v33, %v1571_v60  ;;  %v1815_v59 = vadd.f32 %v6915_v41, %v1802_v48  ;;  %v1928_v49 = vmul.f32 %v6921_v35, %v8207_v40  ;;  %v2007_v23 = vmul.f32 %v6433_v57, %v8200_v13  ;;  %v6956_v8 = vld [vmem:[%s7509_s7 + $0x1e] ss:$0 sm:$0xff] }
 0x2da   :  { %v1705_v32 = vsel %vm1689_vm5, %v1681_v46, %v1697_v34  ;;  %v2020_v7 = vmul.f32 %v8157_v15, %v8202_v9  ;;  %v2041_v56 = vmul.f32 %v6932_v39, %v8206_v18  ;;  %v1915_v3 = vadd.f32 %v1907_v43, %v1894_v52  ;;  %v6980_v52 = vld [vmem:[%s7509_s7 + $0x22] ss:$0 sm:$0xff] }
 0x2db   :  { %v1592_v16 = vadd.f32 %v1584_v11, %v1458_v42  ;;  %v1718_v28 = vmul.f32 %v6939_v24, %v1705_v32  ;;  %vm1823_vm6 = vcmp.gt.f32.partialorder %v1815_v59, 0.0  ;;  %v1831_v57 = vmul.f32 0.2, %v1815_v59 }
 0x2dc   :  { %v2028_v15 = vadd.f32 %v2020_v7, %v2007_v23  ;;  %v2062_v27 = vmul.f32 %v6945_v51, %v8207_v40  ;;  %v2141_v47 = vmul.f32 %v8160_v58, %v8200_v13  ;;  %v2154_v46 = vmul.f32 %v8161_v36, %v8202_v9  ;;  %v6969_v36 = vld [vmem:[%s7509_s7 + $0x1f] ss:$0 sm:$0xff]  ;;  %v6987_v23 = vld [vmem:[%s7510_s8 + $0x5] ss:$0 sm:$0xff] }
 0x2dd   :  { %v1726_v31 = vadd.f32 %v1718_v28, %v1592_v16  ;;  %v1839_v14 = vsel %vm1823_vm6, %v1815_v59, %v1831_v57  ;;  %v2175_v48 = vmul.f32 %v6956_v8, %v8206_v18  ;;  %v1936_v43 = vadd.f32 %v1928_v49, %v1915_v3 }
 0x2de   :  { %v1852_v58 = vmul.f32 %v6963_v62, %v1839_v14  ;;  %v2049_v42 = vadd.f32 %v2041_v56, %v2028_v15  ;;  %v2196_v60 = vmul.f32 %v6969_v36, %v8207_v40  ;;  %v2162_v34 = vadd.f32 %v2154_v46, %v2141_v47 }
 0x2df   :  { %v2275_v11 = vmul.f32 %v6472_v53, %v8200_v13  ;;  %v2288_v59 = vmul.f32 %v6480_v50, %v8202_v9  ;;  %v2309_v49 = vmul.f32 %v6980_v52, %v8206_v18  ;;  %v1949_v7 = vadd.f32 %v6987_v23, %v1936_v43  ;;  %v6993_v50 = vld [vmem:[%s7509_s7 + $0x23] ss:$0 sm:$0xff] }
 0x2e0   :  { %v1860_v32 = vadd.f32 %v1852_v58, %v1726_v31  ;;  %v2070_v53 = vadd.f32 %v2062_v27, %v2049_v42  ;;  %v2330_v56 = vmul.f32 %v6993_v50, %v8207_v40  ;;  %v2183_v16 = vadd.f32 %v2175_v48, %v2162_v34  ;;  %v7004_v27 = vld [vmem:[%s7510_s8 + $0x6] ss:$0 sm:$0xff]  ;;  %v7017_v48 = vld [vmem:[%s7509_s7 + $0x27] ss:$0 sm:$0xff] }
 0x2e1   :  { %v2296_v28 = vadd.f32 %v2288_v59, %v2275_v11  ;;  %v2409_v57 = vmul.f32 %v8164_v20, %v8200_v13  ;;  %v2422_v3 = vmul.f32 %v8165_v22, %v8202_v9  ;;  %vm1957_vm7 = vcmp.gt.f32.partialorder %v1949_v7, 0.0  ;;  %v7010_v31 = vld [vmem:[%s7509_s7 + $0x26] ss:$0 sm:$0xff]  ;;  %v7032_v59 = vld [vmem:[%s7510_s8 + $0x7] ss:$0 sm:$0xff] }
 0x2e2   :  { %v1965_v15 = vmul.f32 0.2, %v1949_v7  ;;  %v2083_v47 = vadd.f32 %v7004_v27, %v2070_v53  ;;  %v2443_v20 = vmul.f32 %v7010_v31, %v8206_v18  ;;  %v2204_v14 = vadd.f32 %v2196_v60, %v2183_v16  ;;  %v7026_v60 = vld [vmem:[%s7511_s9 + $0x5] ss:$0 sm:$0xff] }
 0x2e3   :  { %v2317_v46 = vadd.f32 %v2309_v49, %v2296_v28  ;;  %v2430_v22 = vadd.f32 %v2422_v3, %v2409_v57  ;;  %v2464_v58 = vmul.f32 %v7017_v48, %v8207_v40  ;;  %v2543_v34 = vmul.f32 %v8170_v0, %v8200_v13  ;;  %v7040_v28 = vld [vmem:[%s7509_s7 + $0x2a] ss:$0 sm:$0xff]  ;;  %v7047_v3 = vld [vmem:[%s7509_s7 + $0x2b] ss:$0 sm:$0xff] }
 0x2e4   :  { %v1973_v43 = vsel %vm1957_vm7, %v1949_v7, %v1965_v15  ;;  %vm2091_vm8 = vcmp.gt.f32.partialorder %v2083_v47, 0.0  ;;  %v2099_v42 = vmul.f32 0.2, %v2083_v47  ;;  %v2217_v49 = vadd.f32 %v7032_v59, %v2204_v14  ;;  %8210 = vst [vmem:[#allocation9_spill] sm:$0xff] %v7047_v3  ;;  %v7060_v14 = vld [vmem:[%s7510_s8 + $0x8] ss:$0 sm:$0xff] }
 0x2e5   :  { %v1986_v11 = vmul.f32 %v7026_v60, %v1973_v43  ;;  %v2338_v7 = vadd.f32 %v2330_v56, %v2317_v46  ;;  %v2451_v53 = vadd.f32 %v2443_v20, %v2430_v22  ;;  %v2556_v0 = vmul.f32 %v8173_v29, %v8202_v9  ;;  %v7054_v29 = vld [vmem:[%s7511_s9 + $0x6] ss:$0 sm:$0xff] }
 0x2e6   :  { %v2107_v16 = vsel %vm2091_vm8, %v2083_v47, %v2099_v42  ;;  %v2577_v57 = vmul.f32 %v7040_v28, %v8206_v18  ;;  %v2598_v56 = vmul.f32 %v7047_v3, %v8207_v40  ;;  %8211 = vst [vmem:[#allocation64_spill] sm:$0xff] %v7054_v29  ;;  %vm2225_vm9 = vcmp.gt.f32.partialorder %v2217_v49, 0.0 }
 0x2e7   :  { %v1994_v15 = vadd.f32 %v1986_v11, %v1860_v32  ;;  %v2120_v47 = vmul.f32 %v7054_v29, %v2107_v16  ;;  %v2233_v20 = vmul.f32 0.2, %v2217_v49  ;;  %v2351_v46 = vadd.f32 %v7060_v14, %v2338_v7  ;;  %v7070_v16 = vld [vmem:[%s7509_s7 + $0x2e] ss:$0 sm:$0xff] }
 0x2e8   :  { %v2472_v22 = vadd.f32 %v2464_v58, %v2451_v53  ;;  %v2564_v43 = vadd.f32 %v2556_v0, %v2543_v34  ;;  %v2677_v32 = vmul.f32 %v8176_v30, %v8200_v13  ;;  %v2690_v3 = vmul.f32 %v8178_v44, %v8202_v9  ;;  %v7077_v58 = vld [vmem:[%s7511_s9 + $0x7] ss:$0 sm:$0xff]  ;;  %v7083_v44 = vld [vmem:[%s7510_s8 + $0x9] ss:$0 sm:$0xff]  ;;  %v7089_v0 = vld [vmem:[%s7509_s7 + $0x2f] ss:$0 sm:$0xff] }
 0x2e9   :  { %v2128_v42 = vadd.f32 %v2120_v47, %v1994_v15  ;;  %v2241_v11 = vsel %vm2225_vm9, %v2217_v49, %v2233_v20  ;;  %v2711_v29 = vmul.f32 %v7070_v16, %v8206_v18  ;;  %vm2359_vm10 = vcmp.gt.f32.partialorder %v2351_v46, 0.0  ;;  %8212 = vst [vmem:[#allocation65_spill] sm:$0xff] %v7083_v44  ;;  %8213 = vst [vmem:[#allocation69_spill] sm:$0xff] %v7089_v0  ;;  %v7096_v47 = vld [vmem:[%s7509_s7 + $0x30] ss:$0 sm:$0xff] }
 0x2ea   :  { %v2254_v30 = vmul.f32 %v7077_v58, %v2241_v11  ;;  %v2367_v34 = vmul.f32 0.2, %v2351_v46  ;;  %v2485_v49 = vadd.f32 %v7083_v44, %v2472_v22  ;;  %v2585_v7 = vadd.f32 %v2577_v57, %v2564_v43  ;;  %8214 = vst [vmem:[#allocation71_spill] sm:$0xff] %v7096_v47 }
 0x2eb   :  { %v2698_v53 = vadd.f32 %v2690_v3, %v2677_v32  ;;  %v2732_v15 = vmul.f32 %v7089_v0, %v8207_v40  ;;  %v2811_v20 = vmul.f32 %v7096_v47, %v8200_v13  ;;  %v7103_v3 = vld [vmem:[%s7511_s9 + $0x8] ss:$0 sm:$0xff]  ;;  %v7109_v0 = vld [vmem:[%s7509_s7 + $0x31] ss:$0 sm:$0xff] }
 0x2ec   :  { %v2262_v11 = vadd.f32 %v2254_v30, %v2128_v42  ;;  %v2375_v22 = vsel %vm2359_vm10, %v2351_v46, %v2367_v34  ;;  %vm2493_vm11 = vcmp.gt.f32.partialorder %v2485_v49, 0.0  ;;  %v2501_v57 = vmul.f32 0.2, %v2485_v49  ;;  %8215 = vst [vmem:[#allocation76_spill] sm:$0xff] %v7103_v3  ;;  %8216 = vst [vmem:[#allocation77_spill] sm:$0xff] %v7109_v0 }
 0x2ed   :  { %v2388_v43 = vmul.f32 %v7103_v3, %v2375_v22  ;;  %v2606_v32 = vadd.f32 %v2598_v56, %v2585_v7  ;;  %v2719_v44 = vadd.f32 %v2711_v29, %v2698_v53  ;;  %v2824_v42 = vmul.f32 %v7109_v0, %v8202_v9  ;;  %v7116_v30 = vld [vmem:[%s7509_s7 + $0x32] ss:$0 sm:$0xff]  ;;  %v7123_v56 = vld [vmem:[%s7509_s7 + $0x33] ss:$0 sm:$0xff]  ;;  %v7137_v22 = vld [vmem:[%s7511_s9 + $0x9] ss:$0 sm:$0xff] }
 0x2ee   :  { %v2509_v46 = vsel %vm2493_vm11, %v2485_v49, %v2501_v57  ;;  %8217 = vst [vmem:[#allocation78_spill] sm:$0xff] %v7116_v30  ;;  %v2845_v34 = vmul.f32 %v7116_v30, %v8206_v18  ;;  %8218 = vst [vmem:[#allocation79_spill] sm:$0xff] %v7123_v56  ;;  %v2866_v29 = vmul.f32 %v7123_v56, %v8207_v40  ;;  %v7130_v49 = vld [vmem:[%s7509_s7 + $0x34] ss:$0 sm:$0xff]  ;;  %v7143_v3 = vld [vmem:[%s7510_s8 + $0xa] ss:$0 sm:$0xff] }
 0x2ef   :  { %8219 = vst [vmem:[#allocation13_spill] sm:$0xff] %v7130_v49  ;;  %v2945_v7 = vmul.f32 %v7130_v49, %v8200_v13  ;;  %v2396_v53 = vadd.f32 %v2388_v43, %v2262_v11  ;;  %8220 = vst [vmem:[#allocation22_spill] sm:$0xff] %v7137_v22  ;;  %v2522_v57 = vmul.f32 %v7137_v22, %v2509_v46  ;;  %v7149_v11 = vld [vmem:[%s7509_s7 + $0x35] ss:$0 sm:$0xff]  ;;  %v7158_v22 = vld [vmem:[%s7509_s7 + $0x37] ss:$0 sm:$0xff] }
 0x2f0   :  { %8221 = vst [vmem:[#allocation10_spill] sm:$0xff] %v7143_v3  ;;  %v2619_v56 = vadd.f32 %v7143_v3, %v2606_v32  ;;  %v2740_v30 = vadd.f32 %v2732_v15, %v2719_v44  ;;  %v2832_v0 = vadd.f32 %v2824_v42, %v2811_v20  ;;  %8222 = vst [vmem:[#allocation43_spill] sm:$0xff] %v7149_v11  ;;  %v7165_v32 = vld [vmem:[%s7510_s8 + $0xb] ss:$0 sm:$0xff]  ;;  %v7171_v49 = vld [vmem:[%s7509_s7 + $0x38] ss:$0 sm:$0xff] }
 0x2f1   :  { %v2958_v43 = vmul.f32 %v7149_v11, %v8202_v9  ;;  %v2979_v46 = vmul.f32 %v6727_v26, %v8206_v18  ;;  %8223 = vst [vmem:[#allocation101_spill] sm:$0xff] %v7158_v22  ;;  %v3000_v44 = vmul.f32 %v7158_v22, %v8207_v40  ;;  %v2530_v15 = vadd.f32 %v2522_v57, %v2396_v53  ;;  %v7178_v53 = vld [vmem:[%s7509_s7 + $0x39] ss:$0 sm:$0xff] }
 0x2f2   :  { %vm2627_vm12 = vcmp.gt.f32.partialorder %v2619_v56, 0.0  ;;  %v2635_v20 = vmul.f32 0.2, %v2619_v56  ;;  %8224 = vst [vmem:[#allocation50_spill] sm:$0xff] %v7165_v32  ;;  %v2753_v42 = vadd.f32 %v7165_v32, %v2740_v30  ;;  %v2853_v11 = vadd.f32 %v2845_v34, %v2832_v0  ;;  %8225 = vst [vmem:[#allocation36_spill] sm:$0xff] %v7171_v49 }
 0x2f3   :  { %v2966_v26 = vadd.f32 %v2958_v43, %v2945_v7  ;;  %v3079_v22 = vmul.f32 %v7171_v49, %v8200_v13  ;;  %v3092_v57 = vmul.f32 %v7178_v53, %v8202_v9  ;;  %v3113_v30 = vmul.f32 %v6742_v38, %v8206_v18  ;;  %v7187_v34 = vld [vmem:[%s7511_s9 + $0xa] ss:$0 sm:$0xff]  ;;  %v7200_v38 = vld [vmem:[%s7509_s7 + $0x3c] ss:$0 sm:$0xff] }
 0x2f4   :  { %v2643_v3 = vsel %vm2627_vm12, %v2619_v56, %v2635_v20  ;;  %vm2761_vm13 = vcmp.gt.f32.partialorder %v2753_v42, 0.0  ;;  %v2769_v0 = vmul.f32 0.2, %v2753_v42  ;;  %v2874_v43 = vadd.f32 %v2866_v29, %v2853_v11  ;;  %v7193_v56 = vld [vmem:[%s7509_s7 + $0x3b] ss:$0 sm:$0xff]  ;;  %8227 = vst [vmem:[#allocation67_spill] sm:$0xff] %v7200_v38 }
 0x2f5   :  { %v2656_v7 = vmul.f32 %v7187_v34, %v2643_v3  ;;  %v2987_v49 = vadd.f32 %v2979_v46, %v2966_v26  ;;  %v3100_v32 = vadd.f32 %v3092_v57, %v3079_v22  ;;  %8226 = vst [vmem:[#allocation15_spill] sm:$0xff] %v7193_v56  ;;  %v3134_v20 = vmul.f32 %v7193_v56, %v8207_v40  ;;  %v7207_v26 = vld [vmem:[%s7509_s7 + $0x3d] ss:$0 sm:$0xff]  ;;  %v7214_v11 = vld [vmem:[%s7511_s9 + $0xb] ss:$0 sm:$0xff] }
 0x2f6   :  { %v2777_v47 = vsel %vm2761_vm13, %v2753_v42, %v2769_v0  ;;  %v3213_v3 = vmul.f32 %v7200_v38, %v8200_v13  ;;  %8228 = vst [vmem:[#allocation53_spill] sm:$0xff] %v7207_v26  ;;  %v3226_v29 = vmul.f32 %v7207_v26, %v8202_v9  ;;  %8229 = vst [vmem:[#allocation17_spill] sm:$0xff] %v7214_v11  ;;  %v7220_v13 = vld [vmem:[%s7510_s8 + $0xc] ss:$0 sm:$0xff]  ;;  %v7226_v9 = vld [vmem:[%s7509_s7 + $0x3e] ss:$0 sm:$0xff] }
 0x2f7   :  { %v2664_v22 = vadd.f32 %v2656_v7, %v2530_v15  ;;  %v2790_v46 = vmul.f32 %v7214_v11, %v2777_v47  ;;  %8230 = vst [vmem:[#allocation75_spill] sm:$0xff] %v7220_v13  ;;  %v2887_v42 = vadd.f32 %v7220_v13, %v2874_v43  ;;  %v3008_v57 = vadd.f32 %v3000_v44, %v2987_v49  ;;  %v7233_v47 = vld [vmem:[%s7509_s7 + $0x3f] ss:$0 sm:$0xff]  ;;  %v7240_v44 = vld [vmem:[%s7510_s8 + $0xd] ss:$0 sm:$0xff] }
 0x2f8   :  { %v3121_v0 = vadd.f32 %v3113_v30, %v3100_v32  ;;  %v3234_v38 = vadd.f32 %v3226_v29, %v3213_v3  ;;  %8231 = vst [vmem:[#allocation20_spill] sm:$0xff] %v7226_v9  ;;  %v3247_v15 = vmul.f32 %v7226_v9, %v8206_v18  ;;  %8232 = vst [vmem:[#allocation8_spill] sm:$0xff] %v7233_v47  ;;  %v4002_v3 = vld [vmem:[%s7509_s7] ss:$0 sm:$0xff]  ;;  %v8234_v29 = vld [vmem:[#allocation11_spill] sm:$0xff] }
 0x2f9   :  { %v3268_v7 = vmul.f32 %v7233_v47, %v8207_v40  ;;  %v2798_v43 = vadd.f32 %v2790_v46, %v2664_v22  ;;  %vm2895_vm14 = vcmp.gt.f32.partialorder %v2887_v42, 0.0  ;;  %v2903_v49 = vmul.f32 0.2, %v2887_v42  ;;  %8233 = vst [vmem:[#allocation39_spill] sm:$0xff] %v7240_v44  ;;  %v4003_v40 = vld [vmem:[%s7509_s7 + $0x1] ss:$0 sm:$0xff] }
 0x2fa   :  { %v3021_v32 = vadd.f32 %v7240_v44, %v3008_v57  ;;  %v3142_v30 = vadd.f32 %v3134_v20, %v3121_v0  ;;  %v3255_v18 = vadd.f32 %v3247_v15, %v3234_v38  ;;  %v1212_v9 = vmul.f32 %v4002_v3, %v8234_v29  ;;  %v8235_v22 = vld [vmem:[#allocation23_spill] sm:$0xff]  ;;  %v8236_v11 = vld [vmem:[#allocation48_spill] sm:$0xff]  ;;  %v7256_v38 = vld [vmem:[%s7511_s9 + $0xc] ss:$0 sm:$0xff] }
 0x2fb   :  { %v1225_v46 = vmul.f32 %v4003_v40, %v8235_v22  ;;  %v2911_v47 = vsel %vm2895_vm14, %v2887_v42, %v2903_v49  ;;  %v1246_v57 = vmul.f32 %v6770_v54, %v8236_v11  ;;  %8237 = vst [vmem:[#allocation98_spill] sm:$0xff] %v7256_v38  ;;  %v7262_v0 = vld [vmem:[%s7510_s8 + $0xe] ss:$0 sm:$0xff]  ;;  %v8238_v40 = vld [vmem:[#allocation51_spill] sm:$0xff]  ;;  %v4006_v44 = vld [vmem:[%s7509_s7 + $0x4] ss:$0 sm:$0xff] }
 0x2fc   :  { %vm3029_vm15 = vcmp.gt.f32.partialorder %v3021_v32, 0.0  ;;  %v3037_v26 = vmul.f32 0.2, %v3021_v32  ;;  %v2924_v20 = vmul.f32 %v7256_v38, %v2911_v47  ;;  %v3155_v15 = vadd.f32 %v7262_v0, %v3142_v30  ;;  %v4007_v47 = vld [vmem:[%s7509_s7 + $0x5] ss:$0 sm:$0xff] }
 0x2fd   :  { %v3276_v42 = vadd.f32 %v3268_v7, %v3255_v18  ;;  %v1233_v49 = vadd.f32 %v1225_v46, %v1212_v9  ;;  %v1267_v54 = vmul.f32 %v6777_v12, %v8238_v40  ;;  %v1338_v13 = vmul.f32 %v4006_v44, %v8234_v29  ;;  %v7284_v7 = vld [vmem:[%s7510_s8 + $0xf] ss:$0 sm:$0xff] }
 0x2fe   :  { %v3045_v3 = vsel %vm3029_vm15, %v3021_v32, %v3037_v26  ;;  %v1351_v38 = vmul.f32 %v4007_v47, %v8235_v22  ;;  %v2932_v56 = vadd.f32 %v2924_v20, %v2798_v43  ;;  %v7278_v26 = vld [vmem:[%s7511_s9 + $0xd] ss:$0 sm:$0xff]  ;;  %vm3163_vm1 = vcmp.gt.f32.partialorder %v3155_v15, 0.0 }
 0x2ff   :  { %v3058_v12 = vmul.f32 %v7278_v26, %v3045_v3  ;;  %v3171_v9 = vmul.f32 0.2, %v3155_v15  ;;  %v3289_v44 = vadd.f32 %v7284_v7, %v3276_v42  ;;  %v1254_v32 = vadd.f32 %v1246_v57, %v1233_v49  ;;  %v4010_v3 = vld [vmem:[%s7509_s7 + $0x8] ss:$0 sm:$0xff]  ;;  %v7298_v42 = vld [vmem:[%s7511_s9 + $0xe] ss:$0 sm:$0xff] }
 0x300   :  { %v1359_v30 = vadd.f32 %v1351_v38, %v1338_v13  ;;  %v1372_v43 = vmul.f32 %v6789_v21, %v8236_v11  ;;  %v1393_v20 = vmul.f32 %v6796_v17, %v8238_v40  ;;  %v1472_v47 = vmul.f32 %v4010_v3, %v8234_v29  ;;  %v4012_v17 = vld [vmem:[%s7509_s7 + $0x9] ss:$0 sm:$0xff] }
 0x301   :  { %v3066_v18 = vadd.f32 %v3058_v12, %v2932_v56  ;;  %v3179_v46 = vsel %vm3163_vm1, %v3155_v15, %v3171_v9  ;;  %vm3297_vm2 = vcmp.gt.f32.partialorder %v3289_v44, 0.0  ;;  %v3305_v21 = vmul.f32 0.2, %v3289_v44 }
 0x302   :  { %v3192_v13 = vmul.f32 %v7298_v42, %v3179_v46  ;;  %v1275_v56 = vadd.f32 %v1267_v54, %v1254_v32  ;;  %v1380_v57 = vadd.f32 %v1372_v43, %v1359_v30  ;;  %v1485_v38 = vmul.f32 %v4012_v17, %v8235_v22  ;;  %v4013_v54 = vld [vmem:[%s7509_s7 + $0xc] ss:$0 sm:$0xff]  ;;  %v7317_v30 = vld [vmem:[%s7511_s9 + $0xf] ss:$0 sm:$0xff] }
 0x303   :  { %v1506_v15 = vmul.f32 %v6809_v4, %v8236_v11  ;;  %v1527_v49 = vmul.f32 %v6816_v45, %v8238_v40  ;;  %v3313_v9 = vsel %vm3297_vm2, %v3289_v44, %v3305_v21  ;;  %v1606_v32 = vmul.f32 %v4013_v54, %v8234_v29  ;;  %v4015_v45 = vld [vmem:[%s7509_s7 + $0xd] ss:$0 sm:$0xff] }
 0x304   :  { %v3200_v12 = vadd.f32 %v3192_v13, %v3066_v18  ;;  %v1288_v46 = vadd.f32 %v6823_v5, %v1275_v56  ;;  %v3326_v4 = vmul.f32 %v7317_v30, %v3313_v9  ;;  %v1401_v43 = vadd.f32 %v1393_v20, %v1380_v57  ;;  %v4016_v57 = vld [vmem:[%s7509_s7 + $0x10] ss:$0 sm:$0xff]  ;;  %v4017_v9 = vld [vmem:[%s7509_s7 + $0x11] ss:$0 sm:$0xff] }
 0x305   :  { %v1493_v3 = vadd.f32 %v1485_v38, %v1472_v47  ;;  %v1619_v5 = vmul.f32 %v4015_v45, %v8235_v22  ;;  %v1640_v18 = vmul.f32 %v6833_v37, %v8236_v11  ;;  %v1661_v13 = vmul.f32 %v6841_v6, %v8238_v40  ;;  %v4019_v45 = vld [vmem:[%s7509_s7 + $0x14] ss:$0 sm:$0xff] }
 0x306   :  { %vm1296_vm3 = vcmp.gt.f32.partialorder %v1288_v46, 0.0  ;;  %v1304_v44 = vmul.f32 0.2, %v1288_v46  ;;  %v3334_v21 = vadd.f32 %v3326_v4, %v3200_v12  ;;  %v1414_v56 = vadd.f32 %v6850_v55, %v1401_v43  ;;  %v7342_v55 = vld [vmem:[%s7512_s10] ss:$0 sm:$0xff] }
 0x307   :  { %v1514_v17 = vadd.f32 %v1506_v15, %v1493_v3  ;;  %v1627_v20 = vadd.f32 %v1619_v5, %v1606_v32  ;;  %v1740_v38 = vmul.f32 %v4016_v57, %v8234_v29  ;;  %v1753_v37 = vmul.f32 %v4017_v9, %v8235_v22 }
 0x308   :  { %v1312_v47 = vsel %vm1296_vm3, %v1288_v46, %v1304_v44  ;;  %v1774_v6 = vmul.f32 %v6864_v25, %v8236_v11  ;;  %v3349_v15 = vadd.f32 %v7342_v55, %v3334_v21  ;;  %vm1422_vm4 = vcmp.gt.f32.partialorder %v1414_v56, 0.0 }
 0x309   :  { %v1325_v12 = vmul.f32 %v6858_v2, %v1312_v47  ;;  %v1430_v46 = vmul.f32 0.2, %v1414_v56  ;;  %v1535_v54 = vadd.f32 %v1527_v49, %v1514_v17  ;;  %v1648_v32 = vadd.f32 %v1640_v18, %v1627_v20 }
 0x30a   :  { %v1761_v4 = vadd.f32 %v1753_v37, %v1740_v38  ;;  %v1795_v43 = vmul.f32 %v6878_v19, %v8238_v40  ;;  %vm3357_vm5 = vcmp.gt.f32.partialorder %v3349_v15, 0.0  ;;  %v3365_v3 = vmul.f32 0.2, %v3349_v15  ;;  %v4020_v19 = vld [vmem:[%s7509_s7 + $0x15] ss:$0 sm:$0xff] }
 0x30b   :  { %v1438_v25 = vsel %vm1422_vm4, %v1414_v56, %v1430_v46  ;;  %v1874_v5 = vmul.f32 %v4019_v45, %v8234_v29  ;;  %v1548_v2 = vadd.f32 %v6872_v63, %v1535_v54  ;;  %v1669_v21 = vadd.f32 %v1661_v13, %v1648_v32  ;;  %v4021_v38 = vld [vmem:[%s7509_s7 + $0x18] ss:$0 sm:$0xff] }
 0x30c   :  { %v1451_v44 = vmul.f32 %v6887_v61, %v1438_v25  ;;  %v1782_v49 = vadd.f32 %v1774_v6, %v1761_v4  ;;  %v3373_v18 = vsel %vm3357_vm5, %v3349_v15, %v3365_v3  ;;  %v1887_v17 = vmul.f32 %v4020_v19, %v8235_v22  ;;  %v4025_v19 = vld [vmem:[%s7509_s7 + $0x20] ss:$0 sm:$0xff] }
 0x30d   :  { %v1908_v56 = vmul.f32 %v6901_v1, %v8236_v11  ;;  %v1929_v20 = vmul.f32 %v6921_v35, %v8238_v40  ;;  %3806 = vmatprep.mubr.msk.f32.mxu0 %vm227_vm0, %v3373_v18  ;;  %vm1556_vm6 = vcmp.gt.f32.partialorder %v1548_v2, 0.0  ;;  %v1564_v63 = vmul.f32 0.2, %v1548_v2  ;;  %v4022_v1 = vld [vmem:[%s7509_s7 + $0x19] ss:$0 sm:$0xff] }
 0x30e   :  { %v1459_v61 = vadd.f32 %v1451_v44, %v1325_v12  ;;  %v1682_v13 = vadd.f32 %v6893_v10, %v1669_v21  ;;  %v1803_v47 = vadd.f32 %v1795_v43, %v1782_v49  ;;  %v1895_v57 = vadd.f32 %v1887_v17, %v1874_v5  ;;  %v4023_v43 = vld [vmem:[%s7509_s7 + $0x1c] ss:$0 sm:$0xff] }
 0x30f   :  { %v2008_v9 = vmul.f32 %v4021_v38, %v8234_v29  ;;  %v2021_v35 = vmul.f32 %v4022_v1, %v8235_v22  ;;  %v1572_v37 = vsel %vm1556_vm6, %v1548_v2, %v1564_v63  ;;  %v2042_v10 = vmul.f32 %v6932_v39, %v8236_v11  ;;  %v4024_v39 = vld [vmem:[%s7509_s7 + $0x1d] ss:$0 sm:$0xff] }
 0x310   :  { %vm1690_vm7 = vcmp.gt.f32.partialorder %v1682_v13, 0.0  ;;  %v1698_v6 = vmul.f32 0.2, %v1682_v13  ;;  %v1585_v15 = vmul.f32 %v6909_v33, %v1572_v37  ;;  %v1816_v12 = vadd.f32 %v6915_v41, %v1803_v47 }
 0x311   :  { %v1916_v46 = vadd.f32 %v1908_v56, %v1895_v57  ;;  %v2029_v54 = vadd.f32 %v2021_v35, %v2008_v9  ;;  %v2063_v4 = vmul.f32 %v6945_v51, %v8238_v40  ;;  %v2142_v3 = vmul.f32 %v4023_v43, %v8234_v29 }
 0x312   :  { %v1706_v32 = vsel %vm1690_vm7, %v1682_v13, %v1698_v6  ;;  %v2155_v33 = vmul.f32 %v4024_v39, %v8235_v22  ;;  %v1593_v25 = vadd.f32 %v1585_v15, %v1459_v61  ;;  %vm1824_vm8 = vcmp.gt.f32.partialorder %v1816_v12, 0.0 }
 0x313   :  { %v1719_v41 = vmul.f32 %v6939_v24, %v1706_v32  ;;  %v1832_v45 = vmul.f32 0.2, %v1816_v12  ;;  %v1937_v5 = vadd.f32 %v1929_v20, %v1916_v46  ;;  %v2050_v44 = vadd.f32 %v2042_v10, %v2029_v54  ;;  %v4029_v32 = vld [vmem:[%s7509_s7 + $0x28] ss:$0 sm:$0xff] }
 0x314   :  { %v2163_v51 = vadd.f32 %v2155_v33, %v2142_v3  ;;  %v2176_v2 = vmul.f32 %v6956_v8, %v8236_v11  ;;  %v2197_v18 = vmul.f32 %v6969_v36, %v8238_v40  ;;  %v2276_v17 = vmul.f32 %v4025_v19, %v8234_v29  ;;  %v4026_v8 = vld [vmem:[%s7509_s7 + $0x21] ss:$0 sm:$0xff] }
 0x315   :  { %v1727_v21 = vadd.f32 %v1719_v41, %v1593_v25  ;;  %v1840_v49 = vsel %vm1824_vm8, %v1816_v12, %v1832_v45  ;;  %v1950_v56 = vadd.f32 %v6987_v23, %v1937_v5  ;;  %v2071_v20 = vadd.f32 %v2063_v4, %v2050_v44  ;;  %v8240_v45 = vld [vmem:[#allocation9_spill] sm:$0xff] }
 0x316   :  { %v1853_v24 = vmul.f32 %v6963_v62, %v1840_v49  ;;  %v2184_v61 = vadd.f32 %v2176_v2, %v2163_v51  ;;  %v2289_v63 = vmul.f32 %v4026_v8, %v8235_v22  ;;  %v2310_v36 = vmul.f32 %v6980_v52, %v8236_v11  ;;  %v4027_v62 = vld [vmem:[%s7509_s7 + $0x24] ss:$0 sm:$0xff]  ;;  %v4028_v52 = vld [vmem:[%s7509_s7 + $0x25] ss:$0 sm:$0xff]  ;;  %v4031_v2 = vld [vmem:[%s7509_s7 + $0x2c] ss:$0 sm:$0xff] }
 0x317   :  { %v2331_v13 = vmul.f32 %v6993_v50, %v8238_v40  ;;  %v2410_v23 = vmul.f32 %v4027_v62, %v8234_v29  ;;  %vm1958_vm9 = vcmp.gt.f32.partialorder %v1950_v56, 0.0  ;;  %v1966_v57 = vmul.f32 0.2, %v1950_v56 }
 0x318   :  { %v1861_v47 = vadd.f32 %v1853_v24, %v1727_v21  ;;  %v2084_v38 = vadd.f32 %v7004_v27, %v2071_v20  ;;  %v2205_v9 = vadd.f32 %v2197_v18, %v2184_v61  ;;  %v2297_v1 = vadd.f32 %v2289_v63, %v2276_v17  ;;  %v8241_v61 = vld [vmem:[#allocation69_spill] sm:$0xff]  ;;  %v8242_v63 = vld [vmem:[#allocation71_spill] sm:$0xff] }
 0x319   :  { %v2423_v35 = vmul.f32 %v4028_v52, %v8235_v22  ;;  %v2444_v50 = vmul.f32 %v7010_v31, %v8236_v11  ;;  %v1974_v37 = vsel %vm1958_vm9, %v1950_v56, %v1966_v57  ;;  %v2465_v10 = vmul.f32 %v7017_v48, %v8238_v40  ;;  %v4030_v31 = vld [vmem:[%s7509_s7 + $0x29] ss:$0 sm:$0xff] }
 0x31a   :  { %vm2092_vm10 = vcmp.gt.f32.partialorder %v2084_v38, 0.0  ;;  %v2100_v6 = vmul.f32 0.2, %v2084_v38  ;;  %v1987_v15 = vmul.f32 %v7026_v60, %v1974_v37  ;;  %v2218_v27 = vadd.f32 %v7032_v59, %v2205_v9  ;;  %v8239_v59 = vld [vmem:[#allocation64_spill] sm:$0xff]  ;;  %v8245_v9 = vld [vmem:[#allocation78_spill] sm:$0xff] }
 0x31b   :  { %v2318_v12 = vadd.f32 %v2310_v36, %v2297_v1  ;;  %v2431_v46 = vadd.f32 %v2423_v35, %v2410_v23  ;;  %v2544_v4 = vmul.f32 %v4029_v32, %v8234_v29  ;;  %v2557_v43 = vmul.f32 %v4030_v31, %v8235_v22  ;;  %v8243_v23 = vld [vmem:[#allocation65_spill] sm:$0xff]  ;;  %v8246_v35 = vld [vmem:[#allocation79_spill] sm:$0xff]  ;;  %v8247_v37 = vld [vmem:[#allocation76_spill] sm:$0xff] }
 0x31c   :  { %v2108_v54 = vsel %vm2092_vm10, %v2084_v38, %v2100_v6  ;;  %v2578_v48 = vmul.f32 %v7040_v28, %v8236_v11  ;;  %v1995_v60 = vadd.f32 %v1987_v15, %v1861_v47  ;;  %vm2226_vm11 = vcmp.gt.f32.partialorder %v2218_v27, 0.0  ;;  %v4032_v28 = vld [vmem:[%s7509_s7 + $0x2d] ss:$0 sm:$0xff] }
 0x31d   :  { %v2121_v3 = vmul.f32 %v8239_v59, %v2108_v54  ;;  %v2234_v39 = vmul.f32 0.2, %v2218_v27  ;;  %v2339_v33 = vadd.f32 %v2331_v13, %v2318_v12  ;;  %v2452_v25 = vadd.f32 %v2444_v50, %v2431_v46  ;;  %v8249_v54 = vld [vmem:[#allocation13_spill] sm:$0xff]  ;;  %v8252_v59 = vld [vmem:[#allocation22_spill] sm:$0xff] }
 0x31e   :  { %v2565_v41 = vadd.f32 %v2557_v43, %v2544_v4  ;;  %v2599_v5 = vmul.f32 %v8240_v45, %v8238_v40  ;;  %v2678_v21 = vmul.f32 %v4031_v2, %v8234_v29  ;;  %v2691_v49 = vmul.f32 %v4032_v28, %v8235_v22  ;;  %v8250_v4 = vld [vmem:[#allocation43_spill] sm:$0xff]  ;;  %v8251_v43 = vld [vmem:[#allocation6_spill] sm:$0xff] }
 0x31f   :  { %v2129_v44 = vadd.f32 %v2121_v3, %v1995_v60  ;;  %v2242_v51 = vsel %vm2226_vm11, %v2218_v27, %v2234_v39  ;;  %v2352_v19 = vadd.f32 %v7060_v14, %v2339_v33  ;;  %v2473_v17 = vadd.f32 %v2465_v10, %v2452_v25  ;;  %v8244_v14 = vld [vmem:[#allocation77_spill] sm:$0xff]  ;;  %v8248_v10 = vld [vmem:[#allocation10_spill] sm:$0xff] }
 0x320   :  { %v2255_v18 = vmul.f32 %v7077_v58, %v2242_v51  ;;  %v2586_v24 = vadd.f32 %v2578_v48, %v2565_v41  ;;  %v2699_v56 = vadd.f32 %v2691_v49, %v2678_v21  ;;  %v2712_v20 = vmul.f32 %v7070_v16, %v8236_v11  ;;  %v8253_v33 = vld [vmem:[#allocation50_spill] sm:$0xff]  ;;  %v8255_v21 = vld [vmem:[#allocation36_spill] sm:$0xff] }
 0x321   :  { %v2733_v8 = vmul.f32 %v8241_v61, %v8238_v40  ;;  %v2812_v36 = vmul.f32 %v8242_v63, %v8234_v29  ;;  %vm2360_vm12 = vcmp.gt.f32.partialorder %v2352_v19, 0.0  ;;  %v2368_v62 = vmul.f32 0.2, %v2352_v19  ;;  %v8256_v61 = vld [vmem:[#allocation7_spill] sm:$0xff] }
 0x322   :  { %v2263_v13 = vadd.f32 %v2255_v18, %v2129_v44  ;;  %v2486_v47 = vadd.f32 %v8243_v23, %v2473_v17  ;;  %v2607_v58 = vadd.f32 %v2599_v5, %v2586_v24  ;;  %v2720_v57 = vadd.f32 %v2712_v20, %v2699_v56  ;;  %v8254_v5 = vld [vmem:[#allocation101_spill] sm:$0xff]  ;;  %v3799_v18 = vpop.f32.mrf.mxu0  ;;  %v8257_v63 = vld [vmem:[#allocation15_spill] sm:$0xff] }
 0x323   :  { %v2825_v38 = vmul.f32 %v8244_v14, %v8235_v22  ;;  %v2846_v1 = vmul.f32 %v8245_v9, %v8236_v11  ;;  %v2376_v16 = vsel %vm2360_vm12, %v2352_v19, %v2368_v62  ;;  %v2867_v50 = vmul.f32 %v8246_v35, %v8238_v40  ;;  %v8258_v23 = vld [vmem:[#allocation75_spill] sm:$0xff]  ;;  %v8261_v9 = vld [vmem:[#allocation53_spill] sm:$0xff] }
 0x324   :  { %vm2494_vm13 = vcmp.gt.f32.partialorder %v2486_v47, 0.0  ;;  %v2502_v52 = vmul.f32 0.2, %v2486_v47  ;;  %v2389_v6 = vmul.f32 %v8247_v37, %v2376_v16  ;;  %v2620_v15 = vadd.f32 %v8248_v10, %v2607_v58  ;;  %v3670_v16 = vld [vmem:[%s7514_s12] ss:$0 sm:$0xff]  ;;  %v8263_v10 = vld [vmem:[#allocation39_spill] sm:$0xff] }
 0x325   :  { %v2741_v27 = vadd.f32 %v2733_v8, %v2720_v57  ;;  %v2833_v12 = vadd.f32 %v2825_v38, %v2812_v36  ;;  %v2946_v32 = vmul.f32 %v8249_v54, %v8234_v29  ;;  %v2959_v31 = vmul.f32 %v8250_v4, %v8235_v22  ;;  %v8260_v57 = vld [vmem:[#allocation17_spill] sm:$0xff]  ;;  %s4059_s12 = smov [#allocation2]  }
 0x326   :  { %v2510_v46 = vsel %vm2494_vm13, %v2486_v47, %v2502_v52  ;;  %v2980_v48 = vmul.f32 %v8251_v43, %v8236_v11  ;;  %v2397_v60 = vadd.f32 %v2389_v6, %v2263_v13  ;;  %vm2628_vm14 = vcmp.gt.f32.partialorder %v2620_v15, 0.0  ;;  %v3474_v52 = vpop.f32.mrf.mxu0  ;;  %s3526_s25 = sshll.u32 %s4059_s12, 4  ;;  %s3527_s25 = int_to_ptr.vmem [resolvable:$true] %s3526_s25 }
 0x327   :  { %v2523_v3 = vmul.f32 %v8252_v59, %v2510_v46  ;;  %v2636_v39 = vmul.f32 0.2, %v2620_v15  ;;  %v2754_v25 = vadd.f32 %v8253_v33, %v2741_v27  ;;  %v2854_v41 = vadd.f32 %v2846_v1, %v2833_v12  ;;  %v8264_v46 = vld [vmem:[#allocation8_spill] sm:$0xff]  ;;  %s4033_s10 = scalar_lea.vmem %s3527_s25, 1024  ;;  %p4038_p1 = scmp.lt.s32.totalorder %s3527_s25, %s3527_s25 }
 0x328   :  { %v2967_v45 = vadd.f32 %v2959_v31, %v2946_v32  ;;  %v3001_v44 = vmul.f32 %v8254_v5, %v8238_v40  ;;  %v3080_v28 = vmul.f32 %v8255_v21, %v8234_v29  ;;  %v3093_v49 = vmul.f32 %v7178_v53, %v8235_v22  ;;  %v8259_v53 = vld [vmem:[#allocation67_spill] sm:$0xff]  ;;  %v8265_v31 = vld [vmem:[#allocation98_spill] sm:$0xff]  ;;  %p4034_p0 = scmp.ne.s32.totalorder %s3527_s25, %s4033_s10  ;;  %p4039_p2 = scmp.lt.s32.totalorder %s4033_s10, %s4033_s10 }
 0x329   :  { %v2531_v51 = vadd.f32 %v2523_v3, %v2397_v60  ;;  %v2644_v2 = vsel %vm2628_vm14, %v2620_v15, %v2636_v39  ;;  %vm2762_vm15 = vcmp.gt.f32.partialorder %v2754_v25, 0.0  ;;  %v2770_v17 = vmul.f32 0.2, %v2754_v25 }
 0x32a   :  { %v2657_v19 = vmul.f32 %v7187_v34, %v2644_v2  ;;  %v2875_v24 = vadd.f32 %v2867_v50, %v2854_v41  ;;  %v2988_v56 = vadd.f32 %v2980_v48, %v2967_v45  ;;  %v3101_v20 = vadd.f32 %v3093_v49, %v3080_v28  ;;  %v8262_v50 = vld [vmem:[#allocation20_spill] sm:$0xff]  ;;  %p4040_p3 = por %p4039_p2, %p4038_p1 }
 0x32b   :  { %v3114_v8 = vmul.f32 %v8256_v61, %v8236_v11  ;;  %v3135_v36 = vmul.f32 %v8257_v63, %v8238_v40  ;;  %v2778_v62 = vsel %vm2762_vm15, %v2754_v25, %v2770_v17  ;;  %v3214_v58 = vmul.f32 %v8259_v53, %v8234_v29 }
 0x32c   :  { %v2665_v13 = vadd.f32 %v2657_v19, %v2531_v51  ;;  %v2888_v47 = vadd.f32 %v8258_v23, %v2875_v24  ;;  %v2791_v34 = vmul.f32 %v8260_v57, %v2778_v62  ;;  %v3009_v14 = vadd.f32 %v3001_v44, %v2988_v56  ;;  %p4041_p4 = pnand %p4040_p3, %p4034_p0 }
 0x32d   :  { %v3122_v38 = vadd.f32 %v3114_v8, %v3101_v20  ;;  %v3227_v1 = vmul.f32 %v8261_v9, %v8235_v22  ;;  %v3248_v37 = vmul.f32 %v8262_v50, %v8236_v11  ;;  %v3269_v54 = vmul.f32 %v8264_v46, %v8238_v40 }
 0x32e   :  { %vm2896_vm1 = vcmp.gt.f32.partialorder %v2888_v47, 0.0  ;;  %v2904_v35 = vmul.f32 0.2, %v2888_v47  ;;  %v2799_v6 = vadd.f32 %v2791_v34, %v2665_v13  ;;  %v3022_v29 = vadd.f32 %v8263_v10, %v3009_v14  ;;  %v3802_v4 = vpop.f32.mrf.mxu0 }
 0x32f   :  { %v3143_v15 = vadd.f32 %v3135_v36, %v3122_v38  ;;  %v3235_v27 = vadd.f32 %v3227_v1, %v3214_v58  ;;  %v3480_v22 = vadd.f32 %v3799_v18, %v3670_v16  ;;  %v3475_v32 = vadd.f32 %v3670_v16, %v3474_v52 }
 0x330   :  { %v2912_v12 = vsel %vm2896_vm1, %v2888_v47, %v2904_v35  ;;  %vm3030_vm2 = vcmp.gt.f32.partialorder %v3022_v29, 0.0  ;;  %v3038_v48 = vmul.f32 0.2, %v3022_v29  ;;  %v3490_v11 = vadd.f32 %v3802_v4, %v3670_v16  ;;  %v3484_v3 = vpop.f32.mrf.mxu0 }
 0x331   :  { %v2925_v43 = vmul.f32 %v8265_v31, %v2912_v12  ;;  %v3156_v60 = vadd.f32 %v7262_v0, %v3143_v15  ;;  %v3256_v59 = vadd.f32 %v3248_v37, %v3235_v27  ;;  %3514 = vst [vmem:[#allocation2 + $0x8] sm:$0xff] %v3480_v22  ;;  %3513 = vst [vmem:[#allocation2] sm:$0xff] %v3475_v32 }
 0x332   :  { %v3046_v33 = vsel %vm3030_vm2, %v3022_v29, %v3038_v48  ;;  %3516 = vst [vmem:[#allocation2 + $0x18] sm:$0xff] %v3490_v11  ;;  %v3485_v45 = vadd.f32 %v3670_v16, %v3484_v3 }
 0x333   :  { %v2933_v39 = vadd.f32 %v2925_v43, %v2799_v6  ;;  %vm3164_vm3 = vcmp.gt.f32.partialorder %v3156_v60, 0.0  ;;  %v3172_v25 = vmul.f32 0.2, %v3156_v60  ;;  %v3059_v40 = vmul.f32 %v7278_v26, %v3046_v33 }
 0x334   :  { %v3277_v41 = vadd.f32 %v3269_v54, %v3256_v59  ;;  %3515 = vst [vmem:[#allocation2 + $0x10] sm:$0xff] %v3485_v45 }
 0x335   :  { %v3180_v5 = vsel %vm3164_vm3, %v3156_v60, %v3172_v25  ;;  %v3067_v44 = vadd.f32 %v3059_v40, %v2933_v39 }
 0x336   :  { %v3193_v51 = vmul.f32 %v7298_v42, %v3180_v5  ;;  %v3290_v0 = vadd.f32 %v7284_v7, %v3277_v41 }
 0x338   :  { %v3201_v2 = vadd.f32 %v3193_v51, %v3067_v44  ;;  %vm3298_vm4 = vcmp.gt.f32.partialorder %v3290_v0, 0.0  ;;  %v3306_v21 = vmul.f32 0.2, %v3290_v0 }
 0x33a   :  { %v3314_v28 = vsel %vm3298_vm4, %v3290_v0, %v3306_v21 }
 0x33b   :  { %v3327_v49 = vmul.f32 %v7317_v30, %v3314_v28 }
 0x33d   :  { %v3335_v18 = vadd.f32 %v3327_v49, %v3201_v2 }
 0x33f   :  { %v3350_v19 = vadd.f32 %v7342_v55, %v3335_v18 }
 0x341   :  { %vm3358_vm5 = vcmp.gt.f32.partialorder %v3350_v19, 0.0  ;;  %v3366_v26 = vmul.f32 0.2, %v3350_v19 }
 0x343   :  { %v3374_v17 = vsel %vm3358_vm5, %v3350_v19, %v3366_v26 }
 0x344   :  { %3807 = vmatmul.mubr.msk.f32.gmra.mxu0 %vm227_vm0, %v3374_v17 }
 0x398   :  { %v3805_v24 = vpop.f32.mrf.mxu0 }
 0x399   :  { %v3500_v56 = vadd.f32 %v3805_v24, %v3670_v16 }
 0x39a   :  { %v3494_v42 = vpop.f32.mrf.mxu0 }
 0x39b   :  { %3518 = vst [vmem:[#allocation2 + $0x28] sm:$0xff] %v3500_v56  ;;  %v3495_v7 = vadd.f32 %v3670_v16, %v3494_v42 }
 0x39d   :  { %3517 = vst [vmem:[#allocation2 + $0x20] sm:$0xff] %v3495_v7 }
 0x404   :  { %v3808_v20 = vpop.f32.mrf.mxu0 }
 0x405   :  { %v3510_v61 = vadd.f32 %v3808_v20, %v3670_v16 }
 0x406   :  { %v3504_v8 = vpop.f32.mrf.mxu0 }
 0x407   :  { %3520 = vst [vmem:[#allocation2 + $0x38] sm:$0xff] %v3510_v61  ;;  %v3505_v30 = vadd.f32 %v3670_v16, %v3504_v8 }
 0x409   :  { %3519 = vst [vmem:[#allocation2 + $0x30] sm:$0xff] %v3505_v30 }
 0x40a   :  { %4044 = shalt.err (!%p4041_p4)
}
 0x40b   :  { %s4060_s0 = smov 128   ;;  %s4061_s1 = smov 8  }
 0x40c   :  { %3532 = dma.vmem_to_hbm [thread:$0]  %s3527_s25, 1024, %s7515_s13, [#allocation3], %s4060_s0, %s4060_s0, %s4061_s1  }
 0x40d   :  { %4053 = dma.done.wait [#allocation3], 1024  }
 0x40e   :  { %4054 = vsyncadd [#allocation3], 4294966272 }
 0x40f   :  { %3536 = vsyncpa [#allocation3], 1 }

</bundles_post_ra>
